<compile_context>
chip_gen: v7x
topology: tpu7x:2x2x1
jax: 0.10.0
libtpu: 0.0.40
codegen_flags: <defaults>
</compile_context>

<pallas_src>
import functools

import jax
import jax.numpy as jnp
from jax.experimental import pallas as pl
from jax.experimental.pallas import tpu as pltpu


# ----------------------------------------------------------------------------
# VMEM budgeting / row-tile selection
# ----------------------------------------------------------------------------
def _vmem_estimate(TR, H, W, Cx, Cs, Cz, Cu, Cout, act_b):
    H2 = 2 * H
    f32b = 4
    est = 2 * (H * W * Cx + H2 * W * 2 * Cs) * act_b            # dbl-buffered inputs
    est += 2 * (TR * W * 2 * Cout) * act_b                      # dbl-buffered out tile
    est += 2 * (Cx * 4 * Cu + 9 * Cz * Cout + 9 * Cout * Cout
                + Cz * Cout + 8 * Cout + 4 * Cu) * f32b         # weights / biases
    est += ((TR + 4) * (W + 2) * 2 * Cz
            + (TR + 2) * (W + 2) * 2 * Cout) * f32b             # padded scratch
    est += 2 * ((TR + 2) * W * 9 * Cz + TR * W * 9 * Cout) * f32b   # im2col temps
    est += 6 * (TR + 2) * W * Cout * f32b                       # f32 conv outputs
    return est


def _pick_row_tile(H, W, Cx, Cs, Cz, Cu, Cout, act_b, max_tile_rows, budget):
    """Largest low-res row tile (divisor of H) whose VMEM estimate fits."""
    best = 1
    for TRl in range(1, H + 1):
        if H % TRl:
            continue
        TR = 2 * TRl
        if max_tile_rows is not None and TR > max(max_tile_rows, 2):
            continue
        if _vmem_estimate(TR, H, W, Cx, Cs, Cz, Cu, Cout, act_b) <= budget:
            best = TRl
    return best


# ----------------------------------------------------------------------------
# Fused kernel: ConvTranspose2d(2,2) + concat + ResidualBlock for one
# (batch image, output-row tile).  Column sub-pixel phases stay packed in the
# channel axis ("even | odd"), so no in-kernel lane interleave is needed.
# ----------------------------------------------------------------------------
def _res_up_block_kernel(x_ref, skip_ref, wup_ref, bt_ref,
                         w1_ref, b1_ref, w2_ref, b2_ref, wi_ref, bi_ref,
                         o_ref, zpad_ref, hpad_ref):
    # x_ref   : (H,  W, Cx)         low-res input (full image, resident per batch)
    # skip_ref: (H2, W, 2*Cs)       skip connection, column-parity packed
    # wup_ref : (Cx, 4*Cu)          ConvTranspose2d weights, (ki, kj, co) packed
    # bt_ref  : (1, 4*Cu)
    # w1_ref  : (9*Cz, Cout)        conv1 (BN1 folded), HWIO flattened
    # w2_ref  : (9*Cout, Cout)      conv2 (BN2 folded), HWIO flattened
    # wi_ref  : (Cz, Cout)          1x1 identity conv (BNi folded)
    # b*_ref  : (1, Cout)           folded biases
    # o_ref   : (TR, W, 2*Cout)     output row tile, column-parity packed
    # zpad_ref: (TR+4, W+2, 2*Cz)   f32 scratch: padded concat([u, skip])
    # hpad_ref: (TR+2, W+2, 2*Cout) f32 scratch: padded conv1 activation
    t = pl.program_id(1)
    T = pl.num_programs(1)
    TR, W, C2 = o_ref.shape
    Cout = C2 // 2
    Cz = zpad_ref.shape[2] // 2
    Cu = bt_ref.shape[1] // 4
    Cs = Cz - Cu
    TRl = TR // 2
    R1 = TR + 2
    f32 = jnp.float32
    dn = (((2,), (0,)), ((), ()))
    zdt = zpad_ref.dtype
    hdt = hpad_ref.dtype

    r0 = t * TR           # first upsampled output row of this tile
    lo0 = t * TRl         # first low-res input row of this tile

    # ---- zero only the halo borders of the padded scratch (the interior is
    #      always fully overwritten below)
    zero_rows = jnp.zeros((2, W + 2, 2 * Cz), zdt)
    zpad_ref[0:2] = zero_rows
    zpad_ref[TR + 2:TR + 4] = zero_rows
    zero_col = jnp.zeros((TR + 4, 1, 2 * Cz), zdt)
    zpad_ref[:, 0:1] = zero_col
    zpad_ref[:, W + 1:W + 2] = zero_col
    zero_hcol = jnp.zeros((TR + 2, 1, 2 * Cout), hdt)
    hpad_ref[:, 0:1] = zero_hcol
    hpad_ref[:, W + 1:W + 2] = zero_hcol

    # ---- fused ConvTranspose2d(k=2, s=2): u never touches HBM -------------
    def upconv(x_slab):
        # x_slab: (nlo, W, Cx) -> (u_even, u_odd), each (2*nlo, W, Cu), f32
        nlo = x_slab.shape[0]
        y = jax.lax.dot_general(x_slab.astype(f32), wup_ref[...], dn,
                                preferred_element_type=f32)
        y = y + bt_ref[0]                                  # (nlo, W, 4*Cu)
        u_e = jnp.stack([y[:, :, 0:Cu], y[:, :, 2 * Cu:3 * Cu]], axis=1)
        u_o = jnp.stack([y[:, :, Cu:2 * Cu], y[:, :, 3 * Cu:4 * Cu]], axis=1)
        return u_e.reshape(2 * nlo, W, Cu), u_o.reshape(2 * nlo, W, Cu)

    def fill_z(dst_row, u_e, u_o, sk):
        nr = u_e.shape[0]
        zpad_ref[dst_row:dst_row + nr, 1:1 + W, 0:Cu] = u_e.astype(zdt)
        zpad_ref[dst_row:dst_row + nr, 1:1 + W, Cz:Cz + Cu] = u_o.astype(zdt)
        zpad_ref[dst_row:dst_row + nr, 1:1 + W, Cu:Cz] = (
            sk[:, :, 0:Cs].astype(zdt))
        zpad_ref[dst_row:dst_row + nr, 1:1 + W, Cz + Cu:2 * Cz] = (
            sk[:, :, Cs:2 * Cs].astype(zdt))

    # main body: upsampled rows [r0, r0 + TR)
    u_e, u_o = upconv(x_ref[pl.ds(lo0, TRl), :, :])
    fill_z(2, u_e, u_o, skip_ref[pl.ds(r0, TR), :, :])

    # 2-row halos recomputed from neighbouring source rows; at the image
    # borders they stay zero (== conv1's 'same' padding there).
    @pl.when(t > 0)
    def _top_halo():
        ue_h, uo_h = upconv(x_ref[pl.ds(lo0 - 1, 1), :, :])
        fill_z(0, ue_h, uo_h, skip_ref[pl.ds(r0 - 2, 2), :, :])

    @pl.when(t + 1 < T)
    def _bottom_halo():
        ue_h, uo_h = upconv(x_ref[pl.ds(lo0 + TRl, 1), :, :])
        fill_z(TR + 2, ue_h, uo_h, skip_ref[pl.ds(r0 + TR, 2), :, :])

    # ---- 3x3 'same' convs as one im2col matmul (K = 9*C) per column parity
    def conv3x3(src_ref, nrows, cin, w_ref, b_ref):
        taps_e, taps_o = [], []
        for di in range(3):
            taps_e.append(src_ref[di:di + nrows, 0:W, cin:2 * cin])
            taps_e.append(src_ref[di:di + nrows, 1:1 + W, :])
            taps_o.append(src_ref[di:di + nrows, 1:1 + W, :])
            taps_o.append(src_ref[di:di + nrows, 2:2 + W, 0:cin])
        im_e = jnp.concatenate(taps_e, axis=-1)            # (nrows, W, 9*cin)
        im_o = jnp.concatenate(taps_o, axis=-1)
        w = w_ref[...]
        b = b_ref[0]
        out_e = jax.lax.dot_general(im_e, w, dn, preferred_element_type=f32) + b
        out_o = jax.lax.dot_general(im_o, w, dn, preferred_element_type=f32) + b
        return out_e, out_o

    # conv1 + BN1 (folded) + ReLU over the row-extended range [r0-1, r0+TR+1)
    h1_e, h1_o = conv3x3(zpad_ref, R1, Cz, w1_ref, b1_ref)
    hpad_ref[:, 1:1 + W, 0:Cout] = jnp.maximum(h1_e, 0.0).astype(hdt)
    hpad_ref[:, 1:1 + W, Cout:2 * Cout] = jnp.maximum(h1_o, 0.0).astype(hdt)

    # rows outside the image are conv2's zero 'same' padding, not conv1 output
    @pl.when(t == 0)
    def _zero_top_row():
        hpad_ref[0:1] = jnp.zeros((1, W + 2, 2 * Cout), hdt)

    @pl.when(t == T - 1)
    def _zero_bottom_row():
        hpad_ref[TR + 1:TR + 2] = jnp.zeros((1, W + 2, 2 * Cout), hdt)

    # conv2 + BN2 (folded); NOTE: no ReLU before the residual add
    h2_e, h2_o = conv3x3(hpad_ref, TR, Cout, w2_ref, b2_ref)

    # identity branch: 1x1 conv over z + BNi (folded)
    bi = bi_ref[0]
    z_e = zpad_ref[2:2 + TR, 1:1 + W, 0:Cz]
    z_o = zpad_ref[2:2 + TR, 1:1 + W, Cz:2 * Cz]
    id_e = jax.lax.dot_general(z_e, wi_ref[...], dn,
                               preferred_element_type=f32) + bi
    id_o = jax.lax.dot_general(z_o, wi_ref[...], dn,
                               preferred_element_type=f32) + bi

    # residual add + final ReLU; output stays column-parity packed so every
    # store is 2*Cout lanes wide
    out_e = jnp.maximum(h2_e + id_e, 0.0)
    out_o = jnp.maximum(h2_o + id_o, 0.0)
    o_ref[...] = jnp.concatenate([out_e, out_o], axis=-1).astype(o_ref.dtype)


# ----------------------------------------------------------------------------
# Host-side glue: eval-mode BN folding + forward pass.
# ----------------------------------------------------------------------------
def _fold_bn(w_oihw, b, gamma, beta, mean, var, eps):
    """Fold eval-mode BatchNorm into conv weights/bias.  Returns HWIO weights."""
    scale = gamma / jnp.sqrt(var + eps)                       # (Cout,)
    w_hwio = jnp.transpose(w_oihw, (2, 3, 1, 0)) * scale      # (kh,kw,Cin,Cout)
    b_f = beta + scale * (b - mean)
    return w_hwio, b_f


def res_up_block_forward_nhwc(x, skip, params, *, eps=1e-5,
                              act_dtype=jnp.bfloat16,
                              max_tile_rows=None,
                              vmem_budget_bytes=20 * 2**20):
    """NHWC forward. x: (N,H,W,in_ch); skip: (N,2H,2W,in_ch-out_ch)."""
    N, H, W, Cx = x.shape
    Ns, H2, W2, Cs = skip.shape
    assert Ns == N and H2 == 2 * H and W2 == 2 * W
    Cu = params["wt"].shape[1]                    # up-conv output channels
    Cout = params["w2"].shape[0]
    Cz = Cu + Cs                                  # concat([u, skip]) channels
    assert params["w1"].shape[1] == Cz, "concat channels must match conv1 in_ch"
    assert Cs >= 1, "in_ch == out_ch (empty identity_map) is not implemented"

    f32 = jnp.float32
    # fold eval-mode BN scale into weights (host side, once per param set)
    w1, b1 = _fold_bn(params["w1"], params["b1"], params["g1"], params["be1"],
                      params["m1"], params["v1"], eps)
    w2, b2 = _fold_bn(params["w2"], params["b2"], params["g2"], params["be2"],
                      params["m2"], params["v2"], eps)
    wi, bi = _fold_bn(params["wi"], params["bi"], params["gi"], params["bei"],
                      params["mi"], params["vi"], eps)
    w1f = w1.reshape(9 * Cz, Cout).astype(f32)
    w2f = w2.reshape(9 * Cout, Cout).astype(f32)
    wif = wi.reshape(Cz, Cout).astype(f32)
    wup = jnp.transpose(params["wt"], (0, 2, 3, 1)).reshape(Cx, 4 * Cu).astype(f32)
    bt4 = jnp.tile(params["bt"], 4).reshape(1, 4 * Cu).astype(f32)
    b1f = b1.reshape(1, Cout).astype(f32)
    b2f = b2.reshape(1, Cout).astype(f32)
    bif = bi.reshape(1, Cout).astype(f32)

    # HBM activations in act_dtype (bf16 by default); column parity packed
    # into the channel axis (free row-major reshape in HBM).
    x_c = x.astype(act_dtype)
    skip_c = skip.reshape(N, H2, W, 2 * Cs).astype(act_dtype)

    act_b = jnp.dtype(act_dtype).itemsize
    TRl = _pick_row_tile(H, W, Cx, Cs, Cz, Cu, Cout, act_b,
                         max_tile_rows, vmem_budget_bytes)
    TR = 2 * TRl
    T = H2 // TR
    est = _vmem_estimate(TR, H, W, Cx, Cs, Cz, Cu, Cout, act_b)
    vmem_limit = int(min(max(int(1.5 * est), 32 * 2**20), 100 * 2**20))

    out_packed = pl.pallas_call(
        _res_up_block_kernel,
        out_shape=jax.ShapeDtypeStruct((N, H2, W, 2 * Cout), act_dtype),
        grid=(N, T),
        in_specs=[
            pl.BlockSpec((None, H, W, Cx), lambda n, t: (n, 0, 0, 0)),
            pl.BlockSpec((None, H2, W, 2 * Cs), lambda n, t: (n, 0, 0, 0)),
            pl.BlockSpec((Cx, 4 * Cu), lambda n, t: (0, 0)),
            pl.BlockSpec((1, 4 * Cu), lambda n, t: (0, 0)),
            pl.BlockSpec((9 * Cz, Cout), lambda n, t: (0, 0)),
            pl.BlockSpec((1, Cout), lambda n, t: (0, 0)),
            pl.BlockSpec((9 * Cout, Cout), lambda n, t: (0, 0)),
            pl.BlockSpec((1, Cout), lambda n, t: (0, 0)),
            pl.BlockSpec((Cz, Cout), lambda n, t: (0, 0)),
            pl.BlockSpec((1, Cout), lambda n, t: (0, 0)),
        ],
        out_specs=pl.BlockSpec((None, TR, W, 2 * Cout),
                               lambda n, t: (n, t, 0, 0)),
        scratch_shapes=[
            pltpu.VMEM((TR + 4, W + 2, 2 * Cz), f32),
            pltpu.VMEM((TR + 2, W + 2, 2 * Cout), f32),
        ],
        compiler_params=pltpu.CompilerParams(
            dimension_semantics=("parallel", "parallel"),
            vmem_limit_bytes=vmem_limit),
    )(x_c, skip_c, wup, bt4, w1f, b1f, w2f, b2f, wif, bif)

    # free row-major reshape: (N, H2, W, 2*Cout) -> (N, 2H, 2W, Cout)
    return out_packed.reshape(N, H2, 2 * W, Cout)


def res_up_block_forward(x_nchw, skip_nchw, params, **kwargs):
    """NCHW adapter matching the PyTorch module interface."""
    x = jnp.transpose(x_nchw, (0, 2, 3, 1))
    skip = jnp.transpose(skip_nchw, (0, 2, 3, 1))
    y = res_up_block_forward_nhwc(x, skip, params, **kwargs)
    return jnp.transpose(y, (0, 3, 1, 2))


# ----------------------------------------------------------------------------
# Pure-JAX reference (un-folded BN, f32) for correctness checking.
# ----------------------------------------------------------------------------
def _bn(x, g, beta, m, v, eps):
    return (x - m) * (g / jnp.sqrt(v + eps)) + beta


def res_up_block_reference(x_nchw, skip_nchw, p, eps=1e-5):
    x = jnp.transpose(x_nchw, (0, 2, 3, 1)).astype(jnp.float32)
    skip = jnp.transpose(skip_nchw, (0, 2, 3, 1)).astype(jnp.float32)
    N, H, W, _ = x.shape
    wt = p["wt"].astype(jnp.float32)
    Cu = wt.shape[1]
    y = jnp.einsum("nhwi,iokl->nhwklo", x, wt)
    u = jnp.transpose(y, (0, 1, 3, 2, 4, 5)).reshape(N, 2 * H, 2 * W, Cu) + p["bt"]
    z = jnp.concatenate([u, skip], axis=-1)

    def conv(a, w_oihw, b):
        w = jnp.transpose(w_oihw, (2, 3, 1, 0)).astype(jnp.float32)
        return jax.lax.conv_general_dilated(
            a, w, (1, 1), "SAME",
            dimension_numbers=("NHWC", "HWIO", "NHWC")) + b

    h = jnp.maximum(_bn(conv(z, p["w1"], p["b1"]),
                        p["g1"], p["be1"], p["m1"], p["v1"], eps), 0.0)
    h = _bn(conv(h, p["w2"], p["b2"]), p["g2"], p["be2"], p["m2"], p["v2"], eps)
    idn = _bn(conv(z, p["wi"], p["bi"]), p["gi"], p["bei"], p["mi"], p["vi"], eps)
    out = jnp.maximum(h + idn, 0.0)
    return jnp.transpose(out, (0, 3, 1, 2))


def init_params(key, in_ch, out_ch):
    ks = jax.random.split(key, 8)
    return {
        # ConvTranspose2d(in_ch, out_ch, 2, 2): weight (in_ch, out_ch, 2, 2)
        "wt": jax.random.normal(ks[0], (in_ch, out_ch, 2, 2), jnp.float32) * 0.1,
        "bt": jax.random.normal(ks[1], (out_ch,), jnp.float32) * 0.1,
        # ResidualBlock conv1: Conv2d(in_ch, out_ch, 3) + BatchNorm2d(out_ch)
        "w1": jax.random.normal(ks[2], (out_ch, in_ch, 3, 3), jnp.float32) * 0.1,
        "b1": jax.random.normal(ks[3], (out_ch,), jnp.float32) * 0.1,
        "g1": jnp.ones((out_ch,), jnp.float32) * 1.1,
        "be1": jnp.full((out_ch,), 0.05, jnp.float32),
        "m1": jnp.full((out_ch,), 0.02, jnp.float32),
        "v1": jnp.ones((out_ch,), jnp.float32) * 0.9,
        # ResidualBlock conv2: Conv2d(out_ch, out_ch, 3) + BatchNorm2d(out_ch)
        "w2": jax.random.normal(ks[4], (out_ch, out_ch, 3, 3), jnp.float32) * 0.1,
        "b2": jax.random.normal(ks[5], (out_ch,), jnp.float32) * 0.1,
        "g2": jnp.ones((out_ch,), jnp.float32) * 0.95,
        "be2": jnp.full((out_ch,), -0.03, jnp.float32),
        "m2": jnp.full((out_ch,), 0.01, jnp.float32),
        "v2": jnp.ones((out_ch,), jnp.float32) * 1.05,
        # identity_map: Conv2d(in_ch, out_ch, 1) + BatchNorm2d(out_ch)
        "wi": jax.random.normal(ks[6], (out_ch, in_ch, 1, 1), jnp.float32) * 0.1,
        "bi": jax.random.normal(ks[7], (out_ch,), jnp.float32) * 0.1,
        "gi": jnp.ones((out_ch,), jnp.float32) * 1.05,
        "bei": jnp.full((out_ch,), 0.02, jnp.float32),
        "mi": jnp.full((out_ch,), -0.01, jnp.float32),
        "vi": jnp.ones((out_ch,), jnp.float32) * 1.1,
    }


if __name__ == "__main__":
    key = jax.random.PRNGKey(0)
    in_ch, out_ch = 8, 4
    N, H, W = 2, 8, 8            # x is the low-res feature map; skip is at 2x

    kx, ksk, kp = jax.random.split(key, 3)
    x = jax.random.normal(kx, (N, in_ch, H, W), jnp.float32)              # NCHW
    skip = jax.random.normal(ksk, (N, in_ch - out_ch, 2 * H, 2 * W),
                             jnp.float32)                                 # NCHW
    params = init_params(kp, in_ch, out_ch)

    fwd = jax.jit(functools.partial(
        res_up_block_forward, params=params,
        act_dtype=jnp.bfloat16,      # bf16 HBM activations, f32 in-VMEM math
        max_tile_rows=8))            # force >1 row tile so the halo paths run
    out = jax.block_until_ready(fwd(x, skip))

    assert out.shape == (N, out_ch, 2 * H, 2 * W), out.shape
    assert bool(jnp.all(jnp.isfinite(out)))

    ref = res_up_block_reference(x, skip, params)
    max_err = float(jnp.max(jnp.abs(out.astype(jnp.float32) - ref)))
    assert max_err < 0.1, f"max abs error vs reference: {max_err}"
    print("KERNEL_OK")
</pallas_src>

<mosaic_0001>
module attributes {stable_mosaic.version = 11 : i64} {
  func.func @_res_up_block_kernel(%arg0: i32, %arg1: i32, %arg2: memref<1x8x8x8xbf16, #tpu.memory_space<vmem>>, %arg3: memref<1x16x8x8xbf16, #tpu.memory_space<vmem>>, %arg4: memref<8x16xf32, #tpu.memory_space<vmem>>, %arg5: memref<1x16xf32, #tpu.memory_space<vmem>>, %arg6: memref<72x4xf32, #tpu.memory_space<vmem>>, %arg7: memref<1x4xf32, #tpu.memory_space<vmem>>, %arg8: memref<36x4xf32, #tpu.memory_space<vmem>>, %arg9: memref<1x4xf32, #tpu.memory_space<vmem>>, %arg10: memref<8x4xf32, #tpu.memory_space<vmem>>, %arg11: memref<1x4xf32, #tpu.memory_space<vmem>>, %arg12: memref<1x8x8x8xbf16, #tpu.memory_space<vmem>>, %arg13: memref<12x10x16xf32, #tpu.memory_space<vmem>>, %arg14: memref<10x10x8xf32, #tpu.memory_space<vmem>>) attributes {dimension_semantics = [#tpu.dimension_semantics<parallel>, #tpu.dimension_semantics<parallel>], iteration_bounds = array<i64: 2, 2>, scalar_prefetch = 0 : i64, scratch_operands = 2 : i64, tpu.core_type = #tpu.core_type<tc>, window_params = [{transform_indices = @transform_0, window_bounds = array<i64: 1, 8, 8, 8>}, {transform_indices = @transform_1, window_bounds = array<i64: 1, 16, 8, 8>}, {pipeline_mode = #tpu.pipeline_mode<synchronous>, transform_indices = @transform_2, window_bounds = array<i64: 8, 16>}, {pipeline_mode = #tpu.pipeline_mode<synchronous>, transform_indices = @transform_3, window_bounds = array<i64: 1, 16>}, {pipeline_mode = #tpu.pipeline_mode<synchronous>, transform_indices = @transform_4, window_bounds = array<i64: 72, 4>}, {pipeline_mode = #tpu.pipeline_mode<synchronous>, transform_indices = @transform_5, window_bounds = array<i64: 1, 4>}, {pipeline_mode = #tpu.pipeline_mode<synchronous>, transform_indices = @transform_6, window_bounds = array<i64: 36, 4>}, {pipeline_mode = #tpu.pipeline_mode<synchronous>, transform_indices = @transform_7, window_bounds = array<i64: 1, 4>}, {pipeline_mode = #tpu.pipeline_mode<synchronous>, transform_indices = @transform_8, window_bounds = array<i64: 8, 4>}, {pipeline_mode = #tpu.pipeline_mode<synchronous>, transform_indices = @transform_9, window_bounds = array<i64: 1, 4>}, {transform_indices = @transform_10, window_bounds = array<i64: 1, 8, 8, 8>}]} {
    %c8_i32 = arith.constant 8 : i32
    %0 = arith.muli %arg1, %c8_i32 : i32
    %c4_i32 = arith.constant 4 : i32
    %1 = arith.muli %arg1, %c4_i32 : i32
    %cst = arith.constant 0.000000e+00 : f32
    %2 = vector.broadcast %cst : f32 to vector<2x10x16xf32>
    %c0 = arith.constant 0 : index
    %c0_0 = arith.constant 0 : index
    %c0_1 = arith.constant 0 : index
    %3 = vector.load %arg13[%c0, %c0_0, %c0_1] : memref<12x10x16xf32, #tpu.memory_space<vmem>>, vector<2x10x16xf32>
    tpu.vector_store %arg13[%c0, %c0_0, %c0_1], %2 {strides = array<i32>} : memref<12x10x16xf32, #tpu.memory_space<vmem>>, vector<2x10x16xf32>,
    %c10 = arith.constant 10 : index
    %c0_2 = arith.constant 0 : index
    %c0_3 = arith.constant 0 : index
    %4 = vector.load %arg13[%c10, %c0_2, %c0_3] : memref<12x10x16xf32, #tpu.memory_space<vmem>>, vector<2x10x16xf32>
    tpu.vector_store %arg13[%c10, %c0_2, %c0_3], %2 {strides = array<i32>} : memref<12x10x16xf32, #tpu.memory_space<vmem>>, vector<2x10x16xf32>,
    %cst_4 = arith.constant 0.000000e+00 : f32
    %5 = vector.broadcast %cst_4 : f32 to vector<12x1x16xf32>
    %c0_5 = arith.constant 0 : index
    %c0_6 = arith.constant 0 : index
    %c0_7 = arith.constant 0 : index
    %6 = vector.load %arg13[%c0_5, %c0_6, %c0_7] : memref<12x10x16xf32, #tpu.memory_space<vmem>>, vector<12x1x16xf32>
    tpu.vector_store %arg13[%c0_5, %c0_6, %c0_7], %5 {strides = array<i32>} : memref<12x10x16xf32, #tpu.memory_space<vmem>>, vector<12x1x16xf32>,
    %c0_8 = arith.constant 0 : index
    %c9 = arith.constant 9 : index
    %c0_9 = arith.constant 0 : index
    %7 = vector.load %arg13[%c0_8, %c9, %c0_9] : memref<12x10x16xf32, #tpu.memory_space<vmem>>, vector<12x1x16xf32>
    tpu.vector_store %arg13[%c0_8, %c9, %c0_9], %5 {strides = array<i32>} : memref<12x10x16xf32, #tpu.memory_space<vmem>>, vector<12x1x16xf32>,
    %cst_10 = arith.constant 0.000000e+00 : f32
    %8 = vector.broadcast %cst_10 : f32 to vector<10x1x8xf32>
    %c0_11 = arith.constant 0 : index
    %c0_12 = arith.constant 0 : index
    %c0_13 = arith.constant 0 : index
    %9 = vector.load %arg14[%c0_11, %c0_12, %c0_13] : memref<10x10x8xf32, #tpu.memory_space<vmem>>, vector<10x1x8xf32>
    tpu.vector_store %arg14[%c0_11, %c0_12, %c0_13], %8 {strides = array<i32>} : memref<10x10x8xf32, #tpu.memory_space<vmem>>, vector<10x1x8xf32>,
    %c0_14 = arith.constant 0 : index
    %c9_15 = arith.constant 9 : index
    %c0_16 = arith.constant 0 : index
    %10 = vector.load %arg14[%c0_14, %c9_15, %c0_16] : memref<10x10x8xf32, #tpu.memory_space<vmem>>, vector<10x1x8xf32>
    tpu.vector_store %arg14[%c0_14, %c9_15, %c0_16], %8 {strides = array<i32>} : memref<10x10x8xf32, #tpu.memory_space<vmem>>, vector<10x1x8xf32>,
    %c0_17 = arith.constant 0 : index
    %11 = arith.index_cast %1 : i32 to index
    %c0_18 = arith.constant 0 : index
    %c0_19 = arith.constant 0 : index
    %12 = vector.load %arg2[%c0_17, %11, %c0_18, %c0_19] : memref<1x8x8x8xbf16, #tpu.memory_space<vmem>>, vector<1x4x8x8xbf16>
    %13 = vector.shape_cast %12 : vector<1x4x8x8xbf16> to vector<4x8x8xbf16>
    %14 = arith.extf %13 : vector<4x8x8xbf16> to vector<4x8x8xf32>
    %c0_20 = arith.constant 0 : index
    %c0_21 = arith.constant 0 : index
    %15 = vector.load %arg4[%c0_20, %c0_21] : memref<8x16xf32, #tpu.memory_space<vmem>>, vector<8x16xf32>
    %cst_22 = arith.constant dense<0.000000e+00> : vector<4x8x16xf32>
    %16 = tpu.matmul %14, %15, %cst_22 {dimension_numbers = #tpu.dot_dimension_numbers<[2], [0], [0, 1], [1], [0, 0, 0, 1, 1, 1], [], []>} : vector<4x8x8xf32>, vector<8x16xf32>, vector<4x8x16xf32> -> vector<4x8x16xf32>
    %c0_23 = arith.constant 0 : index
    %c0_24 = arith.constant 0 : index
    %17 = vector.load %arg5[%c0_23, %c0_24] : memref<1x16xf32, #tpu.memory_space<vmem>>, vector<1x16xf32>
    %18 = vector.shape_cast %17 : vector<1x16xf32> to vector<16xf32>
    %19 = vector.shape_cast %18 : vector<16xf32> to vector<1x1x16xf32>
    %20 = vector.broadcast %19 : vector<1x1x16xf32> to vector<4x8x16xf32>
    %21 = arith.addf %16, %20 : vector<4x8x16xf32>
    %22 = vector.extract_strided_slice %21 {offsets = [0, 0, 0], sizes = [4, 8, 4], strides = [1, 1, 1]} : vector<4x8x16xf32> to vector<4x8x4xf32>
    %23 = vector.extract_strided_slice %21 {offsets = [0, 0, 8], sizes = [4, 8, 4], strides = [1, 1, 1]} : vector<4x8x16xf32> to vector<4x8x4xf32>
    %24 = vector.shape_cast %22 : vector<4x8x4xf32> to vector<4x1x8x4xf32>
    %25 = vector.shape_cast %23 : vector<4x8x4xf32> to vector<4x1x8x4xf32>
    %26 = tpu.concatenate %24, %25 in 1 : vector<4x1x8x4xf32>, vector<4x1x8x4xf32> -> vector<4x2x8x4xf32>
    %27 = vector.extract_strided_slice %21 {offsets = [0, 0, 4], sizes = [4, 8, 4], strides = [1, 1, 1]} : vector<4x8x16xf32> to vector<4x8x4xf32>
    %28 = vector.extract_strided_slice %21 {offsets = [0, 0, 12], sizes = [4, 8, 4], strides = [1, 1, 1]} : vector<4x8x16xf32> to vector<4x8x4xf32>
    %29 = vector.shape_cast %27 : vector<4x8x4xf32> to vector<4x1x8x4xf32>
    %30 = vector.shape_cast %28 : vector<4x8x4xf32> to vector<4x1x8x4xf32>
    %31 = tpu.concatenate %29, %30 in 1 : vector<4x1x8x4xf32>, vector<4x1x8x4xf32> -> vector<4x2x8x4xf32>
    %32 = vector.shape_cast %26 : vector<4x2x8x4xf32> to vector<8x8x4xf32>
    %33 = vector.shape_cast %31 : vector<4x2x8x4xf32> to vector<8x8x4xf32>
    %c0_25 = arith.constant 0 : index
    %34 = arith.index_cast %0 : i32 to index
    %c0_26 = arith.constant 0 : index
    %c0_27 = arith.constant 0 : index
    %35 = vector.load %arg3[%c0_25, %34, %c0_26, %c0_27] : memref<1x16x8x8xbf16, #tpu.memory_space<vmem>>, vector<1x8x8x8xbf16>
    %36 = vector.shape_cast %35 : vector<1x8x8x8xbf16> to vector<8x8x8xbf16>
    %c2 = arith.constant 2 : index
    %c1 = arith.constant 1 : index
    %c0_28 = arith.constant 0 : index
    %37 = vector.load %arg13[%c2, %c1, %c0_28] : memref<12x10x16xf32, #tpu.memory_space<vmem>>, vector<8x8x4xf32>
    tpu.vector_store %arg13[%c2, %c1, %c0_28], %32 {strides = array<i32>} : memref<12x10x16xf32, #tpu.memory_space<vmem>>, vector<8x8x4xf32>,
    %c2_29 = arith.constant 2 : index
    %c1_30 = arith.constant 1 : index
    %c8 = arith.constant 8 : index
    %38 = vector.load %arg13[%c2_29, %c1_30, %c8] : memref<12x10x16xf32, #tpu.memory_space<vmem>>, vector<8x8x4xf32>
    tpu.vector_store %arg13[%c2_29, %c1_30, %c8], %33 {strides = array<i32>} : memref<12x10x16xf32, #tpu.memory_space<vmem>>, vector<8x8x4xf32>,
    %39 = vector.extract_strided_slice %36 {offsets = [0, 0, 0], sizes = [8, 8, 4], strides = [1, 1, 1]} : vector<8x8x8xbf16> to vector<8x8x4xbf16>
    %40 = arith.extf %39 : vector<8x8x4xbf16> to vector<8x8x4xf32>
    %c2_31 = arith.constant 2 : index
    %c1_32 = arith.constant 1 : index
    %c4 = arith.constant 4 : index
    %41 = vector.load %arg13[%c2_31, %c1_32, %c4] : memref<12x10x16xf32, #tpu.memory_space<vmem>>, vector<8x8x4xf32>
    tpu.vector_store %arg13[%c2_31, %c1_32, %c4], %40 {strides = array<i32>} : memref<12x10x16xf32, #tpu.memory_space<vmem>>, vector<8x8x4xf32>,
    %42 = vector.extract_strided_slice %36 {offsets = [0, 0, 4], sizes = [8, 8, 4], strides = [1, 1, 1]} : vector<8x8x8xbf16> to vector<8x8x4xbf16>
    %43 = arith.extf %42 : vector<8x8x4xbf16> to vector<8x8x4xf32>
    %c2_33 = arith.constant 2 : index
    %c1_34 = arith.constant 1 : index
    %c12 = arith.constant 12 : index
    %44 = vector.load %arg13[%c2_33, %c1_34, %c12] : memref<12x10x16xf32, #tpu.memory_space<vmem>>, vector<8x8x4xf32>
    tpu.vector_store %arg13[%c2_33, %c1_34, %c12], %43 {strides = array<i32>} : memref<12x10x16xf32, #tpu.memory_space<vmem>>, vector<8x8x4xf32>,
    %c0_i32 = arith.constant 0 : i32
    %45 = arith.cmpi sgt, %arg1, %c0_i32 : i32
    %46 = arith.extui %45 : i1 to i32
    %c0_i32_35 = arith.constant 0 : i32
    %47 = arith.cmpi ne, %46, %c0_i32_35 : i32
    scf.if %47 {
      %c1_i32_153 = arith.constant 1 : i32
      %139 = arith.subi %1, %c1_i32_153 : i32
      %c0_154 = arith.constant 0 : index
      %140 = arith.index_cast %139 : i32 to index
      %c0_155 = arith.constant 0 : index
      %c0_156 = arith.constant 0 : index
      %141 = vector.load %arg2[%c0_154, %140, %c0_155, %c0_156] : memref<1x8x8x8xbf16, #tpu.memory_space<vmem>>, vector<1x1x8x8xbf16>
      %142 = vector.shape_cast %141 : vector<1x1x8x8xbf16> to vector<1x8x8xbf16>
      %143 = arith.extf %142 : vector<1x8x8xbf16> to vector<1x8x8xf32>
      %c0_157 = arith.constant 0 : index
      %c0_158 = arith.constant 0 : index
      %144 = vector.load %arg4[%c0_157, %c0_158] : memref<8x16xf32, #tpu.memory_space<vmem>>, vector<8x16xf32>
      %cst_159 = arith.constant dense<0.000000e+00> : vector<1x8x16xf32>
      %145 = tpu.matmul %143, %144, %cst_159 {dimension_numbers = #tpu.dot_dimension_numbers<[2], [0], [0, 1], [1], [0, 0, 0, 1, 1, 1], [], []>} : vector<1x8x8xf32>, vector<8x16xf32>, vector<1x8x16xf32> -> vector<1x8x16xf32>
      %c0_160 = arith.constant 0 : index
      %c0_161 = arith.constant 0 : index
      %146 = vector.load %arg5[%c0_160, %c0_161] : memref<1x16xf32, #tpu.memory_space<vmem>>, vector<1x16xf32>
      %147 = vector.shape_cast %146 : vector<1x16xf32> to vector<16xf32>
      %148 = vector.shape_cast %147 : vector<16xf32> to vector<1x1x16xf32>
      %149 = vector.broadcast %148 : vector<1x1x16xf32> to vector<1x8x16xf32>
      %150 = arith.addf %145, %149 : vector<1x8x16xf32>
      %151 = vector.extract_strided_slice %150 {offsets = [0, 0, 0], sizes = [1, 8, 4], strides = [1, 1, 1]} : vector<1x8x16xf32> to vector<1x8x4xf32>
      %152 = vector.extract_strided_slice %150 {offsets = [0, 0, 8], sizes = [1, 8, 4], strides = [1, 1, 1]} : vector<1x8x16xf32> to vector<1x8x4xf32>
      %153 = vector.shape_cast %151 : vector<1x8x4xf32> to vector<1x1x8x4xf32>
      %154 = vector.shape_cast %152 : vector<1x8x4xf32> to vector<1x1x8x4xf32>
      %155 = tpu.concatenate %153, %154 in 1 : vector<1x1x8x4xf32>, vector<1x1x8x4xf32> -> vector<1x2x8x4xf32>
      %156 = vector.extract_strided_slice %150 {offsets = [0, 0, 4], sizes = [1, 8, 4], strides = [1, 1, 1]} : vector<1x8x16xf32> to vector<1x8x4xf32>
      %157 = vector.extract_strided_slice %150 {offsets = [0, 0, 12], sizes = [1, 8, 4], strides = [1, 1, 1]} : vector<1x8x16xf32> to vector<1x8x4xf32>
      %158 = vector.shape_cast %156 : vector<1x8x4xf32> to vector<1x1x8x4xf32>
      %159 = vector.shape_cast %157 : vector<1x8x4xf32> to vector<1x1x8x4xf32>
      %160 = tpu.concatenate %158, %159 in 1 : vector<1x1x8x4xf32>, vector<1x1x8x4xf32> -> vector<1x2x8x4xf32>
      %161 = vector.shape_cast %155 : vector<1x2x8x4xf32> to vector<2x8x4xf32>
      %162 = vector.shape_cast %160 : vector<1x2x8x4xf32> to vector<2x8x4xf32>
      %c2_i32_162 = arith.constant 2 : i32
      %163 = arith.subi %0, %c2_i32_162 : i32
      %c0_163 = arith.constant 0 : index
      %164 = arith.index_cast %163 : i32 to index
      %c0_164 = arith.constant 0 : index
      %c0_165 = arith.constant 0 : index
      %165 = vector.load %arg3[%c0_163, %164, %c0_164, %c0_165] : memref<1x16x8x8xbf16, #tpu.memory_space<vmem>>, vector<1x2x8x8xbf16>
      %166 = vector.shape_cast %165 : vector<1x2x8x8xbf16> to vector<2x8x8xbf16>
      %c0_166 = arith.constant 0 : index
      %c1_167 = arith.constant 1 : index
      %c0_168 = arith.constant 0 : index
      %167 = vector.load %arg13[%c0_166, %c1_167, %c0_168] : memref<12x10x16xf32, #tpu.memory_space<vmem>>, vector<2x8x4xf32>
      tpu.vector_store %arg13[%c0_166, %c1_167, %c0_168], %161 {strides = array<i32>} : memref<12x10x16xf32, #tpu.memory_space<vmem>>, vector<2x8x4xf32>,
      %c0_169 = arith.constant 0 : index
      %c1_170 = arith.constant 1 : index
      %c8_171 = arith.constant 8 : index
      %168 = vector.load %arg13[%c0_169, %c1_170, %c8_171] : memref<12x10x16xf32, #tpu.memory_space<vmem>>, vector<2x8x4xf32>
      tpu.vector_store %arg13[%c0_169, %c1_170, %c8_171], %162 {strides = array<i32>} : memref<12x10x16xf32, #tpu.memory_space<vmem>>, vector<2x8x4xf32>,
      %169 = vector.extract_strided_slice %166 {offsets = [0, 0, 0], sizes = [2, 8, 4], strides = [1, 1, 1]} : vector<2x8x8xbf16> to vector<2x8x4xbf16>
      %170 = arith.extf %169 : vector<2x8x4xbf16> to vector<2x8x4xf32>
      %c0_172 = arith.constant 0 : index
      %c1_173 = arith.constant 1 : index
      %c4_174 = arith.constant 4 : index
      %171 = vector.load %arg13[%c0_172, %c1_173, %c4_174] : memref<12x10x16xf32, #tpu.memory_space<vmem>>, vector<2x8x4xf32>
      tpu.vector_store %arg13[%c0_172, %c1_173, %c4_174], %170 {strides = array<i32>} : memref<12x10x16xf32, #tpu.memory_space<vmem>>, vector<2x8x4xf32>,
      %172 = vector.extract_strided_slice %166 {offsets = [0, 0, 4], sizes = [2, 8, 4], strides = [1, 1, 1]} : vector<2x8x8xbf16> to vector<2x8x4xbf16>
      %173 = arith.extf %172 : vector<2x8x4xbf16> to vector<2x8x4xf32>
      %c0_175 = arith.constant 0 : index
      %c1_176 = arith.constant 1 : index
      %c12_177 = arith.constant 12 : index
      %174 = vector.load %arg13[%c0_175, %c1_176, %c12_177] : memref<12x10x16xf32, #tpu.memory_space<vmem>>, vector<2x8x4xf32>
      tpu.vector_store %arg13[%c0_175, %c1_176, %c12_177], %173 {strides = array<i32>} : memref<12x10x16xf32, #tpu.memory_space<vmem>>, vector<2x8x4xf32>,
    } else {
    }
    %c1_i32 = arith.constant 1 : i32
    %48 = arith.addi %arg1, %c1_i32 : i32
    %c2_i32 = arith.constant 2 : i32
    %49 = arith.cmpi slt, %48, %c2_i32 : i32
    %50 = arith.extui %49 : i1 to i32
    %c0_i32_36 = arith.constant 0 : i32
    %51 = arith.cmpi ne, %50, %c0_i32_36 : i32
    scf.if %51 {
      %c4_i32_153 = arith.constant 4 : i32
      %139 = arith.addi %1, %c4_i32_153 : i32
      %c0_154 = arith.constant 0 : index
      %140 = arith.index_cast %139 : i32 to index
      %c0_155 = arith.constant 0 : index
      %c0_156 = arith.constant 0 : index
      %141 = vector.load %arg2[%c0_154, %140, %c0_155, %c0_156] : memref<1x8x8x8xbf16, #tpu.memory_space<vmem>>, vector<1x1x8x8xbf16>
      %142 = vector.shape_cast %141 : vector<1x1x8x8xbf16> to vector<1x8x8xbf16>
      %143 = arith.extf %142 : vector<1x8x8xbf16> to vector<1x8x8xf32>
      %c0_157 = arith.constant 0 : index
      %c0_158 = arith.constant 0 : index
      %144 = vector.load %arg4[%c0_157, %c0_158] : memref<8x16xf32, #tpu.memory_space<vmem>>, vector<8x16xf32>
      %cst_159 = arith.constant dense<0.000000e+00> : vector<1x8x16xf32>
      %145 = tpu.matmul %143, %144, %cst_159 {dimension_numbers = #tpu.dot_dimension_numbers<[2], [0], [0, 1], [1], [0, 0, 0, 1, 1, 1], [], []>} : vector<1x8x8xf32>, vector<8x16xf32>, vector<1x8x16xf32> -> vector<1x8x16xf32>
      %c0_160 = arith.constant 0 : index
      %c0_161 = arith.constant 0 : index
      %146 = vector.load %arg5[%c0_160, %c0_161] : memref<1x16xf32, #tpu.memory_space<vmem>>, vector<1x16xf32>
      %147 = vector.shape_cast %146 : vector<1x16xf32> to vector<16xf32>
      %148 = vector.shape_cast %147 : vector<16xf32> to vector<1x1x16xf32>
      %149 = vector.broadcast %148 : vector<1x1x16xf32> to vector<1x8x16xf32>
      %150 = arith.addf %145, %149 : vector<1x8x16xf32>
      %151 = vector.extract_strided_slice %150 {offsets = [0, 0, 0], sizes = [1, 8, 4], strides = [1, 1, 1]} : vector<1x8x16xf32> to vector<1x8x4xf32>
      %152 = vector.extract_strided_slice %150 {offsets = [0, 0, 8], sizes = [1, 8, 4], strides = [1, 1, 1]} : vector<1x8x16xf32> to vector<1x8x4xf32>
      %153 = vector.shape_cast %151 : vector<1x8x4xf32> to vector<1x1x8x4xf32>
      %154 = vector.shape_cast %152 : vector<1x8x4xf32> to vector<1x1x8x4xf32>
      %155 = tpu.concatenate %153, %154 in 1 : vector<1x1x8x4xf32>, vector<1x1x8x4xf32> -> vector<1x2x8x4xf32>
      %156 = vector.extract_strided_slice %150 {offsets = [0, 0, 4], sizes = [1, 8, 4], strides = [1, 1, 1]} : vector<1x8x16xf32> to vector<1x8x4xf32>
      %157 = vector.extract_strided_slice %150 {offsets = [0, 0, 12], sizes = [1, 8, 4], strides = [1, 1, 1]} : vector<1x8x16xf32> to vector<1x8x4xf32>
      %158 = vector.shape_cast %156 : vector<1x8x4xf32> to vector<1x1x8x4xf32>
      %159 = vector.shape_cast %157 : vector<1x8x4xf32> to vector<1x1x8x4xf32>
      %160 = tpu.concatenate %158, %159 in 1 : vector<1x1x8x4xf32>, vector<1x1x8x4xf32> -> vector<1x2x8x4xf32>
      %161 = vector.shape_cast %155 : vector<1x2x8x4xf32> to vector<2x8x4xf32>
      %162 = vector.shape_cast %160 : vector<1x2x8x4xf32> to vector<2x8x4xf32>
      %c8_i32_162 = arith.constant 8 : i32
      %163 = arith.addi %0, %c8_i32_162 : i32
      %c0_163 = arith.constant 0 : index
      %164 = arith.index_cast %163 : i32 to index
      %c0_164 = arith.constant 0 : index
      %c0_165 = arith.constant 0 : index
      %165 = vector.load %arg3[%c0_163, %164, %c0_164, %c0_165] : memref<1x16x8x8xbf16, #tpu.memory_space<vmem>>, vector<1x2x8x8xbf16>
      %166 = vector.shape_cast %165 : vector<1x2x8x8xbf16> to vector<2x8x8xbf16>
      %c10_166 = arith.constant 10 : index
      %c1_167 = arith.constant 1 : index
      %c0_168 = arith.constant 0 : index
      %167 = vector.load %arg13[%c10_166, %c1_167, %c0_168] : memref<12x10x16xf32, #tpu.memory_space<vmem>>, vector<2x8x4xf32>
      tpu.vector_store %arg13[%c10_166, %c1_167, %c0_168], %161 {strides = array<i32>} : memref<12x10x16xf32, #tpu.memory_space<vmem>>, vector<2x8x4xf32>,
      %c10_169 = arith.constant 10 : index
      %c1_170 = arith.constant 1 : index
      %c8_171 = arith.constant 8 : index
      %168 = vector.load %arg13[%c10_169, %c1_170, %c8_171] : memref<12x10x16xf32, #tpu.memory_space<vmem>>, vector<2x8x4xf32>
      tpu.vector_store %arg13[%c10_169, %c1_170, %c8_171], %162 {strides = array<i32>} : memref<12x10x16xf32, #tpu.memory_space<vmem>>, vector<2x8x4xf32>,
      %169 = vector.extract_strided_slice %166 {offsets = [0, 0, 0], sizes = [2, 8, 4], strides = [1, 1, 1]} : vector<2x8x8xbf16> to vector<2x8x4xbf16>
      %170 = arith.extf %169 : vector<2x8x4xbf16> to vector<2x8x4xf32>
      %c10_172 = arith.constant 10 : index
      %c1_173 = arith.constant 1 : index
      %c4_174 = arith.constant 4 : index
      %171 = vector.load %arg13[%c10_172, %c1_173, %c4_174] : memref<12x10x16xf32, #tpu.memory_space<vmem>>, vector<2x8x4xf32>
      tpu.vector_store %arg13[%c10_172, %c1_173, %c4_174], %170 {strides = array<i32>} : memref<12x10x16xf32, #tpu.memory_space<vmem>>, vector<2x8x4xf32>,
      %172 = vector.extract_strided_slice %166 {offsets = [0, 0, 4], sizes = [2, 8, 4], strides = [1, 1, 1]} : vector<2x8x8xbf16> to vector<2x8x4xbf16>
      %173 = arith.extf %172 : vector<2x8x4xbf16> to vector<2x8x4xf32>
      %c10_175 = arith.constant 10 : index
      %c1_176 = arith.constant 1 : index
      %c12_177 = arith.constant 12 : index
      %174 = vector.load %arg13[%c10_175, %c1_176, %c12_177] : memref<12x10x16xf32, #tpu.memory_space<vmem>>, vector<2x8x4xf32>
      tpu.vector_store %arg13[%c10_175, %c1_176, %c12_177], %173 {strides = array<i32>} : memref<12x10x16xf32, #tpu.memory_space<vmem>>, vector<2x8x4xf32>,
    } else {
    }
    %c0_37 = arith.constant 0 : index
    %c0_38 = arith.constant 0 : index
    %c8_39 = arith.constant 8 : index
    %52 = vector.load %arg13[%c0_37, %c0_38, %c8_39] : memref<12x10x16xf32, #tpu.memory_space<vmem>>, vector<10x8x8xf32>
    %c0_40 = arith.constant 0 : index
    %c1_41 = arith.constant 1 : index
    %c0_42 = arith.constant 0 : index
    %53 = vector.load %arg13[%c0_40, %c1_41, %c0_42] : memref<12x10x16xf32, #tpu.memory_space<vmem>>, vector<10x8x16xf32>
    %c0_43 = arith.constant 0 : index
    %c1_44 = arith.constant 1 : index
    %c0_45 = arith.constant 0 : index
    %54 = vector.load %arg13[%c0_43, %c1_44, %c0_45] : memref<12x10x16xf32, #tpu.memory_space<vmem>>, vector<10x8x16xf32>
    %c0_46 = arith.constant 0 : index
    %c2_47 = arith.constant 2 : index
    %c0_48 = arith.constant 0 : index
    %55 = vector.load %arg13[%c0_46, %c2_47, %c0_48] : memref<12x10x16xf32, #tpu.memory_space<vmem>>, vector<10x8x8xf32>
    %c1_49 = arith.constant 1 : index
    %c0_50 = arith.constant 0 : index
    %c8_51 = arith.constant 8 : index
    %56 = vector.load %arg13[%c1_49, %c0_50, %c8_51] : memref<12x10x16xf32, #tpu.memory_space<vmem>>, vector<10x8x8xf32>
    %c1_52 = arith.constant 1 : index
    %c1_53 = arith.constant 1 : index
    %c0_54 = arith.constant 0 : index
    %57 = vector.load %arg13[%c1_52, %c1_53, %c0_54] : memref<12x10x16xf32, #tpu.memory_space<vmem>>, vector<10x8x16xf32>
    %c1_55 = arith.constant 1 : index
    %c1_56 = arith.constant 1 : index
    %c0_57 = arith.constant 0 : index
    %58 = vector.load %arg13[%c1_55, %c1_56, %c0_57] : memref<12x10x16xf32, #tpu.memory_space<vmem>>, vector<10x8x16xf32>
    %c1_58 = arith.constant 1 : index
    %c2_59 = arith.constant 2 : index
    %c0_60 = arith.constant 0 : index
    %59 = vector.load %arg13[%c1_58, %c2_59, %c0_60] : memref<12x10x16xf32, #tpu.memory_space<vmem>>, vector<10x8x8xf32>
    %c2_61 = arith.constant 2 : index
    %c0_62 = arith.constant 0 : index
    %c8_63 = arith.constant 8 : index
    %60 = vector.load %arg13[%c2_61, %c0_62, %c8_63] : memref<12x10x16xf32, #tpu.memory_space<vmem>>, vector<10x8x8xf32>
    %c2_64 = arith.constant 2 : index
    %c1_65 = arith.constant 1 : index
    %c0_66 = arith.constant 0 : index
    %61 = vector.load %arg13[%c2_64, %c1_65, %c0_66] : memref<12x10x16xf32, #tpu.memory_space<vmem>>, vector<10x8x16xf32>
    %c2_67 = arith.constant 2 : index
    %c1_68 = arith.constant 1 : index
    %c0_69 = arith.constant 0 : index
    %62 = vector.load %arg13[%c2_67, %c1_68, %c0_69] : memref<12x10x16xf32, #tpu.memory_space<vmem>>, vector<10x8x16xf32>
    %c2_70 = arith.constant 2 : index
    %c2_71 = arith.constant 2 : index
    %c0_72 = arith.constant 0 : index
    %63 = vector.load %arg13[%c2_70, %c2_71, %c0_72] : memref<12x10x16xf32, #tpu.memory_space<vmem>>, vector<10x8x8xf32>
    %64 = tpu.concatenate %52, %53, %56, %57, %60, %61 in 2 : vector<10x8x8xf32>, vector<10x8x16xf32>, vector<10x8x8xf32>, vector<10x8x16xf32>, vector<10x8x8xf32>, vector<10x8x16xf32> -> vector<10x8x72xf32>
    %65 = tpu.concatenate %54, %55, %58, %59, %62, %63 in 2 : vector<10x8x16xf32>, vector<10x8x8xf32>, vector<10x8x16xf32>, vector<10x8x8xf32>, vector<10x8x16xf32>, vector<10x8x8xf32> -> vector<10x8x72xf32>
    %c0_73 = arith.constant 0 : index
    %c0_74 = arith.constant 0 : index
    %66 = vector.load %arg6[%c0_73, %c0_74] : memref<72x4xf32, #tpu.memory_space<vmem>>, vector<72x4xf32>
    %c0_75 = arith.constant 0 : index
    %c0_76 = arith.constant 0 : index
    %67 = vector.load %arg7[%c0_75, %c0_76] : memref<1x4xf32, #tpu.memory_space<vmem>>, vector<1x4xf32>
    %68 = vector.shape_cast %67 : vector<1x4xf32> to vector<4xf32>
    %cst_77 = arith.constant dense<0.000000e+00> : vector<10x8x4xf32>
    %69 = tpu.matmul %64, %66, %cst_77 {dimension_numbers = #tpu.dot_dimension_numbers<[2], [0], [0, 1], [1], [0, 0, 0, 1, 1, 1], [], []>} : vector<10x8x72xf32>, vector<72x4xf32>, vector<10x8x4xf32> -> vector<10x8x4xf32>
    %70 = vector.shape_cast %68 : vector<4xf32> to vector<1x1x4xf32>
    %71 = vector.broadcast %70 : vector<1x1x4xf32> to vector<10x8x4xf32>
    %72 = arith.addf %69, %71 : vector<10x8x4xf32>
    %cst_78 = arith.constant dense<0.000000e+00> : vector<10x8x4xf32>
    %73 = tpu.matmul %65, %66, %cst_78 {dimension_numbers = #tpu.dot_dimension_numbers<[2], [0], [0, 1], [1], [0, 0, 0, 1, 1, 1], [], []>} : vector<10x8x72xf32>, vector<72x4xf32>, vector<10x8x4xf32> -> vector<10x8x4xf32>
    %74 = vector.shape_cast %68 : vector<4xf32> to vector<1x1x4xf32>
    %75 = vector.broadcast %74 : vector<1x1x4xf32> to vector<10x8x4xf32>
    %76 = arith.addf %73, %75 : vector<10x8x4xf32>
    %cst_79 = arith.constant 0.000000e+00 : f32
    %77 = vector.broadcast %cst_79 : f32 to vector<10x8x4xf32>
    %78 = arith.maximumf %72, %77 : vector<10x8x4xf32>
    %c0_80 = arith.constant 0 : index
    %c1_81 = arith.constant 1 : index
    %c0_82 = arith.constant 0 : index
    %79 = vector.load %arg14[%c0_80, %c1_81, %c0_82] : memref<10x10x8xf32, #tpu.memory_space<vmem>>, vector<10x8x4xf32>
    tpu.vector_store %arg14[%c0_80, %c1_81, %c0_82], %78 {strides = array<i32>} : memref<10x10x8xf32, #tpu.memory_space<vmem>>, vector<10x8x4xf32>,
    %cst_83 = arith.constant 0.000000e+00 : f32
    %80 = vector.broadcast %cst_83 : f32 to vector<10x8x4xf32>
    %81 = arith.maximumf %76, %80 : vector<10x8x4xf32>
    %c0_84 = arith.constant 0 : index
    %c1_85 = arith.constant 1 : index
    %c4_86 = arith.constant 4 : index
    %82 = vector.load %arg14[%c0_84, %c1_85, %c4_86] : memref<10x10x8xf32, #tpu.memory_space<vmem>>, vector<10x8x4xf32>
    tpu.vector_store %arg14[%c0_84, %c1_85, %c4_86], %81 {strides = array<i32>} : memref<10x10x8xf32, #tpu.memory_space<vmem>>, vector<10x8x4xf32>,
    %c0_i32_87 = arith.constant 0 : i32
    %83 = arith.cmpi eq, %arg1, %c0_i32_87 : i32
    %84 = arith.extui %83 : i1 to i32
    %c0_i32_88 = arith.constant 0 : i32
    %85 = arith.cmpi ne, %84, %c0_i32_88 : i32
    scf.if %85 {
      %cst_153 = arith.constant 0.000000e+00 : f32
      %139 = vector.broadcast %cst_153 : f32 to vector<1x10x8xf32>
      %c0_154 = arith.constant 0 : index
      %c0_155 = arith.constant 0 : index
      %c0_156 = arith.constant 0 : index
      %140 = vector.load %arg14[%c0_154, %c0_155, %c0_156] : memref<10x10x8xf32, #tpu.memory_space<vmem>>, vector<1x10x8xf32>
      tpu.vector_store %arg14[%c0_154, %c0_155, %c0_156], %139 {strides = array<i32>} : memref<10x10x8xf32, #tpu.memory_space<vmem>>, vector<1x10x8xf32>,
    } else {
    }
    %c1_i32_89 = arith.constant 1 : i32
    %86 = arith.cmpi eq, %arg1, %c1_i32_89 : i32
    %87 = arith.extui %86 : i1 to i32
    %c0_i32_90 = arith.constant 0 : i32
    %88 = arith.cmpi ne, %87, %c0_i32_90 : i32
    scf.if %88 {
      %cst_153 = arith.constant 0.000000e+00 : f32
      %139 = vector.broadcast %cst_153 : f32 to vector<1x10x8xf32>
      %c9_154 = arith.constant 9 : index
      %c0_155 = arith.constant 0 : index
      %c0_156 = arith.constant 0 : index
      %140 = vector.load %arg14[%c9_154, %c0_155, %c0_156] : memref<10x10x8xf32, #tpu.memory_space<vmem>>, vector<1x10x8xf32>
      tpu.vector_store %arg14[%c9_154, %c0_155, %c0_156], %139 {strides = array<i32>} : memref<10x10x8xf32, #tpu.memory_space<vmem>>, vector<1x10x8xf32>,
    } else {
    }
    %c0_91 = arith.constant 0 : index
    %c0_92 = arith.constant 0 : index
    %c4_93 = arith.constant 4 : index
    %89 = vector.load %arg14[%c0_91, %c0_92, %c4_93] : memref<10x10x8xf32, #tpu.memory_space<vmem>>, vector<8x8x4xf32>
    %c0_94 = arith.constant 0 : index
    %c1_95 = arith.constant 1 : index
    %c0_96 = arith.constant 0 : index
    %90 = vector.load %arg14[%c0_94, %c1_95, %c0_96] : memref<10x10x8xf32, #tpu.memory_space<vmem>>, vector<8x8x8xf32>
    %c0_97 = arith.constant 0 : index
    %c1_98 = arith.constant 1 : index
    %c0_99 = arith.constant 0 : index
    %91 = vector.load %arg14[%c0_97, %c1_98, %c0_99] : memref<10x10x8xf32, #tpu.memory_space<vmem>>, vector<8x8x8xf32>
    %c0_100 = arith.constant 0 : index
    %c2_101 = arith.constant 2 : index
    %c0_102 = arith.constant 0 : index
    %92 = vector.load %arg14[%c0_100, %c2_101, %c0_102] : memref<10x10x8xf32, #tpu.memory_space<vmem>>, vector<8x8x4xf32>
    %c1_103 = arith.constant 1 : index
    %c0_104 = arith.constant 0 : index
    %c4_105 = arith.constant 4 : index
    %93 = vector.load %arg14[%c1_103, %c0_104, %c4_105] : memref<10x10x8xf32, #tpu.memory_space<vmem>>, vector<8x8x4xf32>
    %c1_106 = arith.constant 1 : index
    %c1_107 = arith.constant 1 : index
    %c0_108 = arith.constant 0 : index
    %94 = vector.load %arg14[%c1_106, %c1_107, %c0_108] : memref<10x10x8xf32, #tpu.memory_space<vmem>>, vector<8x8x8xf32>
    %c1_109 = arith.constant 1 : index
    %c1_110 = arith.constant 1 : index
    %c0_111 = arith.constant 0 : index
    %95 = vector.load %arg14[%c1_109, %c1_110, %c0_111] : memref<10x10x8xf32, #tpu.memory_space<vmem>>, vector<8x8x8xf32>
    %c1_112 = arith.constant 1 : index
    %c2_113 = arith.constant 2 : index
    %c0_114 = arith.constant 0 : index
    %96 = vector.load %arg14[%c1_112, %c2_113, %c0_114] : memref<10x10x8xf32, #tpu.memory_space<vmem>>, vector<8x8x4xf32>
    %c2_115 = arith.constant 2 : index
    %c0_116 = arith.constant 0 : index
    %c4_117 = arith.constant 4 : index
    %97 = vector.load %arg14[%c2_115, %c0_116, %c4_117] : memref<10x10x8xf32, #tpu.memory_space<vmem>>, vector<8x8x4xf32>
    %c2_118 = arith.constant 2 : index
    %c1_119 = arith.constant 1 : index
    %c0_120 = arith.constant 0 : index
    %98 = vector.load %arg14[%c2_118, %c1_119, %c0_120] : memref<10x10x8xf32, #tpu.memory_space<vmem>>, vector<8x8x8xf32>
    %c2_121 = arith.constant 2 : index
    %c1_122 = arith.constant 1 : index
    %c0_123 = arith.constant 0 : index
    %99 = vector.load %arg14[%c2_121, %c1_122, %c0_123] : memref<10x10x8xf32, #tpu.memory_space<vmem>>, vector<8x8x8xf32>
    %c2_124 = arith.constant 2 : index
    %c2_125 = arith.constant 2 : index
    %c0_126 = arith.constant 0 : index
    %100 = vector.load %arg14[%c2_124, %c2_125, %c0_126] : memref<10x10x8xf32, #tpu.memory_space<vmem>>, vector<8x8x4xf32>
    %101 = tpu.concatenate %89, %90, %93, %94, %97, %98 in 2 : vector<8x8x4xf32>, vector<8x8x8xf32>, vector<8x8x4xf32>, vector<8x8x8xf32>, vector<8x8x4xf32>, vector<8x8x8xf32> -> vector<8x8x36xf32>
    %102 = tpu.concatenate %91, %92, %95, %96, %99, %100 in 2 : vector<8x8x8xf32>, vector<8x8x4xf32>, vector<8x8x8xf32>, vector<8x8x4xf32>, vector<8x8x8xf32>, vector<8x8x4xf32> -> vector<8x8x36xf32>
    %c0_127 = arith.constant 0 : index
    %c0_128 = arith.constant 0 : index
    %103 = vector.load %arg8[%c0_127, %c0_128] : memref<36x4xf32, #tpu.memory_space<vmem>>, vector<36x4xf32>
    %c0_129 = arith.constant 0 : index
    %c0_130 = arith.constant 0 : index
    %104 = vector.load %arg9[%c0_129, %c0_130] : memref<1x4xf32, #tpu.memory_space<vmem>>, vector<1x4xf32>
    %105 = vector.shape_cast %104 : vector<1x4xf32> to vector<4xf32>
    %cst_131 = arith.constant dense<0.000000e+00> : vector<8x8x4xf32>
    %106 = tpu.matmul %101, %103, %cst_131 {dimension_numbers = #tpu.dot_dimension_numbers<[2], [0], [0, 1], [1], [0, 0, 0, 1, 1, 1], [], []>} : vector<8x8x36xf32>, vector<36x4xf32>, vector<8x8x4xf32> -> vector<8x8x4xf32>
    %107 = vector.shape_cast %105 : vector<4xf32> to vector<1x1x4xf32>
    %108 = vector.broadcast %107 : vector<1x1x4xf32> to vector<8x8x4xf32>
    %109 = arith.addf %106, %108 : vector<8x8x4xf32>
    %cst_132 = arith.constant dense<0.000000e+00> : vector<8x8x4xf32>
    %110 = tpu.matmul %102, %103, %cst_132 {dimension_numbers = #tpu.dot_dimension_numbers<[2], [0], [0, 1], [1], [0, 0, 0, 1, 1, 1], [], []>} : vector<8x8x36xf32>, vector<36x4xf32>, vector<8x8x4xf32> -> vector<8x8x4xf32>
    %111 = vector.shape_cast %105 : vector<4xf32> to vector<1x1x4xf32>
    %112 = vector.broadcast %111 : vector<1x1x4xf32> to vector<8x8x4xf32>
    %113 = arith.addf %110, %112 : vector<8x8x4xf32>
    %c0_133 = arith.constant 0 : index
    %c0_134 = arith.constant 0 : index
    %114 = vector.load %arg11[%c0_133, %c0_134] : memref<1x4xf32, #tpu.memory_space<vmem>>, vector<1x4xf32>
    %115 = vector.shape_cast %114 : vector<1x4xf32> to vector<4xf32>
    %c2_135 = arith.constant 2 : index
    %c1_136 = arith.constant 1 : index
    %c0_137 = arith.constant 0 : index
    %116 = vector.load %arg13[%c2_135, %c1_136, %c0_137] : memref<12x10x16xf32, #tpu.memory_space<vmem>>, vector<8x8x8xf32>
    %c2_138 = arith.constant 2 : index
    %c1_139 = arith.constant 1 : index
    %c8_140 = arith.constant 8 : index
    %117 = vector.load %arg13[%c2_138, %c1_139, %c8_140] : memref<12x10x16xf32, #tpu.memory_space<vmem>>, vector<8x8x8xf32>
    %c0_141 = arith.constant 0 : index
    %c0_142 = arith.constant 0 : index
    %118 = vector.load %arg10[%c0_141, %c0_142] : memref<8x4xf32, #tpu.memory_space<vmem>>, vector<8x4xf32>
    %cst_143 = arith.constant dense<0.000000e+00> : vector<8x8x4xf32>
    %119 = tpu.matmul %116, %118, %cst_143 {dimension_numbers = #tpu.dot_dimension_numbers<[2], [0], [0, 1], [1], [0, 0, 0, 1, 1, 1], [], []>} : vector<8x8x8xf32>, vector<8x4xf32>, vector<8x8x4xf32> -> vector<8x8x4xf32>
    %120 = vector.shape_cast %115 : vector<4xf32> to vector<1x1x4xf32>
    %121 = vector.broadcast %120 : vector<1x1x4xf32> to vector<8x8x4xf32>
    %122 = arith.addf %119, %121 : vector<8x8x4xf32>
    %c0_144 = arith.constant 0 : index
    %c0_145 = arith.constant 0 : index
    %123 = vector.load %arg10[%c0_144, %c0_145] : memref<8x4xf32, #tpu.memory_space<vmem>>, vector<8x4xf32>
    %cst_146 = arith.constant dense<0.000000e+00> : vector<8x8x4xf32>
    %124 = tpu.matmul %117, %123, %cst_146 {dimension_numbers = #tpu.dot_dimension_numbers<[2], [0], [0, 1], [1], [0, 0, 0, 1, 1, 1], [], []>} : vector<8x8x8xf32>, vector<8x4xf32>, vector<8x8x4xf32> -> vector<8x8x4xf32>
    %125 = vector.shape_cast %115 : vector<4xf32> to vector<1x1x4xf32>
    %126 = vector.broadcast %125 : vector<1x1x4xf32> to vector<8x8x4xf32>
    %127 = arith.addf %124, %126 : vector<8x8x4xf32>
    %128 = arith.addf %109, %122 : vector<8x8x4xf32>
    %cst_147 = arith.constant 0.000000e+00 : f32
    %129 = vector.broadcast %cst_147 : f32 to vector<8x8x4xf32>
    %130 = arith.maximumf %128, %129 : vector<8x8x4xf32>
    %131 = arith.addf %113, %127 : vector<8x8x4xf32>
    %cst_148 = arith.constant 0.000000e+00 : f32
    %132 = vector.broadcast %cst_148 : f32 to vector<8x8x4xf32>
    %133 = arith.maximumf %131, %132 : vector<8x8x4xf32>
    %134 = tpu.concatenate %130, %133 in 2 : vector<8x8x4xf32>, vector<8x8x4xf32> -> vector<8x8x8xf32>
    %135 = arith.truncf %134 : vector<8x8x8xf32> to vector<8x8x8xbf16>
    %c0_149 = arith.constant 0 : index
    %c0_150 = arith.constant 0 : index
    %c0_151 = arith.constant 0 : index
    %c0_152 = arith.constant 0 : index
    %136 = vector.load %arg12[%c0_149, %c0_150, %c0_151, %c0_152] : memref<1x8x8x8xbf16, #tpu.memory_space<vmem>>, vector<1x8x8x8xbf16>
    %137 = vector.shape_cast %136 : vector<1x8x8x8xbf16> to vector<8x8x8xbf16>
    %138 = vector.shape_cast %135 : vector<8x8x8xbf16> to vector<1x8x8x8xbf16>
    tpu.vector_store %arg12[%c0_149, %c0_150, %c0_151, %c0_152], %138 {strides = array<i32>} : memref<1x8x8x8xbf16, #tpu.memory_space<vmem>>, vector<1x8x8x8xbf16>,
    return
  }
  func.func @transform_0(%arg0: i32, %arg1: i32) -> (i32, i32, i32, i32) {
    %c0_i32 = arith.constant 0 : i32
    %c0_i32_0 = arith.constant 0 : i32
    %c0_i32_1 = arith.constant 0 : i32
    %c0_i32_2 = arith.constant 0 : i32
    return %arg0, %c0_i32, %c0_i32_0, %c0_i32_1 : i32, i32, i32, i32
  }
  func.func @transform_1(%arg0: i32, %arg1: i32) -> (i32, i32, i32, i32) {
    %c0_i32 = arith.constant 0 : i32
    %c0_i32_0 = arith.constant 0 : i32
    %c0_i32_1 = arith.constant 0 : i32
    %c0_i32_2 = arith.constant 0 : i32
    return %arg0, %c0_i32, %c0_i32_0, %c0_i32_1 : i32, i32, i32, i32
  }
  func.func @transform_2(%arg0: i32, %arg1: i32) -> (i32, i32) {
    %c0_i32 = arith.constant 0 : i32
    %c0_i32_0 = arith.constant 0 : i32
    %c0_i32_1 = arith.constant 0 : i32
    return %c0_i32, %c0_i32_0 : i32, i32
  }
  func.func @transform_3(%arg0: i32, %arg1: i32) -> (i32, i32) {
    %c0_i32 = arith.constant 0 : i32
    %c0_i32_0 = arith.constant 0 : i32
    %c0_i32_1 = arith.constant 0 : i32
    return %c0_i32, %c0_i32_0 : i32, i32
  }
  func.func @transform_4(%arg0: i32, %arg1: i32) -> (i32, i32) {
    %c0_i32 = arith.constant 0 : i32
    %c0_i32_0 = arith.constant 0 : i32
    %c0_i32_1 = arith.constant 0 : i32
    return %c0_i32, %c0_i32_0 : i32, i32
  }
  func.func @transform_5(%arg0: i32, %arg1: i32) -> (i32, i32) {
    %c0_i32 = arith.constant 0 : i32
    %c0_i32_0 = arith.constant 0 : i32
    %c0_i32_1 = arith.constant 0 : i32
    return %c0_i32, %c0_i32_0 : i32, i32
  }
  func.func @transform_6(%arg0: i32, %arg1: i32) -> (i32, i32) {
    %c0_i32 = arith.constant 0 : i32
    %c0_i32_0 = arith.constant 0 : i32
    %c0_i32_1 = arith.constant 0 : i32
    return %c0_i32, %c0_i32_0 : i32, i32
  }
  func.func @transform_7(%arg0: i32, %arg1: i32) -> (i32, i32) {
    %c0_i32 = arith.constant 0 : i32
    %c0_i32_0 = arith.constant 0 : i32
    %c0_i32_1 = arith.constant 0 : i32
    return %c0_i32, %c0_i32_0 : i32, i32
  }
  func.func @transform_8(%arg0: i32, %arg1: i32) -> (i32, i32) {
    %c0_i32 = arith.constant 0 : i32
    %c0_i32_0 = arith.constant 0 : i32
    %c0_i32_1 = arith.constant 0 : i32
    return %c0_i32, %c0_i32_0 : i32, i32
  }
  func.func @transform_9(%arg0: i32, %arg1: i32) -> (i32, i32) {
    %c0_i32 = arith.constant 0 : i32
    %c0_i32_0 = arith.constant 0 : i32
    %c0_i32_1 = arith.constant 0 : i32
    return %c0_i32, %c0_i32_0 : i32, i32
  }
  func.func @transform_10(%arg0: i32, %arg1: i32) -> (i32, i32, i32, i32) {
    %c0_i32 = arith.constant 0 : i32
    %c0_i32_0 = arith.constant 0 : i32
    %c0_i32_1 = arith.constant 0 : i32
    return %arg0, %arg1, %c0_i32, %c0_i32_0 : i32, i32, i32, i32
  }
}

</mosaic_0001>

<bundles_post_ra>
// kernel: tile.6
= control target key start
LH: loop header
LB: loop body
LE: loop exit
PB: predicated region body
PF: predicated region fallthrough
CT: control target
= control target key end

     0   :  { %s22_s0 = inlined_call_operand.vmem [shape: f32[4], index: 0, kind: input, shape index: {}]   ;;  %s23_s1 = inlined_call_operand.vmem [shape: f32[4,4], index: 1, kind: output, shape index: {}]  }
   0x1   :  { %v4_v0 = vld [vmem:[%s22_s0] ss:$0 sm:$0xff] }
   0x2   :  { %5 = vst [vmem:[%s23_s1] sm:$0xf] %v4_v0 }

// kernel: tile.7
= control target key start
LH: loop header
LB: loop body
LE: loop exit
PB: predicated region body
PF: predicated region fallthrough
CT: control target
= control target key end

     0   :  { %vm7_vm0 = vcmask 31744   ;;  %s37_s8 = smov 4   ;;  %s38_s9 = smov 8   ;;  %vm13_vm1 = vcmask 130144   ;;  %vm19_vm2 = vcmask 97344   ;;  %vm25_vm3 = vcmask 64544   ;;  %s55_s0 = inlined_call_operand.vmem [shape: f32[4,4], index: 0, kind: input, shape index: {}]   ;;  %s56_s1 = inlined_call_operand.vmem [shape: f32[1,16], index: 1, kind: output, shape index: {}]  }
   0x1   :  { %v4_v0 = vld [vmem:[%s55_s0] sm:$0xf]  ;;  %s36_s0 = smov 12  }
   0x2   :  { %5 = vst [vmem:[#allocation1] sm:$0xf] %v4_v0 }
   0x9   :  { %v10_v1 = vld [vmem:[#allocation1 + $0x3] sm:$0x1]   ;;  %v22_v2 = vld [vmem:[#allocation1 + $0x1] sm:$0x1]   ;;  %v6_v3 = vld [vmem:[#allocation1] sm:$0x1]  }
   0xa   :  { %11 = vrot.lane.b32.xlu0 %v10_v1, %s36_s0  ;;  %23 = vrot.lane.b32.xlu1 %v22_v2, %s37_s8  ;;  %v16_v4 = vld [vmem:[#allocation1 + $0x2] sm:$0x1]   ;;  %8 = vst.msk [vmem:[#allocation0] sm:$0x1] %vm7_vm0, %v6_v3  }
   0xe   :  { %17 = vrot.lane.b32.xlu0 %v16_v4, %s38_s9 }
  0x7c   :  { %v12_v5 = vpop.permute.xlu0 %11   ;;  %v24_v6 = vpop.permute.xlu1 %23  }
  0x7d   :  { %14 = vst.msk [vmem:[#allocation0] sm:$0x1] %vm13_vm1, %v12_v5  }
  0x80   :  { %v18_v7 = vpop.permute.xlu0 %17  }
  0x81   :  { %20 = vst.msk [vmem:[#allocation0] sm:$0x1] %vm19_vm2, %v18_v7  }
  0x82   :  { %26 = vst.msk [vmem:[#allocation0] sm:$0x1] %vm25_vm3, %v24_v6  }
  0x89   :  { %v30_v8 = vld [vmem:[#allocation0] sm:$0x1] }
  0x8a   :  { %32 = vst [vmem:[%s56_s1] sm:$0x1] %v30_v8 }

// kernel: res_up_block_forward.1
= control target key start
LH: loop header
LB: loop body
LE: loop exit
PB: predicated region body
PF: predicated region fallthrough
CT: control target
= control target key end

     0   :  { %s4014_s13 = smov 0   ;;  %s4016_s14 = smov 0   ;;  %s5025_s0 = inlined_call_operand.vmem [shape: bf16[2,8,8,8], index: 0, kind: input, shape index: {}]   ;;  %s5026_s1 = inlined_call_operand.vmem [shape: bf16[2,16,8,8], index: 1, kind: input, shape index: {}]   ;;  %s5027_s2 = inlined_call_operand.vmem [shape: f32[8,16], index: 2, kind: input, shape index: {}]   ;;  %s5028_s3 = inlined_call_operand.vmem [shape: f32[1,16], index: 3, kind: input, shape index: {}]   ;;  %s5029_s4 = inlined_call_operand.vmem [shape: f32[72,4], index: 4, kind: input, shape index: {}]   ;;  %s5030_s5 = inlined_call_operand.vmem [shape: f32[1,4], index: 5, kind: input, shape index: {}]   ;;  %s5031_s6 = inlined_call_operand.vmem [shape: f32[36,4], index: 6, kind: input, shape index: {}]   ;;  %s5032_s7 = inlined_call_operand.vmem [shape: f32[1,4], index: 7, kind: input, shape index: {}]   ;;  %s5033_s8 = inlined_call_operand.vmem [shape: f32[8,4], index: 8, kind: input, shape index: {}]   ;;  %s5034_s9 = inlined_call_operand.vmem [shape: f32[1,4], index: 9, kind: input, shape index: {}]   ;;  %s5035_s10 = inlined_call_operand.vmem [shape: bf16[2,16,8,8], index: 10, kind: output, shape index: {}]  }
   0x1   :  { %s4018_s15 = smov 0   ;;  %s4020_s16 = smov 0  }
   0x2   :  { %s4022_s17 = smov 0  }
   0x3 LB: > { %s29_s18 = sadd.s32 1, %s3922_s15  ;;  %s32_s19 = sadd.s32 1, %s3926_s16  ;;  %s3930_s17 = sphi %s4022_s17, %s20_s17   ;;  %s3926_s16 = sphi %s4020_s16, %s5052_s16   ;;  %s3922_s15 = sphi %s4018_s15, %s5051_s15   ;;  %s3918_s14 = sphi %s4016_s14, %s5050_s14   ;;  %s3914_s13 = sphi %s4014_s13, %s5049_s13  }
   0x4   : > { %p30_p0 = scmp.ge.s32.totalorder %s29_s18, 2  ;;  %p3262_p1 = scmp.ge.s32.totalorder %s3930_s17, 1 }
   0x5   : > { %p336_p2 = scmp.lt.s32.totalorder %s3930_s17, 5 }
   0x6   : > { %s5054_s18 = smov (%p30_p0, %s29_s18), 0  ;;  %s5056_s19 = smov (!%p30_p0, %s32_s19), %s3926_s16 }
   0x7   : > { %p337_p3 = pnand %p3262_p1, %p336_p2  ;;  %p34_p4 = scmp.ge.s32.totalorder %s5056_s19, 2 }
   0x8   : > { %vm405_vm0 = vcmask (!%p337_p3), 130048   ;;  %vm407_vm1 = vcmask (!%p337_p3), 123904   ;;  %vm416_vm2 = vcmask (!%p337_p3), 122880   ;;  %v472_v0 = vld [vmem:[%s5027_s2] sm:$0xff] (!%p337_p3)  ;;  %v3932_v1 = vmov (!%p337_p3), 0.0   ;;  %p383_p5 = scmp.lt.s32.totalorder (!%p337_p3), %s3918_s14, 1 }
   0x9   : > { %s5058_s19 = smov (%p34_p4, %s5056_s19), 0  ;;  %340 = sbr.rel (%p337_p3) target bundleno = 2264 (0x8d8), region = 60 }
   0xa   : > { %5042 = sst [smem:[#allocation4_spill]] %s5058_s19  ;;  %406 = vst.msk [vmem:[#allocation2] sm:$0xff] (!%p337_p3), %vm405_vm0, %v3932_v1  ;;  %409 = vst.msk [vmem:[#allocation2 + $0x10] sm:$0xff] (!%p337_p3), %vm405_vm0, %v3932_v1  ;;  %vm441_vm3 = vcmask (!%p337_p3), 57344   ;;  %3491 = vmatprep.subr.mxu0 (!%p337_p3), %v472_v0  ;;  %3695 = vmatprep.subr.mxu1 (!%p337_p3), %v472_v0  ;;  %s4074_s23 = sshll.u32 (!%p337_p3), %s3914_s13, 3  ;;  %vm480_vm4 = vcmask (!%p337_p3), 64512  }
   0xb   : > { %408 = vst.msk [vmem:[#allocation2 + $0x8] sm:$0x3] (!%p337_p3), %vm407_vm1, %v3932_v1  ;;  %410 = vst.msk [vmem:[#allocation2 + $0x18] sm:$0x3] (!%p337_p3), %vm407_vm1, %v3932_v1  ;;  %3492 = vmatpush3.msra.mxu0 (!%p337_p3), %v472_v0  ;;  %3696 = vmatpush3.msra.mxu1 (!%p337_p3), %v472_v0  ;;  %p396_p6 = scmp.lt.s32.totalorder (!%p337_p3), %s4074_s23, 15  ;;  %s3359_s24 = sshll.u32 (!%p337_p3), %s3914_s13, 4 }
   0xc   : > { %412 = vst.msk [vmem:[#allocation2 + $0xa0] sm:$0xff] (!%p337_p3), %vm405_vm0, %v3932_v1  ;;  %414 = vst.msk [vmem:[#allocation2 + $0xb0] sm:$0xff] (!%p337_p3), %vm405_vm0, %v3932_v1  ;;  %v3273_v8 = vld [vmem:[%s5028_s3] ss:$0 sm:$0xff] (!%p337_p3)  ;;  %vm605_vm5 = vcmask (!%p337_p3), 31744   ;;  %s3935_s22 = smov (!%p337_p3), 8  }
   0xd   : > { %413 = vst.msk [vmem:[#allocation2 + $0xa8] sm:$0x3] (!%p337_p3), %vm407_vm1, %v3932_v1  ;;  %415 = vst.msk [vmem:[#allocation2 + $0xb8] sm:$0x3] (!%p337_p3), %vm407_vm1, %v3932_v1  ;;  %vm638_vm6 = vcmask (!%p337_p3), 97344   ;;  %vm687_vm7 = vcmask (!%p337_p3), 64544  }
   0xe   : > { %419 = vst.msk [vmem:[#allocation2 + $0x20] sm:$0x1] (!%p337_p3), %vm416_vm2, %v3932_v1  ;;  %420 = vst.msk [vmem:[#allocation2 + $0x30] sm:$0x1] (!%p337_p3), %vm416_vm2, %v3932_v1  ;;  %vm720_vm8 = vcmask (!%p337_p3), 130144   ;;  %p3279_p7 = scmp.le.s32.totalorder (!%p337_p3), %s3914_s13, 0 }
   0xf   : > { %421 = vst.msk [vmem:[#allocation2 + $0x40] sm:$0x1] (!%p337_p3), %vm416_vm2, %v3932_v1  ;;  %422 = vst.msk [vmem:[#allocation2 + $0x50] sm:$0x1] (!%p337_p3), %vm416_vm2, %v3932_v1 }
  0x10   : > { %423 = vst.msk [vmem:[#allocation2 + $0x60] sm:$0x1] %vm416_vm2, %v3932_v1  ;;  %424 = vst.msk [vmem:[#allocation2 + $0x70] sm:$0x1] %vm416_vm2, %v3932_v1  ;;  %s5060_s14 = smov (!%p383_p5, %s3918_s14), 1  ;;  %vm3937_vm9 = vmmov (!%p3279_p7), 0  }
  0x11   : > { %425 = vst.msk [vmem:[#allocation2 + $0x80] sm:$0x1] %vm416_vm2, %v3932_v1  ;;  %426 = vst.msk [vmem:[#allocation2 + $0x90] sm:$0x1] %vm416_vm2, %v3932_v1  ;;  %s397_s25 = scalar_select %p396_p6, %s4074_s23, 15 }
  0x12   : > { %431 = vst.msk [vmem:[#allocation2 + $0x29] sm:$0x1] %vm416_vm2, %v3932_v1  ;;  %432 = vst.msk [vmem:[#allocation2 + $0x39] sm:$0x1] %vm416_vm2, %v3932_v1  ;;  %s3357_s26 = sshll.u32 %s5060_s14, 5  ;;  %s3268_s27 = sshll.u32 %s5060_s14, 4 }
  0x13   : > { %433 = vst.msk [vmem:[#allocation2 + $0x49] sm:$0x1] %vm416_vm2, %v3932_v1  ;;  %434 = vst.msk [vmem:[#allocation2 + $0x59] sm:$0x1] %vm416_vm2, %v3932_v1  ;;  %s4113_s30 = scalar_lea.vmem %s5025_s0, %s3357_s26  ;;  %s399_s11 = sadd.s32 %s3268_s27, %s397_s25 }
  0x14   : > { %435 = vst.msk [vmem:[#allocation2 + $0x69] sm:$0x1] %vm416_vm2, %v3932_v1  ;;  %436 = vst.msk [vmem:[#allocation2 + $0x79] sm:$0x1] %vm416_vm2, %v3932_v1  ;;  %s3269_s12 = sshll.u32 %s399_s11, 2  ;;  %s4116_s21 = scalar_lea.vmem %s4113_s30, %s3359_s24 }
  0x15   : > { %437 = vst.msk [vmem:[#allocation2 + $0x89] sm:$0x1] %vm416_vm2, %v3932_v1  ;;  %438 = vst.msk [vmem:[#allocation2 + $0x99] sm:$0x1] %vm416_vm2, %v3932_v1  ;;  %s4121_s19 = scalar_lea.vmem %s5035_s10, %s3269_s12  ;;  %v3364_v2 = vld [vmem:[%s4116_s21] sm:$0xff]   ;;  %v3395_v3 = vld [vmem:[%s4116_s21 + $0x8] sm:$0xff]  }
  0x16   : > { %417 = vst.msk [vmem:[#allocation2] sm:$0x1] %vm416_vm2, %v3932_v1  ;;  %418 = vst.msk [vmem:[#allocation2 + $0x10] sm:$0x1] %vm416_vm2, %v3932_v1  ;;  %v3365_v4 = vunpack.c.l.bf16 %v3364_v2  ;;  %v3366_v5 = vunpack.c.h.bf16 %v3364_v2  ;;  %v3369_v6 = vunpack.c.l.bf16 %v3395_v3  ;;  %v3370_v7 = vunpack.c.h.bf16 %v3395_v3  ;;  %s3358_s20 = sshll.u32 %s5060_s14, 6  ;;  %s3360_s27 = sshll.u32 %s3914_s13, 5 }
  0x17   : > { %427 = vst.msk [vmem:[#allocation2 + $0xa0] sm:$0x1] %vm416_vm2, %v3932_v1  ;;  %428 = vst.msk [vmem:[#allocation2 + $0xb0] sm:$0x1] %vm416_vm2, %v3932_v1  ;;  %s4132_s26 = scalar_lea.vmem %s5026_s1, %s3358_s20  ;;  %s5039_s14 = smov 120  }
  0x18   : > { %429 = vst.msk [vmem:[#allocation2 + $0x9] sm:$0x1] %vm416_vm2, %v3932_v1  ;;  %430 = vst.msk [vmem:[#allocation2 + $0x19] sm:$0x1] %vm416_vm2, %v3932_v1  ;;  %3493 = vmatprep.mubr.msk.f32.mxu0 %vm480_vm4, %v3365_v4  ;;  %3496 = vmatprep.mubr.msk.f32.mxu1 %vm480_vm4, %v3369_v6  ;;  %s4139_s11 = scalar_lea.vmem %s4132_s26, %s3360_s27  ;;  %s5036_s12 = smov 4   ;;  %v3936_v6 = vmov (!%p3279_p7), 0.0  }
  0x19   : > { %439 = vst.msk [vmem:[#allocation2 + $0xa9] sm:$0x1] %vm416_vm2, %v3932_v1  ;;  %440 = vst.msk [vmem:[#allocation2 + $0xb9] sm:$0x1] %vm416_vm2, %v3932_v1  ;;  %3494 = vmatmul.mubr.msk.f32.vlgmr.msra.gmra.mrb[0].mxu0 %vm480_vm4, %v3366_v5  ;;  %3497 = vmatmul.mubr.msk.f32.vlgmr.msra.gmra.mrb[0].mxu1 %vm480_vm4, %v3370_v7  ;;  %v3396_v15 = vld [vmem:[%s4139_s11 + $0x8] sm:$0xff]   ;;  %v3398_v20 = vld [vmem:[%s4139_s11 + $0x18] sm:$0xff]  }
  0x1a   : > { %442 = vst.msk [vmem:[#allocation3] sm:$0x1] %vm441_vm3, %v3932_v1  ;;  %443 = vst.msk [vmem:[#allocation3 + $0x10] sm:$0x1] %vm441_vm3, %v3932_v1  ;;  %v3377_v18 = vunpack.c.l.bf16 %v3396_v15  ;;  %v3378_v19 = vunpack.c.h.bf16 %v3396_v15  ;;  %v3385_v22 = vunpack.c.l.bf16 %v3398_v20  ;;  %v3386_v23 = vunpack.c.h.bf16 %v3398_v20  ;;  %v3372_v24 = vld [vmem:[%s4139_s11] sm:$0xff]   ;;  %v3397_v28 = vld [vmem:[%s4139_s11 + $0x10] sm:$0xff]   ;;  %3499 = vmatprep.subr.mxu0 (!%p3279_p7), %v3936_v6  ;;  %3501 = vmatprep.mubr.msk.f32.mxu0 (!%p3279_p7), %vm3937_vm9, %v3936_v6 }
  0x1b   : > { %444 = vst.msk [vmem:[#allocation3 + $0x20] sm:$0x1] %vm441_vm3, %v3932_v1  ;;  %445 = vst.msk [vmem:[#allocation3 + $0x30] sm:$0x1] %vm441_vm3, %v3932_v1  ;;  %v3373_v25 = vunpack.c.l.bf16 %v3372_v24  ;;  %v3374_v26 = vunpack.c.h.bf16 %v3372_v24  ;;  %v3381_v30 = vunpack.c.l.bf16 %v3397_v28  ;;  %v3382_v31 = vunpack.c.h.bf16 %v3397_v28  ;;  %v738_v5 = vld [vmem:[%s5027_s2] sm:$0xff] (!%p3279_p7)  ;;  %s5043_s25 = sshll.u32 (!%p3279_p7), %s3914_s13, 2 }
  0x1c   : > { %446 = vst.msk [vmem:[#allocation3 + $0x40] sm:$0x1] %vm441_vm3, %v3932_v1  ;;  %447 = vst.msk [vmem:[#allocation3 + $0x50] sm:$0x1] %vm441_vm3, %v3932_v1  ;;  %v3817_v21 = vpack.i.bf16 %v3378_v19, %v3377_v18  ;;  %v3827_v27 = vpack.i.bf16 %v3386_v23, %v3385_v22  ;;  %s3280_s27 = sadd.s32 (!%p3279_p7), 4294967295, %s5043_s25  ;;  %3500 = vmatpush3.msra.mxu0 (!%p3279_p7), %v738_v5 }
  0x1d   : > { %448 = vst.msk [vmem:[#allocation3 + $0x60] sm:$0x1] %vm441_vm3, %v3932_v1  ;;  %449 = vst.msk [vmem:[#allocation3 + $0x70] sm:$0x1] %vm441_vm3, %v3932_v1  ;;  %v3812_v29 = vpack.i.bf16 %v3374_v26, %v3373_v25  ;;  %v3822_v32 = vpack.i.bf16 %v3382_v31, %v3381_v30  ;;  %s3281_s28 = sshll.u32 (!%p3279_p7), %s3280_s27, 2  ;;  %s3939_s27 = smov (!%p3279_p7), 4  }
  0x1e   : > { %450 = vst.msk [vmem:[#allocation3 + $0x80] sm:$0x1] %vm441_vm3, %v3932_v1  ;;  %451 = vst.msk [vmem:[#allocation3 + $0x90] sm:$0x1] %vm441_vm3, %v3932_v1  ;;  %s735_s29 = scalar_lea.vmem (!%p3279_p7), %s4113_s30, %s3281_s28  ;;  %s3938_s30 = smov (!%p3279_p7), 120  }
  0x1f   : > { %452 = vst.msk [vmem:[#allocation3 + $0x9] sm:$0x1] %vm441_vm3, %v3932_v1  ;;  %453 = vst.msk [vmem:[#allocation3 + $0x19] sm:$0x1] %vm441_vm3, %v3932_v1  ;;  %v736_v7 = vld [vmem:[%s735_s29] sm:$0xf] (!%p3279_p7) }
  0x20   : > { %454 = vst.msk [vmem:[#allocation3 + $0x29] sm:$0x1] %vm441_vm3, %v3932_v1  ;;  %455 = vst.msk [vmem:[#allocation3 + $0x39] sm:$0x1] %vm441_vm3, %v3932_v1 }
  0x21   : > { %456 = vst.msk [vmem:[#allocation3 + $0x49] sm:$0x1] %vm441_vm3, %v3932_v1  ;;  %457 = vst.msk [vmem:[#allocation3 + $0x59] sm:$0x1] %vm441_vm3, %v3932_v1 }
  0x22   : > { %458 = vst.msk [vmem:[#allocation3 + $0x69] sm:$0x1] %vm441_vm3, %v3932_v1  ;;  %459 = vst.msk [vmem:[#allocation3 + $0x79] sm:$0x1] %vm441_vm3, %v3932_v1 }
  0x23   : > { %460 = vst.msk [vmem:[#allocation3 + $0x89] sm:$0x1] %vm441_vm3, %v3932_v1  ;;  %461 = vst.msk [vmem:[#allocation3 + $0x99] sm:$0x1] %vm441_vm3, %v3932_v1 }
  0xec   : > { %v3495_v9 = vpop.f32.mrb[0].mxu0  ;;  %v3498_v10 = vpop.f32.mrb[0].mxu1 }
  0xed   : > { %v565_v11 = vadd.f32 %v3495_v9, %v3273_v8  ;;  %v575_v12 = vadd.f32 %v3498_v10, %v3273_v8  ;;  %v559_v13 = vpop.f32.mrb[1].mxu0  ;;  %v569_v14 = vpop.f32.mrb[1].mxu1 }
  0xee   : > { %v560_v16 = vadd.f32 %v3273_v8, %v559_v13  ;;  %v570_v17 = vadd.f32 %v3273_v8, %v569_v14  ;;  %v737_v8 = vunpack.c.l.bf16 (!%p3279_p7), %v736_v7  ;;  %v3282_v13 = vld [vmem:[%s5028_s3] ss:$0 sm:$0xff] (!%p3279_p7) }
  0xef   : > { %608 = vst.msk [vmem:[#allocation2 + $0x41] sm:$0xff] %vm605_vm5, %v565_v11  ;;  %612 = vst.msk [vmem:[#allocation2 + $0x81] sm:$0xff] %vm605_vm5, %v575_v12 }
  0xf0   : > { %586 = vrot.lane.b32.xlu1 %v570_v17, %s5039_s14  ;;  %582 = vrot.lane.b32.xlu0 %v560_v16, %s5039_s14  ;;  %606 = vst.msk [vmem:[#allocation2 + $0x21] sm:$0xff] %vm605_vm5, %v560_v16  ;;  %610 = vst.msk [vmem:[#allocation2 + $0x61] sm:$0xff] %vm605_vm5, %v570_v17 }
  0xf1   : > { %3502 = vmatmul.mubr.msk.f32.vlgmr.msra.gmra.mrb[0].mxu0 (!%p3279_p7), %vm480_vm4, %v737_v8 }
  0xf4   : > { %588 = vrot.lane.b32.xlu1 %v575_v12, %s5039_s14  ;;  %584 = vrot.lane.b32.xlu0 %v565_v11, %s5039_s14 }
  0xf8   : > { %618 = vrot.lane.b32.xlu0 %v565_v11, %s5036_s12  ;;  %3818 = vrot.lane.b32.xlu1 %v3817_v21, %s5036_s12 }
  0xfc   : > { %626 = vrot.lane.b32.xlu0 %v575_v12, %s5036_s12  ;;  %3828 = vrot.lane.b32.xlu1 %v3827_v27, %s5036_s12 }
 0x100   : > { %3813 = vrot.lane.b32.xlu0 %v3812_v29, %s5036_s12  ;;  %3838 = vrot.lane.b32.xlu1 %v3817_v21, %s3935_s22 }
 0x104   : > { %3823 = vrot.lane.b32.xlu0 %v3822_v32, %s5036_s12 }
 0x108   : > { %3833 = vrot.lane.b32.xlu0 %v3812_v29, %s3935_s22 }
 0x10c   : > { %614 = vrot.lane.b32.xlu0 %v560_v16, %s5036_s12 }
 0x110   : > { %622 = vrot.lane.b32.xlu0 %v570_v17, %s5036_s12 }
 0x114   : > { %3843 = vrot.lane.b32.xlu0 %v3822_v32, %s3935_s22 }
 0x162   : > { %v587_v33 = vpop.permute.xlu1 %586  ;;  %v583_v34 = vpop.permute.xlu0 %582 }
 0x163   : > { %611 = vst.msk [vmem:[#allocation2 + $0x71] sm:$0xff] %vm605_vm5, %v587_v33  ;;  %607 = vst.msk [vmem:[#allocation2 + $0x31] sm:$0xff] %vm605_vm5, %v583_v34 }
 0x166   : > { %v589_v35 = vpop.permute.xlu1 %588  ;;  %v585_v36 = vpop.permute.xlu0 %584 }
 0x167   : > { %613 = vst.msk [vmem:[#allocation2 + $0x91] sm:$0xff] %vm605_vm5, %v589_v35  ;;  %609 = vst.msk [vmem:[#allocation2 + $0x51] sm:$0xff] %vm605_vm5, %v585_v36  ;;  %620 = vrot.lane.b32.xlu1 %v585_v36, %s5036_s12 }
 0x16a   : > { %v619_v37 = vpop.permute.xlu0 %618  ;;  %v3819_v38 = vpop.permute.xlu1 %3818 }
 0x16b   : > { %641 = vst.msk [vmem:[#allocation2 + $0x41] sm:$0xff] %vm638_vm6, %v619_v37  ;;  %628 = vrot.lane.b32.xlu1 %v589_v35, %s5036_s12  ;;  %v3820_v39 = vunpack.i.l.bf16 %v3819_v38  ;;  %v3821_v55 = vunpack.i.h.bf16 %v3819_v38 }
 0x16d   : > { %690 = vst.msk [vmem:[#allocation2 + $0x41] sm:$0xff] %vm687_vm7, %v3820_v39 }
 0x16e   : > { %v627_v40 = vpop.permute.xlu0 %626  ;;  %v3829_v41 = vpop.permute.xlu1 %3828 }
 0x16f   : > { %645 = vst.msk [vmem:[#allocation2 + $0x81] sm:$0xff] %vm638_vm6, %v627_v40  ;;  %616 = vrot.lane.b32.xlu1 %v583_v34, %s5036_s12  ;;  %v3830_v42 = vunpack.i.l.bf16 %v3829_v41  ;;  %v3831_v58 = vunpack.i.h.bf16 %v3829_v41 }
 0x171   : > { %694 = vst.msk [vmem:[#allocation2 + $0x81] sm:$0xff] %vm687_vm7, %v3830_v42 }
 0x172   : > { %v3814_v43 = vpop.permute.xlu0 %3813  ;;  %v3839_v44 = vpop.permute.xlu1 %3838 }
 0x173   : > { %624 = vrot.lane.b32.xlu1 %v587_v33, %s5036_s12  ;;  %v3840_v45 = vunpack.i.l.bf16 %v3839_v44  ;;  %v3815_v48 = vunpack.i.l.bf16 %v3814_v43  ;;  %v3841_v57 = vunpack.i.h.bf16 %v3839_v44  ;;  %v3816_v60 = vunpack.i.h.bf16 %v3814_v43  ;;  %s3284_s12 = sadd.s32 (!%p3279_p7), 4294967294, %s4074_s23  ;;  %s3940_s23 = smov (!%p3279_p7), 8  }
 0x174   : > { %s3285_s20 = sshll.u32 (!%p3279_p7), %s3284_s12, 2 }
 0x175   : > { %723 = vst.msk [vmem:[#allocation2 + $0x41] sm:$0xff] %vm720_vm8, %v3840_v45  ;;  %s825_s24 = scalar_lea.vmem (!%p3279_p7), %s4132_s26, %s3285_s20 }
 0x176   : > { %v3824_v46 = vpop.permute.xlu0 %3823  ;;  %v3388_v9 = vld [vmem:[%s825_s24] sm:$0xff] (!%p3279_p7)  }
 0x177   : > { %3848 = vrot.lane.b32.xlu1 %v3827_v27, %s3935_s22  ;;  %v3825_v51 = vunpack.i.l.bf16 %v3824_v46  ;;  %v3826_v0 = vunpack.i.h.bf16 %v3824_v46  ;;  %v3389_v10 = vunpack.c.l.bf16 (!%p3279_p7), %v3388_v9  ;;  %v3390_v11 = vunpack.c.h.bf16 (!%p3279_p7), %v3388_v9 }
 0x179   : > { %v3852_v12 = vpack.i.bf16 (!%p3279_p7), %v3390_v11, %v3389_v10 }
 0x17a   : > { %v3834_v47 = vpop.permute.xlu0 %3833 }
 0x17b   : > { %v3835_v49 = vunpack.i.l.bf16 %v3834_v47  ;;  %v3836_v62 = vunpack.i.h.bf16 %v3834_v47 }
 0x17e   : > { %v615_v50 = vpop.permute.xlu0 %614 }
 0x17f   : > { %639 = vst.msk [vmem:[#allocation2 + $0x21] sm:$0xff] %vm638_vm6, %v615_v50 }
 0x180   : > { %688 = vst.msk [vmem:[#allocation2 + $0x21] sm:$0xff] %vm687_vm7, %v3815_v48 }
 0x181   : > { %721 = vst.msk [vmem:[#allocation2 + $0x21] sm:$0xff] %vm720_vm8, %v3835_v49 }
 0x182   : > { %v623_v52 = vpop.permute.xlu0 %622 }
 0x183   : > { %643 = vst.msk [vmem:[#allocation2 + $0x61] sm:$0xff] %vm638_vm6, %v623_v52 }
 0x184   : > { %692 = vst.msk [vmem:[#allocation2 + $0x61] sm:$0xff] %vm687_vm7, %v3825_v51 }
 0x186   : > { %v3844_v53 = vpop.permute.xlu0 %3843 }
 0x187   : > { %v3845_v54 = vunpack.i.l.bf16 %v3844_v53  ;;  %v3846_v63 = vunpack.i.h.bf16 %v3844_v53 }
 0x189   : > { %725 = vst.msk [vmem:[#allocation2 + $0x61] sm:$0xff] %vm720_vm8, %v3845_v54 }
 0x1c4   : > { %v815_v14 = vpop.f32.mrb[0].mxu0 (!%p3279_p7) }
 0x1c5   : > { %v816_v15 = vadd.f32 (!%p3279_p7), %v3282_v13, %v815_v14  ;;  %v3503_v16 = vpop.f32.mrb[1].mxu0 (!%p3279_p7) }
 0x1c7   : > { %828 = vst.msk [vmem:[#allocation2 + $0x1] sm:$0xff] (!%p3279_p7), %vm605_vm5, %v816_v15  ;;  %820 = vrot.lane.b32.xlu0 (!%p3279_p7), %v816_v15, %s3938_s30 }
 0x1cb   : > { %830 = vrot.lane.b32.xlu0 (!%p3279_p7), %v816_v15, %s3939_s27 }
 0x1cf   : > { %3858 = vrot.lane.b32.xlu0 (!%p3279_p7), %v3852_v12, %s3940_s23 }
 0x1d9   : > { %v621_v56 = vpop.permute.xlu1 %620 }
 0x1da   : > { %642 = vst.msk [vmem:[#allocation2 + $0x51] sm:$0xff] %vm638_vm6, %v621_v56 }
 0x1db   : > { %691 = vst.msk [vmem:[#allocation2 + $0x51] sm:$0xff] %vm687_vm7, %v3821_v55 }
 0x1dc   : > { %724 = vst.msk [vmem:[#allocation2 + $0x51] sm:$0xff] %vm720_vm8, %v3841_v57 }
 0x1dd   : > { %v629_v59 = vpop.permute.xlu1 %628 }
 0x1de   : > { %646 = vst.msk [vmem:[#allocation2 + $0x91] sm:$0xff] %vm638_vm6, %v629_v59 }
 0x1df   : > { %695 = vst.msk [vmem:[#allocation2 + $0x91] sm:$0xff] %vm687_vm7, %v3831_v58 }
 0x1e1   : > { %v617_v61 = vpop.permute.xlu1 %616 }
 0x1e2   : > { %640 = vst.msk [vmem:[#allocation2 + $0x31] sm:$0xff] %vm638_vm6, %v617_v61 }
 0x1e3   : > { %689 = vst.msk [vmem:[#allocation2 + $0x31] sm:$0xff] %vm687_vm7, %v3816_v60 }
 0x1e4   : > { %722 = vst.msk [vmem:[#allocation2 + $0x31] sm:$0xff] %vm720_vm8, %v3836_v62 }
 0x1e5   : > { %v625_v1 = vpop.permute.xlu1 %624 }
 0x1e6   : > { %644 = vst.msk [vmem:[#allocation2 + $0x71] sm:$0xff] %vm638_vm6, %v625_v1  ;;  %732 = sbr.rel (%p3279_p7) target bundleno = 693 (0x2b5), region = 64 }
 0x1e7   : > { %693 = vst.msk [vmem:[#allocation2 + $0x71] sm:$0xff] %vm687_vm7, %v3826_v0 }
 0x1e8   : > { %726 = vst.msk [vmem:[#allocation2 + $0x71] sm:$0xff] %vm720_vm8, %v3846_v63 }
 0x1e9   : > { %v3849_v2 = vpop.permute.xlu1 %3848 }
 0x1ea   : > { %v3851_v3 = vunpack.i.h.bf16 %v3849_v2  ;;  %v3850_v4 = vunpack.i.l.bf16 %v3849_v2 }
 0x1ec   : > { %728 = vst.msk [vmem:[#allocation2 + $0x91] sm:$0xff] %vm720_vm8, %v3851_v3  ;;  %727 = vst.msk [vmem:[#allocation2 + $0x81] sm:$0xff] %vm720_vm8, %v3850_v4 }
 0x239   : > { %v821_v17 = vpop.permute.xlu0 %820 }
 0x23a   : > { %829 = vst.msk [vmem:[#allocation2 + $0x11] sm:$0xff] %vm605_vm5, %v821_v17  ;;  %832 = vrot.lane.b32.xlu1 %v821_v17, %s3939_s27 }
 0x23d   : > { %v831_v18 = vpop.permute.xlu0 %830 }
 0x23e   : > { %836 = vst.msk [vmem:[#allocation2 + $0x1] sm:$0xff] %vm638_vm6, %v831_v18  ;;  %3853 = vrot.lane.b32.xlu1 %v3852_v12, %s3939_s27 }
 0x241   : > { %v3859_v20 = vpop.permute.xlu0 %3858 }
 0x242   : > { %v3861_v22 = vunpack.i.h.bf16 %v3859_v20  ;;  %v3860_v23 = vunpack.i.l.bf16 %v3859_v20 }
 0x2ac   : > { %v833_v19 = vpop.permute.xlu1 %832 }
 0x2ad   : > { %837 = vst.msk [vmem:[#allocation2 + $0x11] sm:$0xff] %vm638_vm6, %v833_v19 }
 0x2b0   : > { %v3854_v21 = vpop.permute.xlu1 %3853 }
 0x2b1   : > { %v3856_v24 = vunpack.i.h.bf16 %v3854_v21  ;;  %v3855_v25 = vunpack.i.l.bf16 %v3854_v21 }
 0x2b3   : > { %849 = vst.msk [vmem:[#allocation2 + $0x11] sm:$0xff] %vm687_vm7, %v3856_v24  ;;  %848 = vst.msk [vmem:[#allocation2 + $0x1] sm:$0xff] %vm687_vm7, %v3855_v25 }
 0x2b4   : > { %857 = vst.msk [vmem:[#allocation2 + $0x11] sm:$0xff] %vm720_vm8, %v3861_v22  ;;  %856 = vst.msk [vmem:[#allocation2 + $0x1] sm:$0xff] %vm720_vm8, %v3860_v23 }
 0x2b5 PF: > { %s858_s26 = sadd.s32 1, %s3914_s13 }
 0x2b6   : > { %p3286_p8 = scmp.ge.s32.totalorder %s858_s26, 2 }
 0x2b7   : > { %v868_v26 = vld [vmem:[%s5027_s2] sm:$0xff] (!%p3286_p8)  ;;  %v3289_v27 = vld [vmem:[%s4116_s21 + $0x10] sm:$0xf] (!%p3286_p8)  ;;  %v3941_v28 = vmov (!%p3286_p8), 0.0   ;;  %vm3942_vm10 = vmmov (!%p3286_p8), 0   ;;  %s3943_s21 = smov (!%p3286_p8), 120  }
 0x2b8   : > { %862 = sbr.rel (%p3286_p8) target bundleno = 1150 (0x47e), region = 68  ;;  %3504 = vmatprep.subr.mxu0 (!%p3286_p8), %v3941_v28  ;;  %3506 = vmatprep.mubr.msk.f32.mxu0 (!%p3286_p8), %vm3942_vm10, %v3941_v28  ;;  %v867_v29 = vunpack.c.l.bf16 (!%p3286_p8), %v3289_v27  ;;  %v3399_v30 = vld [vmem:[%s4139_s11 + $0x20] sm:$0xff] (!%p3286_p8)   ;;  %s3944_s20 = smov (!%p3286_p8), 4  }
 0x2b9   : > { %3505 = vmatpush3.msra.mxu0 (!%p3286_p8), %v868_v26  ;;  %v3393_v31 = vunpack.c.l.bf16 (!%p3286_p8), %v3399_v30  ;;  %v3394_v32 = vunpack.c.h.bf16 (!%p3286_p8), %v3399_v30  ;;  %v3290_v34 = vld [vmem:[%s5028_s3] ss:$0 sm:$0xff] (!%p3286_p8)  ;;  %s3945_s24 = smov (!%p3286_p8), 8  }
 0x2ba   : > { %3507 = vmatmul.mubr.msk.f32.vlgmr.msra.gmra.mrb[0].mxu0 (!%p3286_p8), %vm480_vm4, %v867_v29 }
 0x2bb   : > { %v3862_v33 = vpack.i.bf16 (!%p3286_p8), %v3394_v32, %v3393_v31 }
 0x38d   : > { %v945_v35 = vpop.f32.mrb[0].mxu0 }
 0x38e   : > { %v946_v36 = vadd.f32 %v3290_v34, %v945_v35  ;;  %v3508_v37 = vpop.f32.mrb[1].mxu0 }
 0x390   : > { %958 = vst.msk [vmem:[#allocation2 + $0xa1] sm:$0xff] %vm605_vm5, %v946_v36  ;;  %950 = vrot.lane.b32.xlu0 %v946_v36, %s3943_s21 }
 0x394   : > { %960 = vrot.lane.b32.xlu0 %v946_v36, %s3944_s20 }
 0x398   : > { %3868 = vrot.lane.b32.xlu0 %v3862_v33, %s3945_s24 }
 0x402   : > { %v951_v38 = vpop.permute.xlu0 %950 }
 0x403   : > { %959 = vst.msk [vmem:[#allocation2 + $0xb1] sm:$0xff] %vm605_vm5, %v951_v38  ;;  %962 = vrot.lane.b32.xlu1 %v951_v38, %s3944_s20 }
 0x406   : > { %v961_v39 = vpop.permute.xlu0 %960 }
 0x407   : > { %966 = vst.msk [vmem:[#allocation2 + $0xa1] sm:$0xff] %vm638_vm6, %v961_v39  ;;  %3863 = vrot.lane.b32.xlu1 %v3862_v33, %s3944_s20 }
 0x40a   : > { %v3869_v41 = vpop.permute.xlu0 %3868 }
 0x40b   : > { %v3871_v43 = vunpack.i.h.bf16 %v3869_v41  ;;  %v3870_v44 = vunpack.i.l.bf16 %v3869_v41 }
 0x475   : > { %v963_v40 = vpop.permute.xlu1 %962 }
 0x476   : > { %967 = vst.msk [vmem:[#allocation2 + $0xb1] sm:$0xff] %vm638_vm6, %v963_v40 }
 0x479   : > { %v3864_v42 = vpop.permute.xlu1 %3863 }
 0x47a   : > { %v3866_v45 = vunpack.i.h.bf16 %v3864_v42  ;;  %v3865_v46 = vunpack.i.l.bf16 %v3864_v42 }
 0x47c   : > { %979 = vst.msk [vmem:[#allocation2 + $0xb1] sm:$0xff] %vm687_vm7, %v3866_v45  ;;  %978 = vst.msk [vmem:[#allocation2 + $0xa1] sm:$0xff] %vm687_vm7, %v3865_v46 }
 0x47d   : > { %987 = vst.msk [vmem:[#allocation2 + $0xb1] sm:$0xff] %vm720_vm8, %v3871_v43  ;;  %986 = vst.msk [vmem:[#allocation2 + $0xa1] sm:$0xff] %vm720_vm8, %v3870_v44 }
 0x47e PF: > { %v4236_v47 = vld [vmem:[#allocation2 + $0x11] sm:$0xff]  ;;  %v1008_v48 = vld [vmem:[#allocation2 + $0x2] sm:$0xff]  ;;  %s3946_s11 = smov 24   ;;  %s3947_s25 = smov 16   ;;  %vm1329_vm11 = vcmask 195584   ;;  %vm1573_vm12 = vcmask 326656  }
 0x47f   : > { %1413 = vrot.lane.b32.xlu1 %v4236_v47, %s3946_s11  ;;  %1383 = vrot.lane.b32.xlu0 %v1008_v48, %s3947_s25  ;;  %v4241_v49 = vld [vmem:[#allocation2 + $0x21] sm:$0xff]  ;;  %v1009_v50 = vld [vmem:[#allocation2 + $0x12] sm:$0xff]  ;;  %s3948_s30 = smov 40   ;;  %s3949_s26 = smov 48   ;;  %vm1351_vm13 = vcmask 392192   ;;  %vm1594_vm14 = vcmask 523264  }
 0x480   : > { %v1040_v51 = vld [vmem:[#allocation2 + $0x22] sm:$0xff]  ;;  %v1607_v55 = vld [vmem:[%s5029_s4 + $0x10] sm:$0xff]  ;;  %v1608_v56 = vld [vmem:[%s5029_s4 + $0x18] sm:$0xff]  ;;  %s3950_s21 = smov 64   ;;  %s5044_s27 = smov 120   ;;  %vm1621_vm15 = vcmask 588800  }
 0x481   : > { %v1605_v52 = vld [vmem:[%s5029_s4] sm:$0xff]  ;;  %v1606_v53 = vld [vmem:[%s5029_s4 + $0x8] sm:$0xff]  ;;  %v3651_v57 = vpack.c.bf16 %v1608_v56, %v1607_v55  ;;  %v4269_v60 = vld [vmem:[#allocation2 + $0x31] sm:$0xff]  ;;  %s3951_s23 = smov 32   ;;  %vm1340_vm1 = vcmask 261120   ;;  %vm1362_vm2 = vcmask 457728  }
 0x482   : > { %v3647_v54 = vpack.c.bf16 %v1606_v53, %v1605_v52  ;;  %v1609_v58 = vld [vmem:[%s5029_s4 + $0x20] sm:$0xff]  ;;  %v1610_v59 = vld [vmem:[%s5029_s4 + $0x28] sm:$0xff]  ;;  %v1611_v62 = vld [vmem:[%s5029_s4 + $0x30] sm:$0xff]  ;;  %s5045_s12 = smov 4   ;;  %p3317_p9 = scmp.ne.s32.totalorder %s3914_s13, 0 }
 0x483   : > { %1415 = vrot.lane.b32.xlu1 %v4241_v49, %s3946_s11  ;;  %1385 = vrot.lane.b32.xlu0 %v1009_v50, %s3947_s25  ;;  %v3655_v61 = vpack.c.bf16 %v1610_v59, %v1609_v58  ;;  %v1612_v63 = vld [vmem:[%s5029_s4 + $0x38] sm:$0xff]  ;;  %v4283_v2 = vld [vmem:[#allocation2 + $0x41] sm:$0xff]  ;;  %v989_v21 = vld [vmem:[#allocation2 + $0x10] sm:$0xff]  ;;  %vm1997_vm3 = vcmask (!%p3317_p9), 58368  }
 0x484   : > { %3664 = vmatprep.subr.bf16.mxu1 %v3647_v54  ;;  %3648 = vmatprep.subr.bf16.mxu0 %v3647_v54  ;;  %v1011_v0 = vld [vmem:[#allocation2 + $0x32] sm:$0xff]  ;;  %v3659_v1 = vpack.c.bf16 %v1612_v63, %v1611_v62  ;;  %v1613_v3 = vld [vmem:[%s5029_s4 + $0x40] sm:$0xff] }
 0x485   : > { %3666 = vmatpush3.bf16.msra.mxu1 %v3647_v54  ;;  %3650 = vmatpush3.bf16.msra.mxu0 %v3647_v54  ;;  %v1042_v4 = vld [vmem:[#allocation2 + $0x42] sm:$0xff]  ;;  %v4296_v5 = vld [vmem:[#allocation2 + $0x51] sm:$0xff] }
 0x486   : > { %3668 = vmatprep.subr.bf16.mxu1 %v3651_v57  ;;  %3652 = vmatprep.subr.bf16.mxu0 %v3651_v57  ;;  %v1013_v6 = vld [vmem:[#allocation2 + $0x52] sm:$0xff]  ;;  %v4304_v7 = vld [vmem:[#allocation2 + $0x61] sm:$0xff] }
 0x487   : > { %1455 = vrot.lane.b32.xlu1 %v1040_v51, %s3948_s30  ;;  %1453 = vrot.lane.b32.xlu0 %v1009_v50, %s3948_s30  ;;  %v1044_v8 = vld [vmem:[#allocation2 + $0x62] sm:$0xff]  ;;  %v4314_v9 = vld [vmem:[#allocation2 + $0x71] sm:$0xff] }
 0x488   : > { %v1015_v10 = vld [vmem:[#allocation2 + $0x72] sm:$0xff]  ;;  %v4322_v11 = vld [vmem:[#allocation2 + $0x81] sm:$0xff] }
 0x489   : > { %3670 = vmatpush3.bf16.msra.mxu1 %v3651_v57  ;;  %3654 = vmatpush3.bf16.msra.mxu0 %v3651_v57  ;;  %v1046_v12 = vld [vmem:[#allocation2 + $0x82] sm:$0xff]  ;;  %v4332_v13 = vld [vmem:[#allocation2 + $0x91] sm:$0xff] }
 0x48a   : > { %3672 = vmatprep.subr.bf16.mxu1 %v3655_v61  ;;  %3656 = vmatprep.subr.bf16.mxu0 %v3655_v61  ;;  %v1017_v14 = vld [vmem:[#allocation2 + $0x92] sm:$0xff]  ;;  %v4340_v15 = vld [vmem:[#allocation2 + $0xa1] sm:$0xff] }
 0x48b   : > { %1387 = vrot.lane.b32.xlu1 %v1040_v51, %s3947_s25  ;;  %1483 = vrot.lane.b32.xlu0 %v4241_v49, %s3949_s26  ;;  %v1048_v16 = vld [vmem:[#allocation2 + $0xa2] sm:$0xff]  ;;  %v4347_v17 = vld [vmem:[#allocation2 + $0xb1] sm:$0xff] }
 0x48c   : > { %v1078_v18 = vld [vmem:[#allocation2 + $0xb2] sm:$0xff]  ;;  %v998_v19 = vld [vmem:[#allocation2 + $0x1] sm:$0xff] }
 0x48d   : > { %3674 = vmatpush3.bf16.msra.mxu1 %v3655_v61  ;;  %3658 = vmatpush3.bf16.msra.mxu0 %v3655_v61  ;;  %v988_v20 = vld [vmem:[#allocation2] sm:$0xff]  ;;  %v1050_v25 = vld [vmem:[#allocation2 + $0x30] sm:$0xff] }
 0x48e   : > { %3676 = vmatprep.subr.bf16.mxu1 %v3659_v1  ;;  %3660 = vmatprep.subr.bf16.mxu0 %v3659_v1  ;;  %v1020_v22 = vld [vmem:[#allocation2 + $0x20] sm:$0xff]  ;;  %v1052_v50 = vld [vmem:[#allocation2 + $0x50] sm:$0xff] }
 0x48f   : > { %1523 = vrot.lane.b32.xlu1 %v1040_v51, %s3950_s21  ;;  %1485 = vrot.lane.b32.xlu0 %v4269_v60, %s3949_s26  ;;  %v1022_v35 = vld [vmem:[#allocation2 + $0x40] sm:$0xff] }
 0x491   : > { %3678 = vmatpush3.bf16.msra.mxu1 %v3659_v1  ;;  %3662 = vmatpush3.bf16.msra.mxu0 %v3659_v1 }
 0x492   : > { %3558 = vmatprep.subr.mxu1 %v1613_v3  ;;  %3525 = vmatprep.subr.mxu0 %v1613_v3 }
 0x493   : > { %1417 = vrot.lane.b32.xlu1 %v4269_v60, %s3946_s11  ;;  %1389 = vrot.lane.b32.xlu0 %v1011_v0, %s3947_s25 }
 0x495   : > { %3559 = vmatpush3.msra.mxu1 %v1613_v3  ;;  %3526 = vmatpush3.msra.mxu0 %v1613_v3 }
 0x497   : > { %1419 = vrot.lane.b32.xlu1 %v4283_v2, %s3946_s11  ;;  %1525 = vrot.lane.b32.xlu0 %v1011_v0, %s3950_s21 }
 0x49b   : > { %1459 = vrot.lane.b32.xlu1 %v1042_v4, %s3948_s30  ;;  %1457 = vrot.lane.b32.xlu0 %v1011_v0, %s3948_s30 }
 0x49f   : > { %1391 = vrot.lane.b32.xlu1 %v1042_v4, %s3947_s25  ;;  %1487 = vrot.lane.b32.xlu0 %v4283_v2, %s3949_s26 }
 0x4a3   : > { %1527 = vrot.lane.b32.xlu1 %v1042_v4, %s3950_s21  ;;  %1489 = vrot.lane.b32.xlu0 %v4296_v5, %s3949_s26 }
 0x4a7   : > { %1421 = vrot.lane.b32.xlu1 %v4296_v5, %s3946_s11  ;;  %1393 = vrot.lane.b32.xlu0 %v1013_v6, %s3947_s25 }
 0x4ab   : > { %1423 = vrot.lane.b32.xlu1 %v4304_v7, %s3946_s11  ;;  %1529 = vrot.lane.b32.xlu0 %v1013_v6, %s3950_s21 }
 0x4af   : > { %1463 = vrot.lane.b32.xlu1 %v1044_v8, %s3948_s30  ;;  %1461 = vrot.lane.b32.xlu0 %v1013_v6, %s3948_s30 }
 0x4b3   : > { %1395 = vrot.lane.b32.xlu1 %v1044_v8, %s3947_s25  ;;  %1491 = vrot.lane.b32.xlu0 %v4304_v7, %s3949_s26 }
 0x4b7   : > { %1531 = vrot.lane.b32.xlu1 %v1044_v8, %s3950_s21  ;;  %1493 = vrot.lane.b32.xlu0 %v4314_v9, %s3949_s26 }
 0x4bb   : > { %1425 = vrot.lane.b32.xlu1 %v4314_v9, %s3946_s11  ;;  %1397 = vrot.lane.b32.xlu0 %v1015_v10, %s3947_s25 }
 0x4bf   : > { %1427 = vrot.lane.b32.xlu1 %v4322_v11, %s3946_s11  ;;  %1533 = vrot.lane.b32.xlu0 %v1015_v10, %s3950_s21 }
 0x4c3   : > { %1467 = vrot.lane.b32.xlu1 %v1046_v12, %s3948_s30  ;;  %1465 = vrot.lane.b32.xlu0 %v1015_v10, %s3948_s30 }
 0x4c7   : > { %1399 = vrot.lane.b32.xlu1 %v1046_v12, %s3947_s25  ;;  %1495 = vrot.lane.b32.xlu0 %v4322_v11, %s3949_s26 }
 0x4cb   : > { %1535 = vrot.lane.b32.xlu1 %v1046_v12, %s3950_s21  ;;  %1497 = vrot.lane.b32.xlu0 %v4332_v13, %s3949_s26 }
 0x4cf   : > { %1429 = vrot.lane.b32.xlu1 %v4332_v13, %s3946_s11  ;;  %1401 = vrot.lane.b32.xlu0 %v1017_v14, %s3947_s25 }
 0x4d3   : > { %1431 = vrot.lane.b32.xlu1 %v4340_v15, %s3946_s11  ;;  %1537 = vrot.lane.b32.xlu0 %v1017_v14, %s3950_s21 }
 0x4d7   : > { %1471 = vrot.lane.b32.xlu1 %v1048_v16, %s3948_s30  ;;  %1469 = vrot.lane.b32.xlu0 %v1017_v14, %s3948_s30 }
 0x4db   : > { %1501 = vrot.lane.b32.xlu1 %v4347_v17, %s3949_s26  ;;  %1499 = vrot.lane.b32.xlu0 %v4340_v15, %s3949_s26  ;;  %s3952_s26 = smov 56  }
 0x4df   : > { %1541 = vrot.lane.b32.xlu1 %v1078_v18, %s3950_s21  ;;  %1539 = vrot.lane.b32.xlu0 %v1048_v16, %s3950_s21  ;;  %v1054_v16 = vld [vmem:[#allocation2 + $0x70] sm:$0xff] }
 0x4e3   : > { %1129 = vrot.lane.b32.xlu1 %v998_v19, %s3935_s22  ;;  %1089 = vrot.lane.b32.xlu0 %v988_v20, %s5044_s27 }
 0x4e7   : > { %1131 = vrot.lane.b32.xlu1 %v4236_v47, %s3935_s22  ;;  %1091 = vrot.lane.b32.xlu0 %v989_v21, %s5044_s27 }
 0x4eb   : > { %1171 = vrot.lane.b32.xlu1 %v1020_v22, %s3947_s25  ;;  %1169 = vrot.lane.b32.xlu0 %v989_v21, %s3947_s25 }
 0x4ef   : > { %1211 = vrot.lane.b32.xlu1 %v4241_v49, %s3951_s23  ;;  %1209 = vrot.lane.b32.xlu0 %v4236_v47, %s3951_s23 }
 0x4f1   : > { %v1414_v23 = vpop.permute.xlu1 %1413  ;;  %v1384_v24 = vpop.permute.xlu0 %1383 }
 0x4f2   : > { %v1553_v30 = vsel %vm405_vm0, %v998_v19, %v1384_v24 }
 0x4f3   : > { %1093 = vrot.lane.b32.xlu1 %v1020_v22, %s5044_s27  ;;  %1249 = vrot.lane.b32.xlu0 %v1020_v22, %s3948_s30  ;;  %v1563_v33 = vsel %vm1329_vm11, %v1553_v30, %v1414_v23 }
 0x4f5   : > { %v1416_v26 = vpop.permute.xlu1 %1415  ;;  %v1386_v27 = vpop.permute.xlu0 %1385 }
 0x4f6   : > { %v1554_v40 = vsel %vm405_vm0, %v4236_v47, %v1386_v27 }
 0x4f7   : > { %1251 = vrot.lane.b32.xlu1 %v1050_v25, %s3948_s30  ;;  %1133 = vrot.lane.b32.xlu0 %v4241_v49, %s3935_s22  ;;  %v1564_v43 = vsel %vm1329_vm11, %v1554_v40, %v1416_v26 }
 0x4f9   : > { %v1456_v28 = vpop.permute.xlu1 %1455  ;;  %v1454_v29 = vpop.permute.xlu0 %1453 }
 0x4fa   : > { %v1574_v34 = vsel %vm1573_vm12, %v1563_v33, %v1454_v29  ;;  %v1575_v44 = vsel %vm1573_vm12, %v1564_v43, %v1456_v28 }
 0x4fb   : > { %1095 = vrot.lane.b32.xlu1 %v1050_v25, %s5044_s27  ;;  %1289 = vrot.lane.b32.xlu0 %v4241_v49, %s3952_s26 }
 0x4fd   : > { %v1388_v31 = vpop.permute.xlu1 %1387  ;;  %v1484_v32 = vpop.permute.xlu0 %1483 }
 0x4fe   : > { %v1584_v36 = vsel %vm1351_vm13, %v1574_v34, %v1484_v32  ;;  %v1555_v55 = vsel %vm405_vm0, %v4241_v49, %v1388_v31  ;;  %v1024_v49 = vld [vmem:[#allocation2 + $0x60] sm:$0xff] }
 0x4ff   : > { %1173 = vrot.lane.b32.xlu1 %v1050_v25, %s3947_s25  ;;  %1135 = vrot.lane.b32.xlu0 %v4269_v60, %s3935_s22  ;;  %v1026_v31 = vld [vmem:[#allocation2 + $0x80] sm:$0xff] }
 0x501   : > { %v1524_v37 = vpop.permute.xlu1 %1523  ;;  %v1486_v38 = vpop.permute.xlu0 %1485 }
 0x502   : > { %v1595_v39 = vsel %vm1594_vm14, %v1584_v36, %v1524_v37  ;;  %v1585_v45 = vsel %vm1351_vm13, %v1575_v44, %v1486_v38 }
 0x503   : > { %3560 = vmatprep.mubr.msk.f32.mxu1 %vm1621_vm15, %v1595_v39  ;;  %1175 = vrot.lane.b32.xlu1 %v1022_v35, %s3947_s25 }
 0x504   : > { %1291 = vrot.lane.b32.xlu0 %v4269_v60, %s3952_s26 }
 0x505   : > { %v1418_v41 = vpop.permute.xlu1 %1417  ;;  %v1390_v42 = vpop.permute.xlu0 %1389 }
 0x506   : > { %v1565_v56 = vsel %vm1329_vm11, %v1555_v55, %v1418_v41  ;;  %v1556_v1 = vsel %vm405_vm0, %v4269_v60, %v1390_v42  ;;  %v1056_v42 = vld [vmem:[#allocation2 + $0x90] sm:$0xff] }
 0x507   : > { %1215 = vrot.lane.b32.xlu1 %v4283_v2, %s3951_s23 }
 0x508   : > { %1213 = vrot.lane.b32.xlu0 %v4269_v60, %s3951_s23 }
 0x509   : > { %v1420_v46 = vpop.permute.xlu1 %1419  ;;  %v1526_v48 = vpop.permute.xlu0 %1525 }
 0x50a   : > { %v1596_v47 = vsel %vm1594_vm14, %v1585_v45, %v1526_v48  ;;  %v1566_v3 = vsel %vm1329_vm11, %v1556_v1, %v1420_v46 }
 0x50b   : > { %3561 = vmatmul.mubr.msk.f32.vlgmr.msra.gmra.mrb[0].mxu1 %vm1621_vm15, %v1596_v47  ;;  %1097 = vrot.lane.b32.xlu1 %v1022_v35, %s5044_s27 }
 0x50c   : > { %1253 = vrot.lane.b32.xlu0 %v1022_v35, %s3948_s30 }
 0x50d   : > { %v1460_v51 = vpop.permute.xlu1 %1459  ;;  %v1458_v52 = vpop.permute.xlu0 %1457 }
 0x50e   : > { %v1576_v57 = vsel %vm1573_vm12, %v1565_v56, %v1458_v52  ;;  %v1577_v4 = vsel %vm1573_vm12, %v1566_v3, %v1460_v51  ;;  %v1058_v3 = vld [vmem:[#allocation2 + $0xb0] sm:$0xff] }
 0x50f   : > { %1255 = vrot.lane.b32.xlu1 %v1052_v50, %s3948_s30 }
 0x510   : > { %1137 = vrot.lane.b32.xlu0 %v4283_v2, %s3935_s22 }
 0x511   : > { %v1392_v53 = vpop.permute.xlu1 %1391  ;;  %v1488_v54 = vpop.permute.xlu0 %1487 }
 0x512   : > { %v1586_v58 = vsel %vm1351_vm13, %v1576_v57, %v1488_v54  ;;  %v1557_v20 = vsel %vm405_vm0, %v4283_v2, %v1392_v53 }
 0x513   : > { %1099 = vrot.lane.b32.xlu1 %v1052_v50, %s5044_s27 }
 0x514   : > { %1293 = vrot.lane.b32.xlu0 %v4283_v2, %s3952_s26 }
 0x515   : > { %v1528_v59 = vpop.permute.xlu1 %1527  ;;  %v1490_v61 = vpop.permute.xlu0 %1489 }
 0x516   : > { %v1597_v62 = vsel %vm1594_vm14, %v1586_v58, %v1528_v59  ;;  %v1587_v6 = vsel %vm1351_vm13, %v1577_v4, %v1490_v61 }
 0x517   : > { %3563 = vmatprep.mubr.msk.f32.mxu1 %vm1621_vm15, %v1597_v62  ;;  %1177 = vrot.lane.b32.xlu1 %v1052_v50, %s3947_s25 }
 0x518   : > { %1139 = vrot.lane.b32.xlu0 %v4296_v5, %s3935_s22 }
 0x519   : > { %v1422_v63 = vpop.permute.xlu1 %1421  ;;  %v1394_v0 = vpop.permute.xlu0 %1393 }
 0x51a   : > { %v1567_v21 = vsel %vm1329_vm11, %v1557_v20, %v1422_v63  ;;  %v1558_v28 = vsel %vm405_vm0, %v4296_v5, %v1394_v0 }
 0x51b   : > { %1179 = vrot.lane.b32.xlu1 %v1024_v49, %s3947_s25 }
 0x51c   : > { %1295 = vrot.lane.b32.xlu0 %v4296_v5, %s3952_s26 }
 0x51d   : > { %v1424_v8 = vpop.permute.xlu1 %1423  ;;  %v1530_v10 = vpop.permute.xlu0 %1529 }
 0x51e   : > { %v1598_v12 = vsel %vm1594_vm14, %v1587_v6, %v1530_v10  ;;  %v1568_v29 = vsel %vm1329_vm11, %v1558_v28, %v1424_v8 }
 0x51f   : > { %3564 = vmatmul.mubr.msk.f32.gmra.mrb[2].mxu1 %vm1621_vm15, %v1598_v12  ;;  %1219 = vrot.lane.b32.xlu1 %v4304_v7, %s3951_s23 }
 0x520   : > { %1217 = vrot.lane.b32.xlu0 %v4296_v5, %s3951_s23 }
 0x521   : > { %v1464_v60 = vpop.permute.xlu1 %1463  ;;  %v1462_v14 = vpop.permute.xlu0 %1461 }
 0x522   : > { %v1578_v22 = vsel %vm1573_vm12, %v1567_v21, %v1462_v14  ;;  %v1579_v30 = vsel %vm1573_vm12, %v1568_v29, %v1464_v60 }
 0x523   : > { %1101 = vrot.lane.b32.xlu1 %v1024_v49, %s5044_s27 }
 0x524   : > { %1257 = vrot.lane.b32.xlu0 %v1024_v49, %s3948_s30 }
 0x525   : > { %v1396_v18 = vpop.permute.xlu1 %1395  ;;  %v1492_v19 = vpop.permute.xlu0 %1491 }
 0x526   : > { %v1588_v23 = vsel %vm1351_vm13, %v1578_v22, %v1492_v19  ;;  %v1559_v39 = vsel %vm405_vm0, %v4304_v7, %v1396_v18 }
 0x527   : > { %1259 = vrot.lane.b32.xlu1 %v1054_v16, %s3948_s30 }
 0x528   : > { %1141 = vrot.lane.b32.xlu0 %v4304_v7, %s3935_s22 }
 0x529   : > { %v1532_v24 = vpop.permute.xlu1 %1531  ;;  %v1494_v25 = vpop.permute.xlu0 %1493 }
 0x52a   : > { %v1599_v26 = vsel %vm1594_vm14, %v1588_v23, %v1532_v24  ;;  %v1589_v32 = vsel %vm1351_vm13, %v1579_v30, %v1494_v25 }
 0x52b   : > { %3566 = vmatprep.mubr.msk.f32.mxu1 %vm1621_vm15, %v1599_v26  ;;  %1103 = vrot.lane.b32.xlu1 %v1054_v16, %s5044_s27 }
 0x52c   : > { %1297 = vrot.lane.b32.xlu0 %v4304_v7, %s3952_s26 }
 0x52d   : > { %v1426_v2 = vpop.permute.xlu1 %1425  ;;  %v1398_v27 = vpop.permute.xlu0 %1397 }
 0x52e   : > { %v1569_v40 = vsel %vm1329_vm11, %v1559_v39, %v1426_v2  ;;  %v1560_v47 = vsel %vm405_vm0, %v4314_v9, %v1398_v27 }
 0x52f   : > { %1181 = vrot.lane.b32.xlu1 %v1054_v16, %s3947_s25 }
 0x530   : > { %1143 = vrot.lane.b32.xlu0 %v4314_v9, %s3935_s22 }
 0x531   : > { %v1428_v33 = vpop.permute.xlu1 %1427  ;;  %v1534_v34 = vpop.permute.xlu0 %1533 }
 0x532   : > { %v1600_v35 = vsel %vm1594_vm14, %v1589_v32, %v1534_v34  ;;  %v1570_v50 = vsel %vm1329_vm11, %v1560_v47, %v1428_v33 }
 0x533   : > { %3567 = vmatmul.mubr.msk.f32.gmra.mrb[4].mxu1 %vm1621_vm15, %v1600_v35  ;;  %1183 = vrot.lane.b32.xlu1 %v1026_v31, %s3947_s25 }
 0x534   : > { %1299 = vrot.lane.b32.xlu0 %v4314_v9, %s3952_s26 }
 0x535   : > { %v1468_v5 = vpop.permute.xlu1 %1467  ;;  %v1466_v36 = vpop.permute.xlu0 %1465 }
 0x536   : > { %v1580_v41 = vsel %vm1573_vm12, %v1569_v40, %v1466_v36  ;;  %v1581_v51 = vsel %vm1573_vm12, %v1570_v50, %v1468_v5 }
 0x537   : > { %1223 = vrot.lane.b32.xlu1 %v4322_v11, %s3951_s23 }
 0x538   : > { %1221 = vrot.lane.b32.xlu0 %v4314_v9, %s3951_s23  ;;  %v1028_v9 = vld [vmem:[#allocation2 + $0xa0] sm:$0xff] }
 0x539   : > { %v1400_v37 = vpop.permute.xlu1 %1399  ;;  %v1496_v38 = vpop.permute.xlu0 %1495 }
 0x53a   : > { %v1590_v43 = vsel %vm1351_vm13, %v1580_v41, %v1496_v38  ;;  %v1561_v61 = vsel %vm405_vm0, %v4322_v11, %v1400_v37 }
 0x53b   : > { %1105 = vrot.lane.b32.xlu1 %v1026_v31, %s5044_s27 }
 0x53c   : > { %1261 = vrot.lane.b32.xlu0 %v1026_v31, %s3948_s30 }
 0x53d   : > { %v1536_v44 = vpop.permute.xlu1 %1535  ;;  %v1498_v45 = vpop.permute.xlu0 %1497 }
 0x53e   : > { %v1601_v46 = vsel %vm1594_vm14, %v1590_v43, %v1536_v44  ;;  %v1591_v52 = vsel %vm1351_vm13, %v1581_v51, %v1498_v45 }
 0x53f   : > { %3569 = vmatprep.mubr.msk.f32.mxu1 %vm1621_vm15, %v1601_v46  ;;  %1263 = vrot.lane.b32.xlu1 %v1056_v42, %s3948_s30 }
 0x540   : > { %1145 = vrot.lane.b32.xlu0 %v4322_v11, %s3935_s22 }
 0x541   : > { %v1430_v7 = vpop.permute.xlu1 %1429  ;;  %v1402_v48 = vpop.permute.xlu0 %1401 }
 0x542   : > { %v1562_v62 = vsel %vm405_vm0, %v4332_v13, %v1402_v48  ;;  %v1571_v49 = vsel %vm1329_vm11, %v1561_v61, %v1430_v7 }
 0x543   : > { %1107 = vrot.lane.b32.xlu1 %v1056_v42, %s5044_s27 }
 0x544   : > { %1301 = vrot.lane.b32.xlu0 %v4322_v11, %s3952_s26 }
 0x545   : > { %v1432_v53 = vpop.permute.xlu1 %1431  ;;  %v1538_v54 = vpop.permute.xlu0 %1537 }
 0x546   : > { %v1602_v55 = vsel %vm1594_vm14, %v1591_v52, %v1538_v54  ;;  %v1572_v63 = vsel %vm1329_vm11, %v1562_v62, %v1432_v53 }
 0x547   : > { %3570 = vmatmul.mubr.msk.f32.gmra.mrb[6].mxu1 %vm1621_vm15, %v1602_v55  ;;  %1185 = vrot.lane.b32.xlu1 %v1056_v42, %s3947_s25 }
 0x548   : > { %1147 = vrot.lane.b32.xlu0 %v4332_v13, %s3935_s22 }
 0x549   : > { %v1472_v56 = vpop.permute.xlu1 %1471  ;;  %v1470_v57 = vpop.permute.xlu0 %1469 }
 0x54a   : > { %v1583_v0 = vsel %vm1573_vm12, %v1572_v63, %v1472_v56  ;;  %v1582_v1 = vsel %vm1573_vm12, %v1571_v49, %v1470_v57 }
 0x54b   : > { %1187 = vrot.lane.b32.xlu1 %v1028_v9, %s3947_s25 }
 0x54c   : > { %1303 = vrot.lane.b32.xlu0 %v4332_v13, %s3952_s26 }
 0x54d   : > { %v1502_v58 = vpop.permute.xlu1 %1501  ;;  %v1500_v59 = vpop.permute.xlu0 %1499 }
 0x54e   : > { %v1593_v11 = vsel %vm1351_vm13, %v1583_v0, %v1502_v58  ;;  %v1592_v4 = vsel %vm1351_vm13, %v1582_v1, %v1500_v59 }
 0x54f   : > { %1227 = vrot.lane.b32.xlu1 %v4340_v15, %s3951_s23 }
 0x550   : > { %1225 = vrot.lane.b32.xlu0 %v4332_v13, %s3951_s23 }
 0x551   : > { %v1542_v6 = vpop.permute.xlu1 %1541  ;;  %v1540_v8 = vpop.permute.xlu0 %1539 }
 0x552   : > { %v1604_v10 = vsel %vm1594_vm14, %v1593_v11, %v1542_v6  ;;  %v1603_v12 = vsel %vm1594_vm14, %v1592_v4, %v1540_v8 }
 0x553   : > { %3572 = vmatprep.mubr.msk.f32.mxu1 %vm1621_vm15, %v1603_v12  ;;  %1267 = vrot.lane.b32.xlu1 %v1058_v3, %s3948_s30 }
 0x554   : > { %1265 = vrot.lane.b32.xlu0 %v1028_v9, %s3948_s30  ;;  %3573 = vmatmul.mubr.msk.f32.gmra.mrb[8].mxu1 %vm1621_vm15, %v1604_v10 }
 0x555   : > { %v1130_v13 = vpop.permute.xlu1 %1129  ;;  %v1090_v60 = vpop.permute.xlu0 %1089 }
 0x556   : > { %v1319_v26 = vsel %vm480_vm4, %v1090_v60, %v1130_v13 }
 0x557   : > { %1307 = vrot.lane.b32.xlu1 %v4347_v17, %s3952_s26 }
 0x558   : > { %1305 = vrot.lane.b32.xlu0 %v4340_v15, %s3952_s26 }
 0x559   : > { %v1132_v14 = vpop.permute.xlu1 %1131  ;;  %v1092_v16 = vpop.permute.xlu0 %1091 }
 0x55a   : > { %v1320_v32 = vsel %vm480_vm4, %v1092_v16, %v1132_v14 }
 0x55d   : > { %v1172_v18 = vpop.permute.xlu1 %1171  ;;  %v1170_v19 = vpop.permute.xlu0 %1169 }
 0x55e   : > { %v1330_v2 = vsel %vm1329_vm11, %v1319_v26, %v1170_v19  ;;  %v1331_v33 = vsel %vm1329_vm11, %v1320_v32, %v1172_v18 }
 0x561   : > { %v1212_v20 = vpop.permute.xlu1 %1211  ;;  %v1210_v21 = vpop.permute.xlu0 %1209 }
 0x562   : > { %v1341_v17 = vsel %vm1340_vm1, %v1330_v2, %v1210_v21  ;;  %v1342_v34 = vsel %vm1340_vm1, %v1331_v33, %v1212_v20 }
 0x565   : > { %v1094_v22 = vpop.permute.xlu1 %1093  ;;  %v1250_v23 = vpop.permute.xlu0 %1249 }
 0x566   : > { %v1352_v15 = vsel %vm1351_vm13, %v1341_v17, %v1250_v23 }
 0x569   : > { %v1252_v24 = vpop.permute.xlu1 %1251  ;;  %v1134_v25 = vpop.permute.xlu0 %1133 }
 0x56a   : > { %v1353_v5 = vsel %vm1351_vm13, %v1342_v34, %v1252_v24  ;;  %v1321_v44 = vsel %vm480_vm4, %v1094_v22, %v1134_v25 }
 0x56d   : > { %v1096_v27 = vpop.permute.xlu1 %1095  ;;  %v1290_v28 = vpop.permute.xlu0 %1289 }
 0x56e   : > { %v1363_v29 = vsel %vm1362_vm2, %v1352_v15, %v1290_v28 }
 0x56f   : > { %3527 = vmatprep.mubr.msk.f32.mxu0 %vm1621_vm15, %v1363_v29 }
 0x571   : > { %v1174_v30 = vpop.permute.xlu1 %1173  ;;  %v1136_v31 = vpop.permute.xlu0 %1135 }
 0x572   : > { %v1332_v45 = vsel %vm1329_vm11, %v1321_v44, %v1174_v30  ;;  %v1322_v53 = vsel %vm480_vm4, %v1096_v27, %v1136_v31 }
 0x575   : > { %v1176_v35 = vpop.permute.xlu1 %1175 }
 0x576   : > { %v1292_v36 = vpop.permute.xlu0 %1291  ;;  %v1333_v54 = vsel %vm1329_vm11, %v1322_v53, %v1176_v35 }
 0x577   : > { %v1364_v37 = vsel %vm1362_vm2, %v1353_v5, %v1292_v36 }
 0x578   : > { %3528 = vmatmul.mubr.msk.f32.vlgmr.msra.gmra.mrb[0].mxu0 %vm1621_vm15, %v1364_v37 }
 0x579   : > { %v1216_v38 = vpop.permute.xlu1 %1215 }
 0x57a   : > { %v1214_v39 = vpop.permute.xlu0 %1213  ;;  %v1344_v55 = vsel %vm1340_vm1, %v1333_v54, %v1216_v38 }
 0x57b   : > { %v1343_v46 = vsel %vm1340_vm1, %v1332_v45, %v1214_v39 }
 0x57d   : > { %v1098_v40 = vpop.permute.xlu1 %1097 }
 0x57e   : > { %v1254_v41 = vpop.permute.xlu0 %1253 }
 0x57f   : > { %v1354_v48 = vsel %vm1351_vm13, %v1343_v46, %v1254_v41 }
 0x581   : > { %v1256_v42 = vpop.permute.xlu1 %1255 }
 0x582   : > { %v1138_v43 = vpop.permute.xlu0 %1137  ;;  %v1355_v56 = vsel %vm1351_vm13, %v1344_v55, %v1256_v42 }
 0x583   : > { %v1323_v1 = vsel %vm480_vm4, %v1098_v40, %v1138_v43 }
 0x585   : > { %v1100_v7 = vpop.permute.xlu1 %1099 }
 0x586   : > { %v1294_v47 = vpop.permute.xlu0 %1293 }
 0x587   : > { %v1365_v50 = vsel %vm1362_vm2, %v1354_v48, %v1294_v47 }
 0x588   : > { %3530 = vmatprep.mubr.msk.f32.mxu0 %vm1621_vm15, %v1365_v50 }
 0x589   : > { %v1178_v51 = vpop.permute.xlu1 %1177 }
 0x58a   : > { %v1140_v52 = vpop.permute.xlu0 %1139  ;;  %v1334_v3 = vsel %vm1329_vm11, %v1323_v1, %v1178_v51 }
 0x58b   : > { %v1324_v60 = vsel %vm480_vm4, %v1100_v7, %v1140_v52 }
 0x58d   : > { %v1180_v9 = vpop.permute.xlu1 %1179 }
 0x58e   : > { %v1296_v57 = vpop.permute.xlu0 %1295  ;;  %v1335_v14 = vsel %vm1329_vm11, %v1324_v60, %v1180_v9  ;;  %v4576_v9 = vld [vmem:[%s5030_s5] ss:$0 sm:$0xff] }
 0x58f   : > { %v1366_v58 = vsel %vm1362_vm2, %v1355_v56, %v1296_v57 }
 0x590   : > { %3531 = vmatmul.mubr.msk.f32.gmra.mrb[2].mxu0 %vm1621_vm15, %v1366_v58 }
 0x591   : > { %v1220_v59 = vpop.permute.xlu1 %1219 }
 0x592   : > { %v1218_v61 = vpop.permute.xlu0 %1217  ;;  %v1346_v16 = vsel %vm1340_vm1, %v1335_v14, %v1220_v59 }
 0x593   : > { %v1345_v11 = vsel %vm1340_vm1, %v1334_v3, %v1218_v61 }
 0x595   : > { %v1102_v62 = vpop.permute.xlu1 %1101 }
 0x596   : > { %v1258_v49 = vpop.permute.xlu0 %1257 }
 0x597   : > { %v1356_v6 = vsel %vm1351_vm13, %v1345_v11, %v1258_v49 }
 0x599   : > { %v1260_v63 = vpop.permute.xlu1 %1259 }
 0x59a   : > { %v1142_v0 = vpop.permute.xlu0 %1141  ;;  %v1357_v19 = vsel %vm1351_vm13, %v1346_v16, %v1260_v63 }
 0x59b   : > { %v1325_v17 = vsel %vm480_vm4, %v1102_v62, %v1142_v0 }
 0x59d   : > { %v1104_v4 = vpop.permute.xlu1 %1103 }
 0x59e   : > { %v1298_v8 = vpop.permute.xlu0 %1297 }
 0x59f   : > { %v1367_v10 = vsel %vm1362_vm2, %v1356_v6, %v1298_v8 }
 0x5a0   : > { %3533 = vmatprep.mubr.msk.f32.mxu0 %vm1621_vm15, %v1367_v10 }
 0x5a1   : > { %v1182_v12 = vpop.permute.xlu1 %1181 }
 0x5a2   : > { %v1144_v13 = vpop.permute.xlu0 %1143  ;;  %v1336_v15 = vsel %vm1329_vm11, %v1325_v17, %v1182_v12 }
 0x5a3   : > { %v1326_v34 = vsel %vm480_vm4, %v1104_v4, %v1144_v13 }
 0x5a5   : > { %v1184_v18 = vpop.permute.xlu1 %1183 }
 0x5a6   : > { %v1300_v20 = vpop.permute.xlu0 %1299  ;;  %v1337_v35 = vsel %vm1329_vm11, %v1326_v34, %v1184_v18 }
 0x5a7   : > { %v1368_v21 = vsel %vm1362_vm2, %v1357_v19, %v1300_v20 }
 0x5a8   : > { %3534 = vmatmul.mubr.msk.f32.gmra.mrb[4].mxu0 %vm1621_vm15, %v1368_v21 }
 0x5a9   : > { %v1224_v22 = vpop.permute.xlu1 %1223 }
 0x5aa   : > { %v1222_v23 = vpop.permute.xlu0 %1221  ;;  %v1348_v5 = vsel %vm1340_vm1, %v1337_v35, %v1224_v22 }
 0x5ab   : > { %v1347_v27 = vsel %vm1340_vm1, %v1336_v15, %v1222_v23 }
 0x5ad   : > { %v1106_v24 = vpop.permute.xlu1 %1105 }
 0x5ae   : > { %v1262_v25 = vpop.permute.xlu0 %1261 }
 0x5af   : > { %v1358_v29 = vsel %vm1351_vm13, %v1347_v27, %v1262_v25 }
 0x5b1   : > { %v1264_v26 = vpop.permute.xlu1 %1263 }
 0x5b2   : > { %v1146_v2 = vpop.permute.xlu0 %1145  ;;  %v1359_v37 = vsel %vm1351_vm13, %v1348_v5, %v1264_v26 }
 0x5b3   : > { %v1327_v45 = vsel %vm480_vm4, %v1106_v24, %v1146_v2 }
 0x5b5   : > { %v1108_v28 = vpop.permute.xlu1 %1107 }
 0x5b6   : > { %v1302_v30 = vpop.permute.xlu0 %1301 }
 0x5b7   : > { %v1369_v31 = vsel %vm1362_vm2, %v1358_v29, %v1302_v30 }
 0x5b8   : > { %3536 = vmatprep.mubr.msk.f32.mxu0 %vm1621_vm15, %v1369_v31 }
 0x5b9   : > { %v1186_v32 = vpop.permute.xlu1 %1185 }
 0x5ba   : > { %v1148_v33 = vpop.permute.xlu0 %1147  ;;  %v1338_v7 = vsel %vm1329_vm11, %v1327_v45, %v1186_v32 }
 0x5bb   : > { %v1328_v43 = vsel %vm480_vm4, %v1108_v28, %v1148_v33 }
 0x5bd   : > { %v1188_v36 = vpop.permute.xlu1 %1187 }
 0x5be   : > { %v1304_v38 = vpop.permute.xlu0 %1303  ;;  %v1339_v46 = vsel %vm1329_vm11, %v1328_v43, %v1188_v36 }
 0x5bf   : > { %v1370_v39 = vsel %vm1362_vm2, %v1359_v37, %v1304_v38 }
 0x5c0   : > { %3537 = vmatmul.mubr.msk.f32.gmra.mrb[6].mxu0 %vm1621_vm15, %v1370_v39 }
 0x5c1   : > { %v1228_v40 = vpop.permute.xlu1 %1227 }
 0x5c2   : > { %v1226_v41 = vpop.permute.xlu0 %1225  ;;  %v1350_v48 = vsel %vm1340_vm1, %v1339_v46, %v1228_v40 }
 0x5c3   : > { %v1349_v47 = vsel %vm1340_vm1, %v1338_v7, %v1226_v41 }
 0x5c5   : > { %v1268_v42 = vpop.permute.xlu1 %1267 }
 0x5c6   : > { %v1266_v44 = vpop.permute.xlu0 %1265  ;;  %v1361_v50 = vsel %vm1351_vm13, %v1350_v48, %v1268_v42 }
 0x5c7   : > { %v1360_v52 = vsel %vm1351_vm13, %v1349_v47, %v1266_v44 }
 0x5c9   : > { %v1308_v51 = vpop.permute.xlu1 %1307 }
 0x5ca   : > { %v1372_v53 = vsel %vm1362_vm2, %v1361_v50, %v1308_v51  ;;  %v1306_v54 = vpop.permute.xlu0 %1305 }
 0x5cb   : > { %v1371_v55 = vsel %vm1362_vm2, %v1360_v52, %v1306_v54 }
 0x5cc   : > { %3539 = vmatprep.mubr.msk.f32.mxu0 %vm1621_vm15, %v1371_v55 }
 0x5cd   : > { %3540 = vmatmul.mubr.msk.f32.gmra.mrb[8].mxu0 %vm1621_vm15, %v1372_v53 }
 0x5de   : > { %v3562_v56 = vpop.f32.mrb[0].mxu1 }
 0x5df   : > { %v1869_v57 = vadd.f32 %v3562_v56, %v4576_v9  ;;  %v1863_v58 = vpop.f32.mrb[1].mxu1 }
 0x5e0   : > { %v1864_v59 = vadd.f32 %v4576_v9, %v1863_v58 }
 0x5e1   : > { %v1933_v61 = vmax.f32 %v1869_v57, 0.0 }
 0x5e2   : > { %v1932_v62 = vmax.f32 %v1864_v59, 0.0 }
 0x5e3   : > { %1954 = vrot.lane.b32.xlu1 %v1933_v61, %s5045_s12 }
 0x5e4   : > { %1952 = vrot.lane.b32.xlu0 %v1932_v62, %s5045_s12 }
 0x5f2   : > { %v3565_v49 = vpop.f32.mrb[2].mxu1 }
 0x5f3   : > { %v1879_v63 = vadd.f32 %v3565_v49, %v4576_v9  ;;  %v1873_v0 = vpop.f32.mrb[3].mxu1 }
 0x5f4   : > { %v1874_v1 = vadd.f32 %v4576_v9, %v1873_v0 }
 0x5f5   : > { %v1935_v3 = vmax.f32 %v1879_v63, 0.0  ;;  %v3953_v63 = vmov (!%p3317_p9), 0.0  }
 0x5f6   : > { %v1934_v11 = vmax.f32 %v1874_v1, 0.0 }
 0x5f7   : > { %1958 = vrot.lane.b32.xlu1 %v1935_v3, %s5045_s12 }
 0x5f8   : > { %1956 = vrot.lane.b32.xlu0 %v1934_v11, %s5045_s12 }
 0x606   : > { %v3568_v4 = vpop.f32.mrb[4].mxu1 }
 0x607   : > { %v1889_v6 = vadd.f32 %v3568_v4, %v4576_v9  ;;  %v1883_v8 = vpop.f32.mrb[5].mxu1 }
 0x608   : > { %v1884_v10 = vadd.f32 %v4576_v9, %v1883_v8 }
 0x609   : > { %v1937_v12 = vmax.f32 %v1889_v6, 0.0 }
 0x60a   : > { %v1936_v13 = vmax.f32 %v1884_v10, 0.0 }
 0x60b   : > { %1962 = vrot.lane.b32.xlu1 %v1937_v12, %s5045_s12 }
 0x60c   : > { %1960 = vrot.lane.b32.xlu0 %v1936_v13, %s5045_s12 }
 0x61a   : > { %v3571_v60 = vpop.f32.mrb[6].mxu1 }
 0x61b   : > { %v1899_v14 = vadd.f32 %v3571_v60, %v4576_v9  ;;  %v1893_v16 = vpop.f32.mrb[7].mxu1 }
 0x61c   : > { %v1894_v18 = vadd.f32 %v4576_v9, %v1893_v16 }
 0x61d   : > { %v1939_v19 = vmax.f32 %v1899_v14, 0.0 }
 0x61e   : > { %v1938_v20 = vmax.f32 %v1894_v18, 0.0 }
 0x61f   : > { %1966 = vrot.lane.b32.xlu1 %v1939_v19, %s5045_s12 }
 0x620   : > { %1964 = vrot.lane.b32.xlu0 %v1938_v20, %s5045_s12 }
 0x627   : > { %v3574_v21 = vpop.f32.mrb[8].mxu1 }
 0x628   : > { %v1909_v22 = vadd.f32 %v3574_v21, %v4576_v9  ;;  %v1903_v23 = vpop.f32.mrb[9].mxu1 }
 0x629   : > { %v1904_v24 = vadd.f32 %v4576_v9, %v1903_v23 }
 0x62a   : > { %v1941_v25 = vmax.f32 %v1909_v22, 0.0 }
 0x62b   : > { %v1940_v26 = vmax.f32 %v1904_v24, 0.0 }
 0x62c   : > { %1970 = vrot.lane.b32.xlu1 %v1941_v25, %s5045_s12 }
 0x62d   : > { %1968 = vrot.lane.b32.xlu0 %v1940_v26, %s5045_s12 }
 0x64b   : > { %v3529_v2 = vpop.f32.mrb[0].mxu0 }
 0x64c   : > { %v1724_v17 = vadd.f32 %v3529_v2, %v4576_v9  ;;  %v1718_v15 = vpop.f32.mrb[1].mxu0 }
 0x64d   : > { %v1719_v27 = vadd.f32 %v4576_v9, %v1718_v15 }
 0x64e   : > { %v1913_v28 = vmax.f32 %v1724_v17, 0.0 }
 0x64f   : > { %v1912_v29 = vmax.f32 %v1719_v27, 0.0 }
 0x650   : > { %1923 = vst.msk [vmem:[#allocation3 + $0x11] sm:$0xff] %vm605_vm5, %v1913_v28 }
 0x651   : > { %1922 = vst.msk [vmem:[#allocation3 + $0x1] sm:$0xff] %vm605_vm5, %v1912_v29 }
 0x655   : > { %v1955_v30 = vpop.permute.xlu1 %1954 }
 0x656   : > { %1983 = vst.msk [vmem:[#allocation3 + $0x11] sm:$0xff] %vm687_vm7, %v1955_v30  ;;  %v1953_v31 = vpop.permute.xlu0 %1952 }
 0x657   : > { %1982 = vst.msk [vmem:[#allocation3 + $0x1] sm:$0xff] %vm687_vm7, %v1953_v31 }
 0x658   : > { %1996 = vst.msk [vmem:[#allocation3] sm:$0xff] (!%p3317_p9), %vm480_vm4, %v3953_v63 }
 0x659   : > { %1998 = vst.msk [vmem:[#allocation3 + $0x8] sm:$0x3] (!%p3317_p9), %vm1997_vm3, %v3953_v63 }
 0x663   : > { %v3532_v32 = vpop.f32.mrb[2].mxu0 }
 0x664   : > { %v1734_v33 = vadd.f32 %v3532_v32, %v4576_v9  ;;  %v1728_v34 = vpop.f32.mrb[3].mxu0 }
 0x665   : > { %v1729_v35 = vadd.f32 %v4576_v9, %v1728_v34 }
 0x666   : > { %v1915_v5 = vmax.f32 %v1734_v33, 0.0 }
 0x667   : > { %v1914_v36 = vmax.f32 %v1729_v35, 0.0 }
 0x668   : > { %1925 = vst.msk [vmem:[#allocation3 + $0x31] sm:$0xff] %vm605_vm5, %v1915_v5 }
 0x669   : > { %1924 = vst.msk [vmem:[#allocation3 + $0x21] sm:$0xff] %vm605_vm5, %v1914_v36  ;;  %v1959_v37 = vpop.permute.xlu1 %1958 }
 0x66a   : > { %1985 = vst.msk [vmem:[#allocation3 + $0x31] sm:$0xff] %vm687_vm7, %v1959_v37  ;;  %v1957_v38 = vpop.permute.xlu0 %1956 }
 0x66b   : > { %1984 = vst.msk [vmem:[#allocation3 + $0x21] sm:$0xff] %vm687_vm7, %v1957_v38 }
 0x67b   : > { %v3535_v39 = vpop.f32.mrb[4].mxu0 }
 0x67c   : > { %v1744_v40 = vadd.f32 %v3535_v39, %v4576_v9  ;;  %v1738_v41 = vpop.f32.mrb[5].mxu0 }
 0x67d   : > { %v1739_v42 = vadd.f32 %v4576_v9, %v1738_v41  ;;  %v1963_v45 = vpop.permute.xlu1 %1962 }
 0x67e   : > { %v1917_v43 = vmax.f32 %v1744_v40, 0.0  ;;  %v1961_v46 = vpop.permute.xlu0 %1960 }
 0x67f   : > { %v1916_v44 = vmax.f32 %v1739_v42, 0.0 }
 0x680   : > { %1927 = vst.msk [vmem:[#allocation3 + $0x51] sm:$0xff] %vm605_vm5, %v1917_v43 }
 0x681   : > { %1926 = vst.msk [vmem:[#allocation3 + $0x41] sm:$0xff] %vm605_vm5, %v1916_v44 }
 0x682   : > { %1987 = vst.msk [vmem:[#allocation3 + $0x51] sm:$0xff] %vm687_vm7, %v1963_v45  ;;  %1986 = vst.msk [vmem:[#allocation3 + $0x41] sm:$0xff] %vm687_vm7, %v1961_v46 }
 0x691   : > { %v1967_v53 = vpop.permute.xlu1 %1966 }
 0x692   : > { %v1965_v54 = vpop.permute.xlu0 %1964 }
 0x693   : > { %v3538_v7 = vpop.f32.mrb[6].mxu0 }
 0x694   : > { %v1754_v48 = vadd.f32 %v3538_v7, %v4576_v9  ;;  %v1748_v47 = vpop.f32.mrb[7].mxu0 }
 0x695   : > { %v1749_v50 = vadd.f32 %v4576_v9, %v1748_v47 }
 0x696   : > { %v1919_v51 = vmax.f32 %v1754_v48, 0.0 }
 0x697   : > { %v1918_v52 = vmax.f32 %v1749_v50, 0.0 }
 0x698   : > { %1929 = vst.msk [vmem:[#allocation3 + $0x71] sm:$0xff] %vm605_vm5, %v1919_v51 }
 0x699   : > { %1989 = vst.msk [vmem:[#allocation3 + $0x71] sm:$0xff] %vm687_vm7, %v1967_v53 }
 0x69a   : > { %1928 = vst.msk [vmem:[#allocation3 + $0x61] sm:$0xff] %vm605_vm5, %v1918_v52 }
 0x69b   : > { %1988 = vst.msk [vmem:[#allocation3 + $0x61] sm:$0xff] %vm687_vm7, %v1965_v54 }
 0x69e   : > { %v1971_v62 = vpop.permute.xlu1 %1970 }
 0x69f   : > { %v1969_v49 = vpop.permute.xlu0 %1968 }
 0x6a0   : > { %v3541_v55 = vpop.f32.mrb[8].mxu0 }
 0x6a1   : > { %v1764_v56 = vadd.f32 %v3541_v55, %v4576_v9  ;;  %v1758_v57 = vpop.f32.mrb[9].mxu0 }
 0x6a2   : > { %v1759_v58 = vadd.f32 %v4576_v9, %v1758_v57  ;;  %1995 = sbr.rel (%p3317_p9) target bundleno = 1705 (0x6a9), region = 72 }
 0x6a3   : > { %v1921_v59 = vmax.f32 %v1764_v56, 0.0 }
 0x6a4   : > { %v1920_v61 = vmax.f32 %v1759_v58, 0.0 }
 0x6a5   : > { %1931 = vst.msk [vmem:[#allocation3 + $0x91] sm:$0xff] %vm605_vm5, %v1921_v59 }
 0x6a6   : > { %1991 = vst.msk [vmem:[#allocation3 + $0x91] sm:$0xff] %vm687_vm7, %v1971_v62 }
 0x6a7   : > { %1930 = vst.msk [vmem:[#allocation3 + $0x81] sm:$0xff] %vm605_vm5, %v1920_v61 }
 0x6a8   : > { %1990 = vst.msk [vmem:[#allocation3 + $0x81] sm:$0xff] %vm687_vm7, %v1969_v49 }
 0x6a9 PF: > { %p3318_p10 = scmp.ne.s32.totalorder %s3914_s13, 1 }
 0x6aa   : > { %vm2005_vm6 = vcmask (!%p3318_p10), 58368   ;;  %v3954_v9 = vmov (!%p3318_p10), 0.0  }
 0x6ab   : > { %2002 = sbr.rel (%p3318_p10) target bundleno = 1714 (0x6b2), region = 76  ;;  %2004 = vst.msk [vmem:[#allocation3 + $0x90] sm:$0xff] (!%p3318_p10), %vm480_vm4, %v3954_v9 }
 0x6ac   : > { %2006 = vst.msk [vmem:[#allocation3 + $0x98] sm:$0x3] (!%p3318_p10), %vm2005_vm6, %v3954_v9 }
 0x6b2 PF: > { %v4632_v0 = vld [vmem:[#allocation3 + $0x11] sm:$0xff]  ;;  %v2023_v1 = vld [vmem:[#allocation3 + $0x2] sm:$0xff]  ;;  %s3955_s28 = smov 12   ;;  %s3956_s13 = smov 20   ;;  %vm2537_vm7 = vcmask 1043456   ;;  %vm2281_vm8 = vcmask 97280  }
 0x6b3   : > { %2347 = vrot.lane.b32.xlu1 %v4632_v0, %s3955_s28  ;;  %2323 = vrot.lane.b32.xlu0 %v2023_v1, %s3935_s22  ;;  %v4637_v3 = vld [vmem:[#allocation3 + $0x21] sm:$0xff]  ;;  %v2024_v11 = vld [vmem:[#allocation3 + $0x12] sm:$0xff]  ;;  %s3958_s24 = smov 28   ;;  %vm2475_vm9 = vcmask 162816   ;;  %vm2512_vm10 = vcmask 293888   ;;  %vm2306_vm12 = vcmask 228352  }
 0x6b4   : > { %v2049_v4 = vld [vmem:[#allocation3 + $0x22] sm:$0xff]  ;;  %v2502_v10 = vld [vmem:[%s5031_s6 + $0x10] sm:$0xff]  ;;  %v2503_v13 = vld [vmem:[%s5031_s6 + $0x18] sm:$0xff] }
 0x6b5   : > { %v2500_v6 = vld [vmem:[%s5031_s6] sm:$0xff]  ;;  %v2501_v8 = vld [vmem:[%s5031_s6 + $0x8] sm:$0xff]  ;;  %v3683_v60 = vpack.c.bf16 %v2503_v13, %v2502_v10  ;;  %v4659_v14 = vld [vmem:[#allocation3 + $0x31] sm:$0xff] }
 0x6b6   : > { %v3679_v12 = vpack.c.bf16 %v2501_v8, %v2500_v6  ;;  %v2504_v16 = vld [vmem:[%s5031_s6 + $0x20] sm:$0xf]  ;;  %v2026_v18 = vld [vmem:[#allocation3 + $0x32] sm:$0xff] }
 0x6b7   : > { %2349 = vrot.lane.b32.xlu1 %v4637_v3, %s3955_s28  ;;  %2325 = vrot.lane.b32.xlu0 %v2024_v11, %s3935_s22  ;;  %v4670_v19 = vld [vmem:[#allocation3 + $0x41] sm:$0xff]  ;;  %v4680_v21 = vld [vmem:[#allocation3 + $0x51] sm:$0xff] }
 0x6b8   : > { %3688 = vmatprep.subr.bf16.mxu1 %v3679_v12  ;;  %3680 = vmatprep.subr.bf16.mxu0 %v3679_v12  ;;  %v2051_v20 = vld [vmem:[#allocation3 + $0x42] sm:$0xff]  ;;  %v2028_v22 = vld [vmem:[#allocation3 + $0x52] sm:$0xff] }
 0x6b9   : > { %3690 = vmatpush3.bf16.msra.mxu1 %v3679_v12  ;;  %3682 = vmatpush3.bf16.msra.mxu0 %v3679_v12  ;;  %v4688_v23 = vld [vmem:[#allocation3 + $0x61] sm:$0xff]  ;;  %v4703_v26 = vld [vmem:[#allocation3 + $0x71] sm:$0xff] }
 0x6ba   : > { %3692 = vmatprep.subr.bf16.mxu1 %v3683_v60  ;;  %3684 = vmatprep.subr.bf16.mxu0 %v3683_v60  ;;  %v2053_v24 = vld [vmem:[#allocation3 + $0x62] sm:$0xff]  ;;  %v2030_v2 = vld [vmem:[#allocation3 + $0x72] sm:$0xff] }
 0x6bb   : > { %2381 = vrot.lane.b32.xlu1 %v2049_v4, %s3956_s13  ;;  %2379 = vrot.lane.b32.xlu0 %v2024_v11, %s3956_s13  ;;  %v4701_v25 = vld [vmem:[%s5033_s8] sm:$0xff]  ;;  %v4720_v27 = vld [vmem:[#allocation3 + $0x91] sm:$0xff] }
 0x6bc   : > { %v4713_v17 = vld [vmem:[#allocation3 + $0x81] sm:$0xff]  ;;  %v2080_v28 = vld [vmem:[#allocation3 + $0x92] sm:$0xff] }
 0x6bd   : > { %3694 = vmatpush3.bf16.msra.mxu1 %v3683_v60  ;;  %3686 = vmatpush3.bf16.msra.mxu0 %v3683_v60  ;;  %v2055_v15 = vld [vmem:[#allocation3 + $0x82] sm:$0xff]  ;;  %v4728_v29 = vld [vmem:[#allocation2 + $0x31] sm:$0xff] }
 0x6be   : > { %3605 = vmatprep.subr.msk.mxu1 %vm2537_vm7, %v2504_v16  ;;  %3583 = vmatprep.subr.msk.mxu0 %vm2537_vm7, %v2504_v16  ;;  %v4730_v30 = vld [vmem:[#allocation2 + $0x21] sm:$0xff]  ;;  %v4736_v31 = vld [vmem:[#allocation2 + $0x51] sm:$0xff] }
 0x6bf   : > { %2327 = vrot.lane.b32.xlu1 %v2049_v4, %s3935_s22  ;;  %2403 = vrot.lane.b32.xlu0 %v4637_v3, %s3946_s11  ;;  %v4738_v32 = vld [vmem:[#allocation2 + $0x41] sm:$0xff]  ;;  %v4744_v33 = vld [vmem:[#allocation2 + $0x71] sm:$0xff] }
 0x6c0   : > { %v4746_v34 = vld [vmem:[#allocation2 + $0x61] sm:$0xff]  ;;  %v4752_v35 = vld [vmem:[#allocation2 + $0x91] sm:$0xff] }
 0x6c1   : > { %3606 = vmatpush3.msk.msra.mxu1 %vm2537_vm7, %v2504_v16  ;;  %3584 = vmatpush3.msk.msra.mxu0 %vm2537_vm7, %v2504_v16  ;;  %v4754_v5 = vld [vmem:[#allocation2 + $0x81] sm:$0xff]  ;;  %v2008_v38 = vld [vmem:[#allocation3 + $0x10] sm:$0xff] }
 0x6c2   : > { %3633 = vmatprep.subr.mxu1 %v4701_v25  ;;  %3619 = vmatprep.subr.mxu0 %v4701_v25  ;;  %v2015_v36 = vld [vmem:[#allocation3 + $0x1] sm:$0xff]  ;;  %v2058_v40 = vld [vmem:[#allocation3 + $0x30] sm:$0xff] }
 0x6c3   : > { %2435 = vrot.lane.b32.xlu1 %v2049_v4, %s3951_s23  ;;  %2405 = vrot.lane.b32.xlu0 %v4659_v14, %s3946_s11  ;;  %v2007_v37 = vld [vmem:[#allocation3] sm:$0xff]  ;;  %v2060_v49 = vld [vmem:[#allocation3 + $0x50] sm:$0xff] }
 0x6c4   : > { %v2033_v39 = vld [vmem:[#allocation3 + $0x20] sm:$0xff] }
 0x6c5   : > { %v2035_v48 = vld [vmem:[#allocation3 + $0x40] sm:$0xff] }
 0x6c6   : > { %v2037_v60 = vld [vmem:[#allocation3 + $0x60] sm:$0xff] }
 0x6c7   : > { %2351 = vrot.lane.b32.xlu1 %v4659_v14, %s3955_s28  ;;  %2329 = vrot.lane.b32.xlu0 %v2026_v18, %s3935_s22 }
 0x6cb   : > { %2353 = vrot.lane.b32.xlu1 %v4670_v19, %s3955_s28  ;;  %2437 = vrot.lane.b32.xlu0 %v2026_v18, %s3951_s23 }
 0x6cf   : > { %2385 = vrot.lane.b32.xlu1 %v2051_v20, %s3956_s13  ;;  %2383 = vrot.lane.b32.xlu0 %v2026_v18, %s3956_s13 }
 0x6d3   : > { %2331 = vrot.lane.b32.xlu1 %v2051_v20, %s3935_s22  ;;  %2407 = vrot.lane.b32.xlu0 %v4670_v19, %s3946_s11 }
 0x6d7   : > { %2439 = vrot.lane.b32.xlu1 %v2051_v20, %s3951_s23  ;;  %2409 = vrot.lane.b32.xlu0 %v4680_v21, %s3946_s11 }
 0x6db   : > { %2355 = vrot.lane.b32.xlu1 %v4680_v21, %s3955_s28  ;;  %2333 = vrot.lane.b32.xlu0 %v2028_v22, %s3935_s22 }
 0x6df   : > { %2357 = vrot.lane.b32.xlu1 %v4688_v23, %s3955_s28  ;;  %2441 = vrot.lane.b32.xlu0 %v2028_v22, %s3951_s23 }
 0x6e3   : > { %2389 = vrot.lane.b32.xlu1 %v2053_v24, %s3956_s13  ;;  %2387 = vrot.lane.b32.xlu0 %v2028_v22, %s3956_s13 }
 0x6e7   : > { %2335 = vrot.lane.b32.xlu1 %v2053_v24, %s3935_s22  ;;  %2411 = vrot.lane.b32.xlu0 %v4688_v23, %s3946_s11 }
 0x6eb   : > { %2443 = vrot.lane.b32.xlu1 %v2053_v24, %s3951_s23  ;;  %2413 = vrot.lane.b32.xlu0 %v4703_v26, %s3946_s11 }
 0x6ef   : > { %2359 = vrot.lane.b32.xlu1 %v4703_v26, %s3955_s28  ;;  %2337 = vrot.lane.b32.xlu0 %v2030_v2, %s3935_s22 }
 0x6f3   : > { %2361 = vrot.lane.b32.xlu1 %v4713_v17, %s3955_s28  ;;  %2445 = vrot.lane.b32.xlu0 %v2030_v2, %s3951_s23  ;;  %s5046_s28 = smov 120  }
 0x6f7   : > { %2393 = vrot.lane.b32.xlu1 %v2055_v15, %s3956_s13  ;;  %2391 = vrot.lane.b32.xlu0 %v2030_v2, %s3956_s13 }
 0x6fb   : > { %2417 = vrot.lane.b32.xlu1 %v4720_v27, %s3946_s11  ;;  %2415 = vrot.lane.b32.xlu0 %v4713_v17, %s3946_s11  ;;  %s5047_s11 = smov 4  }
 0x6ff   : > { %2449 = vrot.lane.b32.xlu1 %v2080_v28, %s3951_s23  ;;  %2447 = vrot.lane.b32.xlu0 %v2055_v15, %s3951_s23  ;;  %s3957_s23 = smov 124  }
 0x703   : > { %2922 = vrot.lane.b32.xlu1 %v4728_v29, %s5046_s28  ;;  %2920 = vrot.lane.b32.xlu0 %v4730_v30, %s5046_s28 }
 0x707   : > { %2926 = vrot.lane.b32.xlu1 %v4736_v31, %s5046_s28  ;;  %2924 = vrot.lane.b32.xlu0 %v4738_v32, %s5046_s28 }
 0x70b   : > { %2930 = vrot.lane.b32.xlu1 %v4744_v33, %s5046_s28  ;;  %2928 = vrot.lane.b32.xlu0 %v4746_v34, %s5046_s28 }
 0x70f   : > { %2934 = vrot.lane.b32.xlu1 %v4752_v35, %s5046_s28  ;;  %2932 = vrot.lane.b32.xlu0 %v4754_v5, %s5046_s28 }
 0x713   : > { %2121 = vrot.lane.b32.xlu1 %v2015_v36, %s5047_s11  ;;  %2089 = vrot.lane.b32.xlu0 %v2007_v37, %s3957_s23 }
 0x717   : > { %2123 = vrot.lane.b32.xlu1 %v4632_v0, %s5047_s11  ;;  %2091 = vrot.lane.b32.xlu0 %v2008_v38, %s3957_s23 }
 0x71b   : > { %2155 = vrot.lane.b32.xlu1 %v2033_v39, %s3935_s22  ;;  %2153 = vrot.lane.b32.xlu0 %v2008_v38, %s3935_s22 }
 0x71f   : > { %2187 = vrot.lane.b32.xlu1 %v4637_v3, %s3947_s25  ;;  %2185 = vrot.lane.b32.xlu0 %v4632_v0, %s3947_s25 }
 0x723   : > { %2093 = vrot.lane.b32.xlu1 %v2033_v39, %s3957_s23  ;;  %2217 = vrot.lane.b32.xlu0 %v2033_v39, %s3956_s13 }
 0x725   : > { %v2348_v41 = vpop.permute.xlu1 %2347  ;;  %v2324_v42 = vpop.permute.xlu0 %2323 }
 0x726   : > { %v2459_v7 = vsel %vm480_vm4, %v2015_v36, %v2324_v42 }
 0x727   : > { %2219 = vrot.lane.b32.xlu1 %v2058_v40, %s3956_s13  ;;  %2125 = vrot.lane.b32.xlu0 %v4637_v3, %s5047_s11  ;;  %v2467_v51 = vsel %vm2281_vm8, %v2459_v7, %v2348_v41 }
 0x729   : > { %v2350_v43 = vpop.permute.xlu1 %2349  ;;  %v2326_v44 = vpop.permute.xlu0 %2325 }
 0x72a   : > { %v2460_v57 = vsel %vm480_vm4, %v4632_v0, %v2326_v44 }
 0x72b   : > { %2095 = vrot.lane.b32.xlu1 %v2058_v40, %s3957_s23  ;;  %2249 = vrot.lane.b32.xlu0 %v4637_v3, %s3958_s24  ;;  %v2468_v61 = vsel %vm2281_vm8, %v2460_v57, %v2350_v43 }
 0x72d   : > { %v2382_v45 = vpop.permute.xlu1 %2381  ;;  %v2380_v46 = vpop.permute.xlu0 %2379 }
 0x72e   : > { %v2476_v52 = vsel %vm2475_vm9, %v2467_v51, %v2380_v46  ;;  %v2477_v62 = vsel %vm2475_vm9, %v2468_v61, %v2382_v45 }
 0x72f   : > { %2157 = vrot.lane.b32.xlu1 %v2058_v40, %s3935_s22  ;;  %2127 = vrot.lane.b32.xlu0 %v4659_v14, %s5047_s11 }
 0x731   : > { %v2328_v47 = vpop.permute.xlu1 %2327  ;;  %v2404_v50 = vpop.permute.xlu0 %2403 }
 0x732   : > { %v2484_v53 = vsel %vm1329_vm11, %v2476_v52, %v2404_v50  ;;  %v2461_v10 = vsel %vm480_vm4, %v4637_v3, %v2328_v47 }
 0x733   : > { %2159 = vrot.lane.b32.xlu1 %v2035_v48, %s3935_s22  ;;  %2251 = vrot.lane.b32.xlu0 %v4659_v14, %s3958_s24 }
 0x735   : > { %v2436_v54 = vpop.permute.xlu1 %2435  ;;  %v2406_v55 = vpop.permute.xlu0 %2405 }
 0x736   : > { %v2492_v56 = vsel %vm1340_vm1, %v2484_v53, %v2436_v54  ;;  %v2485_v63 = vsel %vm1329_vm11, %v2477_v62, %v2406_v55 }
 0x737   : > { %3607 = vmatprep.mubr.msk.f32.mxu1 %vm2512_vm10, %v2492_v56  ;;  %2191 = vrot.lane.b32.xlu1 %v4670_v19, %s3947_s25 }
 0x738   : > { %2189 = vrot.lane.b32.xlu0 %v4659_v14, %s3947_s25 }
 0x739   : > { %v2352_v58 = vpop.permute.xlu1 %2351  ;;  %v2330_v59 = vpop.permute.xlu0 %2329 }
 0x73a   : > { %v2469_v12 = vsel %vm2281_vm8, %v2461_v10, %v2352_v58  ;;  %v2462_v2 = vsel %vm480_vm4, %v4659_v14, %v2330_v59  ;;  %v2062_v14 = vld [vmem:[#allocation3 + $0x70] sm:$0xff] }
 0x73b   : > { %2097 = vrot.lane.b32.xlu1 %v2035_v48, %s3957_s23 }
 0x73c   : > { %2221 = vrot.lane.b32.xlu0 %v2035_v48, %s3956_s13 }
 0x73d   : > { %v2354_v9 = vpop.permute.xlu1 %2353  ;;  %v2438_v1 = vpop.permute.xlu0 %2437 }
 0x73e   : > { %v2493_v0 = vsel %vm1340_vm1, %v2485_v63, %v2438_v1  ;;  %v2470_v15 = vsel %vm2281_vm8, %v2462_v2, %v2354_v9 }
 0x73f   : > { %3608 = vmatmul.mubr.msk.f32.vlgmr.msra.gmra.mrb[10].mxu1 %vm2512_vm10, %v2493_v0  ;;  %2223 = vrot.lane.b32.xlu1 %v2060_v49, %s3956_s13 }
 0x740   : > { %2129 = vrot.lane.b32.xlu0 %v4670_v19, %s5047_s11  ;;  %3634 = vmatpush3.msra.mxu1 %v4701_v25 }
 0x741   : > { %v2386_v11 = vpop.permute.xlu1 %2385  ;;  %v2384_v4 = vpop.permute.xlu0 %2383 }
 0x742   : > { %v2478_v13 = vsel %vm2475_vm9, %v2469_v12, %v2384_v4  ;;  %v2479_v28 = vsel %vm2475_vm9, %v2470_v15, %v2386_v11 }
 0x743   : > { %2099 = vrot.lane.b32.xlu1 %v2060_v49, %s3957_s23 }
 0x744   : > { %2253 = vrot.lane.b32.xlu0 %v4670_v19, %s3958_s24 }
 0x745   : > { %v2332_v6 = vpop.permute.xlu1 %2331  ;;  %v2408_v8 = vpop.permute.xlu0 %2407 }
 0x746   : > { %v2486_v16 = vsel %vm1329_vm11, %v2478_v13, %v2408_v8  ;;  %v2463_v44 = vsel %vm480_vm4, %v4670_v19, %v2332_v6  ;;  %v2039_v19 = vld [vmem:[#allocation3 + $0x80] sm:$0xff] }
 0x747   : > { %2161 = vrot.lane.b32.xlu1 %v2060_v49, %s3935_s22 }
 0x748   : > { %2131 = vrot.lane.b32.xlu0 %v4680_v21, %s5047_s11 }
 0x749   : > { %v2440_v18 = vpop.permute.xlu1 %2439  ;;  %v2410_v20 = vpop.permute.xlu0 %2409 }
 0x74a   : > { %v2494_v22 = vsel %vm1340_vm1, %v2486_v16, %v2440_v18  ;;  %v2487_v36 = vsel %vm1329_vm11, %v2479_v28, %v2410_v20 }
 0x74b   : > { %3610 = vmatprep.mubr.msk.f32.mxu1 %vm2512_vm10, %v2494_v22  ;;  %2163 = vrot.lane.b32.xlu1 %v2037_v60, %s3935_s22 }
 0x74c   : > { %2255 = vrot.lane.b32.xlu0 %v4680_v21, %s3958_s24 }
 0x74d   : > { %v2356_v3 = vpop.permute.xlu1 %2355  ;;  %v2334_v24 = vpop.permute.xlu0 %2333 }
 0x74e   : > { %v2471_v45 = vsel %vm2281_vm8, %v2463_v44, %v2356_v3  ;;  %v2464_v53 = vsel %vm480_vm4, %v4680_v21, %v2334_v24 }
 0x74f   : > { %2195 = vrot.lane.b32.xlu1 %v4688_v23, %s3947_s25 }
 0x750   : > { %2193 = vrot.lane.b32.xlu0 %v4680_v21, %s3947_s25  ;;  %v2064_v21 = vld [vmem:[#allocation3 + $0x90] sm:$0xff] }
 0x751   : > { %v2358_v37 = vpop.permute.xlu1 %2357  ;;  %v2442_v38 = vpop.permute.xlu0 %2441 }
 0x752   : > { %v2495_v39 = vsel %vm1340_vm1, %v2487_v36, %v2442_v38  ;;  %v2472_v54 = vsel %vm2281_vm8, %v2464_v53, %v2358_v37 }
 0x753   : > { %3611 = vmatmul.mubr.msk.f32.gmra.mrb[12].mxu1 %vm2512_vm10, %v2495_v39  ;;  %2101 = vrot.lane.b32.xlu1 %v2037_v60, %s3957_s23 }
 0x754   : > { %2225 = vrot.lane.b32.xlu0 %v2037_v60, %s3956_s13 }
 0x755   : > { %v2390_v40 = vpop.permute.xlu1 %2389  ;;  %v2388_v41 = vpop.permute.xlu0 %2387 }
 0x756   : > { %v2480_v46 = vsel %vm2475_vm9, %v2471_v45, %v2388_v41  ;;  %v2481_v55 = vsel %vm2475_vm9, %v2472_v54, %v2390_v40 }
 0x757   : > { %2227 = vrot.lane.b32.xlu1 %v2062_v14, %s3956_s13 }
 0x758   : > { %2133 = vrot.lane.b32.xlu0 %v4688_v23, %s5047_s11 }
 0x759   : > { %v2336_v42 = vpop.permute.xlu1 %2335  ;;  %v2412_v43 = vpop.permute.xlu0 %2411 }
 0x75a   : > { %v2488_v7 = vsel %vm1329_vm11, %v2480_v46, %v2412_v43  ;;  %v2465_v9 = vsel %vm480_vm4, %v4688_v23, %v2336_v42 }
 0x75b   : > { %2103 = vrot.lane.b32.xlu1 %v2062_v14, %s3957_s23 }
 0x75c   : > { %2257 = vrot.lane.b32.xlu0 %v4688_v23, %s3958_s24 }
 0x75d   : > { %v2444_v48 = vpop.permute.xlu1 %2443  ;;  %v2414_v47 = vpop.permute.xlu0 %2413 }
 0x75e   : > { %v2496_v50 = vsel %vm1340_vm1, %v2488_v7, %v2444_v48  ;;  %v2489_v56 = vsel %vm1329_vm11, %v2481_v55, %v2414_v47 }
 0x75f   : > { %3613 = vmatprep.mubr.msk.f32.mxu1 %vm2512_vm10, %v2496_v50  ;;  %2165 = vrot.lane.b32.xlu1 %v2062_v14, %s3935_s22 }
 0x760   : > { %2135 = vrot.lane.b32.xlu0 %v4703_v26, %s5047_s11 }
 0x761   : > { %v2360_v51 = vpop.permute.xlu1 %2359  ;;  %v2338_v52 = vpop.permute.xlu0 %2337 }
 0x762   : > { %v2466_v1 = vsel %vm480_vm4, %v4703_v26, %v2338_v52  ;;  %v2473_v0 = vsel %vm2281_vm8, %v2465_v9, %v2360_v51 }
 0x763   : > { %2167 = vrot.lane.b32.xlu1 %v2039_v19, %s3935_s22 }
 0x764   : > { %2259 = vrot.lane.b32.xlu0 %v4703_v26, %s3958_s24 }
 0x765   : > { %v2362_v57 = vpop.permute.xlu1 %2361  ;;  %v2446_v58 = vpop.permute.xlu0 %2445 }
 0x766   : > { %v2497_v59 = vsel %vm1340_vm1, %v2489_v56, %v2446_v58  ;;  %v2474_v11 = vsel %vm2281_vm8, %v2466_v1, %v2362_v57 }
 0x767   : > { %3614 = vmatmul.mubr.msk.f32.gmra.mrb[14].mxu1 %vm2512_vm10, %v2497_v59  ;;  %2199 = vrot.lane.b32.xlu1 %v4713_v17, %s3947_s25 }
 0x768   : > { %2197 = vrot.lane.b32.xlu0 %v4703_v26, %s3947_s25 }
 0x769   : > { %v2394_v61 = vpop.permute.xlu1 %2393  ;;  %v2392_v62 = vpop.permute.xlu0 %2391 }
 0x76a   : > { %v2483_v4 = vsel %vm2475_vm9, %v2474_v11, %v2394_v61  ;;  %v2482_v6 = vsel %vm2475_vm9, %v2473_v0, %v2392_v62 }
 0x76b   : > { %2231 = vrot.lane.b32.xlu1 %v2064_v21, %s3956_s13 }
 0x76c   : > { %2229 = vrot.lane.b32.xlu0 %v2039_v19, %s3956_s13 }
 0x76d   : > { %v2418_v49 = vpop.permute.xlu1 %2417  ;;  %v2416_v63 = vpop.permute.xlu0 %2415 }
 0x76e   : > { %v2491_v8 = vsel %vm1329_vm11, %v2483_v4, %v2418_v49  ;;  %v2490_v23 = vsel %vm1329_vm11, %v2482_v6, %v2416_v63 }
 0x76f   : > { %2263 = vrot.lane.b32.xlu1 %v4720_v27, %s3958_s24 }
 0x770   : > { %2261 = vrot.lane.b32.xlu0 %v4713_v17, %s3958_s24 }
 0x771   : > { %v2450_v10 = vpop.permute.xlu1 %2449  ;;  %v2448_v26 = vpop.permute.xlu0 %2447 }
 0x772   : > { %v2499_v12 = vsel %vm1340_vm1, %v2491_v8, %v2450_v10  ;;  %v2498_v13 = vsel %vm1340_vm1, %v2490_v23, %v2448_v26 }
 0x773   : > { %3616 = vmatprep.mubr.msk.f32.mxu1 %vm2512_vm10, %v2498_v13 }
 0x774   : > { %3617 = vmatmul.mubr.msk.f32.gmra.mrb[16].mxu1 %vm2512_vm10, %v2499_v12 }
 0x775   : > { %v2923_v27 = vpop.permute.xlu1 %2922  ;;  %v2921_v60 = vpop.permute.xlu0 %2920 }
 0x776   : > { %3635 = vmatprep.mubr.msk.f32.mxu1 %vm480_vm4, %v2921_v60 }
 0x778   : > { %3636 = vmatmul.mubr.msk.f32.vlgmr.msra.gmra.mrb[10].mxu1 %vm480_vm4, %v2923_v27 }
 0x779   : > { %v2927_v17 = vpop.permute.xlu1 %2926  ;;  %v2925_v16 = vpop.permute.xlu0 %2924 }
 0x77a   : > { %3638 = vmatprep.mubr.msk.f32.mxu1 %vm480_vm4, %v2925_v16 }
 0x77c   : > { %3639 = vmatmul.mubr.msk.f32.gmra.mrb[12].mxu1 %vm480_vm4, %v2927_v17 }
 0x77d   : > { %v2931_v18 = vpop.permute.xlu1 %2930  ;;  %v2929_v20 = vpop.permute.xlu0 %2928 }
 0x77e   : > { %3641 = vmatprep.mubr.msk.f32.mxu1 %vm480_vm4, %v2929_v20 }
 0x780   : > { %3642 = vmatmul.mubr.msk.f32.gmra.mrb[14].mxu1 %vm480_vm4, %v2931_v18 }
 0x781   : > { %v2935_v22 = vpop.permute.xlu1 %2934  ;;  %v2933_v3 = vpop.permute.xlu0 %2932 }
 0x782   : > { %3644 = vmatprep.mubr.msk.f32.mxu1 %vm480_vm4, %v2933_v3 }
 0x784   : > { %3645 = vmatmul.mubr.msk.f32.gmra.mrb[16].mxu1 %vm480_vm4, %v2935_v22 }
 0x785   : > { %v2122_v24 = vpop.permute.xlu1 %2121  ;;  %v2090_v2 = vpop.permute.xlu0 %2089 }
 0x786   : > { %v2273_v41 = vsel %vm605_vm5, %v2090_v2, %v2122_v24 }
 0x789   : > { %v2124_v15 = vpop.permute.xlu1 %2123  ;;  %v2092_v28 = vpop.permute.xlu0 %2091 }
 0x78a   : > { %v2274_v47 = vsel %vm605_vm5, %v2092_v28, %v2124_v15 }
 0x78d   : > { %v2156_v36 = vpop.permute.xlu1 %2155  ;;  %v2154_v37 = vpop.permute.xlu0 %2153 }
 0x78e   : > { %v2282_v44 = vsel %vm2281_vm8, %v2273_v41, %v2154_v37  ;;  %v2283_v19 = vsel %vm2281_vm8, %v2274_v47, %v2156_v36 }
 0x791   : > { %v2188_v38 = vpop.permute.xlu1 %2187  ;;  %v2186_v39 = vpop.permute.xlu0 %2185 }
 0x792   : > { %v2290_v45 = vsel %vm405_vm0, %v2282_v44, %v2186_v39  ;;  %v2291_v53 = vsel %vm405_vm0, %v2283_v19, %v2188_v38 }
 0x795   : > { %v2094_v14 = vpop.permute.xlu1 %2093  ;;  %v2218_v40 = vpop.permute.xlu0 %2217 }
 0x796   : > { %v2298_v46 = vsel %vm1329_vm11, %v2290_v45, %v2218_v40 }
 0x799   : > { %v2220_v42 = vpop.permute.xlu1 %2219  ;;  %v2126_v43 = vpop.permute.xlu0 %2125 }
 0x79a   : > { %v2299_v54 = vsel %vm1329_vm11, %v2291_v53, %v2220_v42  ;;  %v2275_v63 = vsel %vm605_vm5, %v2094_v14, %v2126_v43 }
 0x79d   : > { %v2096_v7 = vpop.permute.xlu1 %2095  ;;  %v2250_v48 = vpop.permute.xlu0 %2249 }
 0x79e   : > { %v2307_v50 = vsel %vm2306_vm12, %v2298_v46, %v2250_v48 }
 0x79f   : > { %3585 = vmatprep.mubr.msk.f32.mxu0 %vm2512_vm10, %v2307_v50 }
 0x7a1   : > { %v2158_v51 = vpop.permute.xlu1 %2157  ;;  %v2128_v52 = vpop.permute.xlu0 %2127 }
 0x7a2   : > { %v2284_v9 = vsel %vm2281_vm8, %v2275_v63, %v2158_v51 }
 0x7a5   : > { %v2160_v55 = vpop.permute.xlu1 %2159  ;;  %v2252_v56 = vpop.permute.xlu0 %2251 }
 0x7a6   : > { %v2308_v57 = vsel %vm2306_vm12, %v2299_v54, %v2252_v56 }
 0x7a7   : > { %3586 = vmatmul.mubr.msk.f32.vlgmr.msra.gmra.mrb[10].mxu0 %vm2512_vm10, %v2308_v57 }
 0x7a8   : > { %3620 = vmatpush3.msra.mxu0 %v4701_v25  ;;  %v2276_v25 = vsel %vm605_vm5, %v2096_v7, %v2128_v52 }
 0x7a9   : > { %v2192_v58 = vpop.permute.xlu1 %2191  ;;  %v2285_v10 = vsel %vm2281_vm8, %v2276_v25, %v2160_v55 }
 0x7aa   : > { %v2190_v59 = vpop.permute.xlu0 %2189  ;;  %v2293_v26 = vsel %vm405_vm0, %v2285_v10, %v2192_v58 }
 0x7ab   : > { %v2292_v1 = vsel %vm405_vm0, %v2284_v9, %v2190_v59 }
 0x7ad   : > { %v2098_v21 = vpop.permute.xlu1 %2097 }
 0x7ae   : > { %v2222_v61 = vpop.permute.xlu0 %2221 }
 0x7af   : > { %v2300_v11 = vsel %vm1329_vm11, %v2292_v1, %v2222_v61 }
 0x7b1   : > { %v2224_v62 = vpop.permute.xlu1 %2223 }
 0x7b2   : > { %v2130_v49 = vpop.permute.xlu0 %2129  ;;  %v2301_v13 = vsel %vm1329_vm11, %v2293_v26, %v2224_v62 }
 0x7b3   : > { %v2277_v24 = vsel %vm605_vm5, %v2098_v21, %v2130_v49 }
 0x7b5   : > { %v2100_v0 = vpop.permute.xlu1 %2099 }
 0x7b6   : > { %v2254_v4 = vpop.permute.xlu0 %2253 }
 0x7b7   : > { %v2309_v6 = vsel %vm2306_vm12, %v2300_v11, %v2254_v4 }
 0x7b8   : > { %3588 = vmatprep.mubr.msk.f32.mxu0 %vm2512_vm10, %v2309_v6 }
 0x7b9   : > { %v2162_v8 = vpop.permute.xlu1 %2161 }
 0x7ba   : > { %v2132_v23 = vpop.permute.xlu0 %2131  ;;  %v2286_v2 = vsel %vm2281_vm8, %v2277_v24, %v2162_v8 }
 0x7bb   : > { %v2278_v39 = vsel %vm605_vm5, %v2100_v0, %v2132_v23 }
 0x7bd   : > { %v2164_v12 = vpop.permute.xlu1 %2163 }
 0x7be   : > { %v2256_v27 = vpop.permute.xlu0 %2255  ;;  %v2287_v41 = vsel %vm2281_vm8, %v2278_v39, %v2164_v12 }
 0x7bf   : > { %v2310_v60 = vsel %vm2306_vm12, %v2301_v13, %v2256_v27 }
 0x7c0   : > { %3589 = vmatmul.mubr.msk.f32.gmra.mrb[12].mxu0 %vm2512_vm10, %v2310_v60 }
 0x7c1   : > { %v2196_v17 = vpop.permute.xlu1 %2195 }
 0x7c2   : > { %v2194_v16 = vpop.permute.xlu0 %2193  ;;  %v2295_v42 = vsel %vm405_vm0, %v2287_v41, %v2196_v17 }
 0x7c3   : > { %v2294_v15 = vsel %vm405_vm0, %v2286_v2, %v2194_v16 }
 0x7c5   : > { %v2102_v18 = vpop.permute.xlu1 %2101 }
 0x7c6   : > { %v2226_v20 = vpop.permute.xlu0 %2225 }
 0x7c7   : > { %v2302_v36 = vsel %vm1329_vm11, %v2294_v15, %v2226_v20 }
 0x7c9   : > { %v2228_v22 = vpop.permute.xlu1 %2227 }
 0x7ca   : > { %v2134_v3 = vpop.permute.xlu0 %2133  ;;  %v2303_v44 = vsel %vm1329_vm11, %v2295_v42, %v2228_v22 }
 0x7cb   : > { %v2279_v51 = vsel %vm605_vm5, %v2102_v18, %v2134_v3 }
 0x7cd   : > { %v2104_v28 = vpop.permute.xlu1 %2103 }
 0x7ce   : > { %v2258_v37 = vpop.permute.xlu0 %2257 }
 0x7cf   : > { %v2311_v38 = vsel %vm2306_vm12, %v2302_v36, %v2258_v37 }
 0x7d0   : > { %3591 = vmatprep.mubr.msk.f32.mxu0 %vm2512_vm10, %v2311_v38 }
 0x7d1   : > { %v2166_v14 = vpop.permute.xlu1 %2165 }
 0x7d2   : > { %v2136_v40 = vpop.permute.xlu0 %2135  ;;  %v2288_v54 = vsel %vm2281_vm8, %v2279_v51, %v2166_v14 }
 0x7d3   : > { %v2280_v47 = vsel %vm605_vm5, %v2104_v28, %v2136_v40 }
 0x7d5   : > { %v2168_v43 = vpop.permute.xlu1 %2167 }
 0x7d6   : > { %v2260_v45 = vpop.permute.xlu0 %2259  ;;  %v2289_v52 = vsel %vm2281_vm8, %v2280_v47, %v2168_v43 }
 0x7d7   : > { %v2312_v46 = vsel %vm2306_vm12, %v2303_v44, %v2260_v45 }
 0x7d8   : > { %3592 = vmatmul.mubr.msk.f32.gmra.mrb[14].mxu0 %vm2512_vm10, %v2312_v46 }
 0x7d9   : > { %v2200_v7 = vpop.permute.xlu1 %2199 }
 0x7da   : > { %v2198_v48 = vpop.permute.xlu0 %2197  ;;  %v2297_v53 = vsel %vm405_vm0, %v2289_v52, %v2200_v7 }
 0x7db   : > { %v2296_v55 = vsel %vm405_vm0, %v2288_v54, %v2198_v48  ;;  %vm3137_vm0 = vcmask 60416  }
 0x7dd   : > { %v2232_v50 = vpop.permute.xlu1 %2231 }
 0x7de   : > { %v2230_v19 = vpop.permute.xlu0 %2229  ;;  %v2305_v56 = vsel %vm1329_vm11, %v2297_v53, %v2232_v50 }
 0x7df   : > { %v2304_v58 = vsel %vm1329_vm11, %v2296_v55, %v2230_v19 }
 0x7e1   : > { %v2264_v57 = vpop.permute.xlu1 %2263 }
 0x7e2   : > { %v2314_v59 = vsel %vm2306_vm12, %v2305_v56, %v2264_v57  ;;  %v2262_v21 = vpop.permute.xlu0 %2261 }
 0x7e3   : > { %v2313_v61 = vsel %vm2306_vm12, %v2304_v58, %v2262_v21 }
 0x7e4   : > { %3594 = vmatprep.mubr.msk.f32.mxu0 %vm2512_vm10, %v2313_v61 }
 0x7e5   : > { %3595 = vmatmul.mubr.msk.f32.gmra.mrb[16].mxu0 %vm2512_vm10, %v2314_v59 }
 0x7e6   : > { %3621 = vmatprep.mubr.msk.f32.mxu0 %vm480_vm4, %v4730_v30  ;;  %v3338_v30 = vld [vmem:[%s5034_s9] ss:$0 sm:$0xff] }
 0x7e9   : > { %3622 = vmatmul.mubr.msk.f32.vlgmr.msra.gmra.mrb[10].mxu0 %vm480_vm4, %v4728_v29  ;;  %v3319_v29 = vld [vmem:[%s5032_s7] ss:$0 sm:$0xff] }
 0x7ea   : > { %3624 = vmatprep.mubr.msk.f32.mxu0 %vm480_vm4, %v4738_v32 }
 0x7ed   : > { %3625 = vmatmul.mubr.msk.f32.gmra.mrb[12].mxu0 %vm480_vm4, %v4736_v31  ;;  %v4966_v31 = vadd.f32 %v3338_v30, %v3319_v29 }
 0x7ee   : > { %3627 = vmatprep.mubr.msk.f32.mxu0 %vm480_vm4, %v4746_v34 }
 0x7f1   : > { %3628 = vmatmul.mubr.msk.f32.gmra.mrb[14].mxu0 %vm480_vm4, %v4744_v33 }
 0x7f2   : > { %3630 = vmatprep.mubr.msk.f32.mxu0 %vm480_vm4, %v4754_v5 }
 0x7f5   : > { %3631 = vmatmul.mubr.msk.f32.gmra.mrb[16].mxu0 %vm480_vm4, %v4752_v35 }
 0x84b   : > { %v3637_v32 = vpop.f32.mrb[10].mxu1 }
 0x84c   : > { %v3714_v34 = vadd.f32 %v4966_v31, %v3637_v32  ;;  %v3018_v33 = vpop.f32.mrb[11].mxu1 }
 0x84d   : > { %v3716_v62 = vadd.f32 %v4966_v31, %v3018_v33 }
 0x84e   : > { %v3082_v5 = vmax.f32 %v3714_v34, 0.0 }
 0x84f   : > { %v3081_v49 = vmax.f32 %v3716_v62, 0.0  ;;  %v3640_v63 = vpop.f32.mrb[12].mxu1 }
 0x850   : > { %v3718_v35 = vadd.f32 %v4966_v31, %v3640_v63  ;;  %v3028_v9 = vpop.f32.mrb[13].mxu1 }
 0x851   : > { %v3720_v1 = vadd.f32 %v4966_v31, %v3028_v9  ;;  %v3872_v0 = vpack.i.bf16 %v3082_v5, %v3081_v49 }
 0x852   : > { %v3084_v11 = vmax.f32 %v3718_v35, 0.0 }
 0x853   : > { %v3083_v4 = vmax.f32 %v3720_v1, 0.0  ;;  %v3643_v6 = vpop.f32.mrb[14].mxu1  ;;  %3873 = vrot.lane.b32.xlu0 %v3872_v0, %s5047_s11 }
 0x854   : > { %v3722_v25 = vadd.f32 %v4966_v31, %v3643_v6  ;;  %v3038_v8 = vpop.f32.mrb[15].mxu1 }
 0x855   : > { %v3724_v23 = vadd.f32 %v4966_v31, %v3038_v8  ;;  %v3877_v10 = vpack.i.bf16 %v3084_v11, %v3083_v4 }
 0x856   : > { %v3086_v26 = vmax.f32 %v3722_v25, 0.0 }
 0x857   : > { %v3085_v12 = vmax.f32 %v3724_v23, 0.0  ;;  %v3646_v13 = vpop.f32.mrb[16].mxu1  ;;  %3878 = vrot.lane.b32.xlu1 %v3877_v10, %s5047_s11 }
 0x858   : > { %v3726_v27 = vadd.f32 %v4966_v31, %v3646_v13  ;;  %v3048_v60 = vpop.f32.mrb[17].mxu1 }
 0x859   : > { %v3882_v17 = vpack.i.bf16 %v3086_v26, %v3085_v12  ;;  %v3728_v16 = vadd.f32 %v4966_v31, %v3048_v60 }
 0x85a   : > { %v3088_v18 = vmax.f32 %v3726_v27, 0.0 }
 0x85b   : > { %v3087_v20 = vmax.f32 %v3728_v16, 0.0  ;;  %3883 = vrot.lane.b32.xlu0 %v3882_v17, %s5047_s11 }
 0x85d   : > { %v3887_v22 = vpack.i.bf16 %v3088_v18, %v3087_v20 }
 0x85f   : > { %3888 = vrot.lane.b32.xlu1 %v3887_v22, %s5047_s11 }
 0x8bc   : > { %v3623_v3 = vpop.f32.mrb[10].mxu0 }
 0x8bd   : > { %v3697_v24 = vadd.f32 %v3623_v3, %v3319_v29  ;;  %v2881_v2 = vpop.f32.mrb[11].mxu0 }
 0x8be   : > { %v3699_v15 = vadd.f32 %v3319_v29, %v2881_v2 }
 0x8bf   : > { %v3698_v36 = vadd.f32 %v3697_v24, %v3338_v30 }
 0x8c0   : > { %v3626_v28 = vpop.f32.mrb[12].mxu0  ;;  %v3700_v38 = vadd.f32 %v3699_v15, %v3338_v30 }
 0x8c1   : > { %v2891_v37 = vpop.f32.mrb[13].mxu0  ;;  %v3066_v14 = vmax.f32 %v3698_v36, 0.0  ;;  %v3702_v40 = vadd.f32 %v4966_v31, %v3626_v28 }
 0x8c2   : > { %v3065_v43 = vmax.f32 %v3700_v38, 0.0  ;;  %v3704_v44 = vadd.f32 %v4966_v31, %v2891_v37 }
 0x8c3   : > { %v3068_v55 = vmax.f32 %v3702_v40, 0.0 }
 0x8c4   : > { %v3629_v39 = vpop.f32.mrb[14].mxu0  ;;  %v3067_v56 = vmax.f32 %v3704_v44, 0.0 }
 0x8c5   : > { %v2901_v41 = vpop.f32.mrb[15].mxu0  ;;  %v3874_v42 = vpop.permute.xlu0 %3873  ;;  %v3706_v50 = vadd.f32 %v4966_v31, %v3629_v39 }
 0x8c6   : > { %v3876_v45 = vunpack.i.h.bf16 %v3874_v42  ;;  %v3875_v46 = vunpack.i.l.bf16 %v3874_v42  ;;  %v3708_v19 = vadd.f32 %v4966_v31, %v2901_v41 }
 0x8c7   : > { %v3070_v61 = vmax.f32 %v3706_v50, 0.0 }
 0x8c8   : > { %v3122_v7 = vsel %vm605_vm5, %v3066_v14, %v3876_v45  ;;  %v3121_v48 = vsel %vm605_vm5, %v3065_v43, %v3875_v46  ;;  %v3632_v47 = vpop.f32.mrb[16].mxu0  ;;  %v3069_v29 = vmax.f32 %v3708_v19, 0.0 }
 0x8c9   : > { %v3130_v51 = vpack.c.bf16 %v3122_v7, %v3122_v7  ;;  %v3129_v52 = vpack.c.bf16 %v3121_v48, %v3121_v48  ;;  %v2911_v53 = vpop.f32.mrb[17].mxu0  ;;  %v3879_v54 = vpop.permute.xlu1 %3878  ;;  %v3710_v33 = vadd.f32 %v4966_v31, %v3632_v47 }
 0x8ca   : > { %v3881_v57 = vunpack.i.h.bf16 %v3879_v54  ;;  %v3880_v58 = vunpack.i.l.bf16 %v3879_v54  ;;  %v3712_v62 = vadd.f32 %v4966_v31, %v2911_v53 }
 0x8cb   : > { %3139 = vst.msk [vmem:[%s4121_s19 + $0x4] sm:$0xf] %vm3137_vm0, %v3130_v51  ;;  %3138 = vst.msk [vmem:[%s4121_s19] sm:$0xf] %vm3137_vm0, %v3129_v52  ;;  %v3072_v11 = vmax.f32 %v3710_v33, 0.0 }
 0x8cc   : > { %v3123_v59 = vsel %vm605_vm5, %v3067_v56, %v3880_v58  ;;  %v3124_v21 = vsel %vm605_vm5, %v3068_v55, %v3881_v57  ;;  %v3071_v4 = vmax.f32 %v3712_v62, 0.0 }
 0x8cd   : > { %v3131_v30 = vpack.c.bf16 %v3123_v59, %v3123_v59  ;;  %v3132_v32 = vpack.c.bf16 %v3124_v21, %v3124_v21  ;;  %v3884_v34 = vpop.permute.xlu0 %3883 }
 0x8ce   : > { %v3886_v5 = vunpack.i.h.bf16 %v3884_v34  ;;  %v3885_v49 = vunpack.i.l.bf16 %v3884_v34 }
 0x8cf   : > { %3140 = vst.msk [vmem:[%s4121_s19 + $0x8] sm:$0xf] %vm3137_vm0, %v3131_v30  ;;  %3141 = vst.msk [vmem:[%s4121_s19 + $0xc] sm:$0xf] %vm3137_vm0, %v3132_v32 }
 0x8d0   : > { %v3126_v63 = vsel %vm605_vm5, %v3070_v61, %v3886_v5  ;;  %v3125_v35 = vsel %vm605_vm5, %v3069_v29, %v3885_v49 }
 0x8d1   : > { %v3134_v9 = vpack.c.bf16 %v3126_v63, %v3126_v63  ;;  %v3133_v1 = vpack.c.bf16 %v3125_v35, %v3125_v35  ;;  %v3889_v0 = vpop.permute.xlu1 %3888 }
 0x8d2   : > { %v3891_v6 = vunpack.i.h.bf16 %v3889_v0  ;;  %v3890_v25 = vunpack.i.l.bf16 %v3889_v0 }
 0x8d3   : > { %3143 = vst.msk [vmem:[%s4121_s19 + $0x14] sm:$0xf] %vm3137_vm0, %v3134_v9  ;;  %3142 = vst.msk [vmem:[%s4121_s19 + $0x10] sm:$0xf] %vm3137_vm0, %v3133_v1 }
 0x8d4   : > { %v3127_v31 = vsel %vm605_vm5, %v3071_v4, %v3890_v25  ;;  %v3128_v8 = vsel %vm605_vm5, %v3072_v11, %v3891_v6 }
 0x8d5   : > { %v3135_v23 = vpack.c.bf16 %v3127_v31, %v3127_v31  ;;  %v3136_v10 = vpack.c.bf16 %v3128_v8, %v3128_v8 }
 0x8d7   : > { %3144 = vst.msk [vmem:[%s4121_s19 + $0x18] sm:$0xf] %vm3137_vm0, %v3135_v23  ;;  %3145 = vst.msk [vmem:[%s4121_s19 + $0x1c] sm:$0xf] %vm3137_vm0, %v3136_v10 }
 0x8d8 PF: > { %s20_s17 = sadd.s32 1, %s3930_s17   ;;  %s5048_s26 = sld [smem:[#allocation4_spill]] }
 0x8d9   : > { %p17_p11 = scmp.ge.s32.totalorder %s20_s17, 6   ;;  %s5049_s13 = smov %s3922_s15 }
 0x8da   : > { %s5050_s14 = smov %s3926_s16  ;;  %s5051_s15 = smov %s5054_s18 }
 0x8db   :  { %19 = sbr.rel (!%p17_p11) target bundleno = 3 (0x3), region = 121 }
 0x8de   : > { %s5052_s16 = smov %s5048_s26 }

</bundles_post_ra>
